<compile_context>
chip_gen: v7x
topology: tpu7x:2x2x1
jax: 0.10.0
libtpu: 0.0.40
codegen_flags: <defaults>
</compile_context>

<pallas_src>
import functools

import jax
import jax.numpy as jnp
from jax.experimental import pallas as pl
from jax.experimental.pallas import tpu as pltpu

_LANES = 128


def _round_up(x, m):
    return ((x + m - 1) // m) * m


# ----------------------------- kernel ----------------------------------------
def _double_conv_kernel(x_ref, w1_ref, s1_ref, b1_ref, w2_ref, s2_ref, b2_ref,
                        o_ref, xp_ref):
    """Fused (conv3x3 'same' + BN(eval) + ReLU) x 2 for one batch element.

    x_ref : (1, H, W, Cp)   compute-dtype input, channels zero-padded to Cp
    w*_ref: (9*Cp, Cp)      im2col-packed weights, row index = (dy*3+dx)*Cp + cin
    s*_ref, b*_ref: (1, Cp) folded BN scale / shift (f32, zeros in padding)
    o_ref : (1, H, W, Cp)   f32 output (padded channels are zero)
    xp_ref: (H+2, W+2, Cp)  VMEM scratch: zero-halo input for both stages
    """
    H, W, Cp = o_ref.shape[1], o_ref.shape[2], o_ref.shape[3]

    def conv3x3(w_ref):
        # im2col: one lane-dense (H*W, 9*Cp) x (9*Cp, Cp) matmul on the MXU.
        cols = [xp_ref[dy:dy + H, dx:dx + W, :].reshape(H * W, Cp)
                for dy in range(3) for dx in range(3)]
        patch = jnp.concatenate(cols, axis=-1)               # (H*W, 9*Cp)
        return jnp.dot(patch, w_ref[...],
                       preferred_element_type=jnp.float32)   # f32 accumulate

    # ---- halo init: scratch persists across grid steps; only the 1-pixel ----
    # ---- border must be zero, and it is never written after this memset. ----
    @pl.when(pl.program_id(0) == 0)
    def _():
        xp_ref[...] = jnp.zeros_like(xp_ref)

    # ---- stage 1: interior <- input tile --------------------------------------
    xp_ref[1:H + 1, 1:W + 1, :] = x_ref[0]

    y = conv3x3(w1_ref)
    y = jnp.maximum(y * s1_ref[0] + b1_ref[0], 0.0)          # bias+BN fold, ReLU

    # ---- stage 2: intermediate stays in VMEM (halo border is still zero) ------
    xp_ref[1:H + 1, 1:W + 1, :] = y.reshape(H, W, Cp).astype(xp_ref.dtype)

    y = conv3x3(w2_ref)
    y = jnp.maximum(y * s2_ref[0] + b2_ref[0], 0.0)
    o_ref[...] = y.reshape(1, H, W, Cp).astype(o_ref.dtype)


# ----------------------------- wrapper ----------------------------------------
def _fold_bn(conv_bias, gamma, beta, mean, var, cp, eps=1e-5):
    scale = gamma / jnp.sqrt(var + eps)                      # (Cout,)
    shift = beta + (conv_bias - mean) * scale                # (Cout,)
    scale = jnp.pad(scale, (0, cp - scale.shape[0]))
    shift = jnp.pad(shift, (0, cp - shift.shape[0]))
    return (scale.reshape(1, cp).astype(jnp.float32),
            shift.reshape(1, cp).astype(jnp.float32))


def _pack_weights(w, cp, compute_dtype):
    # (Cout, Cin, 3, 3) -> (3, 3, Cin, Cout) -> zero-pad channels -> (9*Cp, Cp)
    cout, cin = w.shape[0], w.shape[1]
    w_t = jnp.transpose(w, (2, 3, 1, 0))
    w_t = jnp.pad(w_t, ((0, 0), (0, 0), (0, cp - cin), (0, cp - cout)))
    return w_t.reshape(9 * cp, cp).astype(compute_dtype)


@functools.partial(jax.jit, static_argnames=("compute_dtype",))
def double_conv_forward(x_nchw, params, compute_dtype=jnp.bfloat16):
    """DoubleConv forward. NCHW f32 in / NCHW f32 out (PyTorch convention)."""
    N, Cin, H, W = x_nchw.shape
    Cout = params["w1"].shape[0]
    Cp = max(_round_up(Cin, _LANES), _round_up(Cout, _LANES))

    # NCHW -> NHWC, channels zero-padded to the lane width, compute dtype.
    x = jnp.transpose(x_nchw, (0, 2, 3, 1))
    x = jnp.pad(x, ((0, 0), (0, 0), (0, 0), (0, Cp - Cin))).astype(compute_dtype)

    w1 = _pack_weights(params["w1"], Cp, compute_dtype)
    w2 = _pack_weights(params["w2"], Cp, compute_dtype)
    s1, b1 = _fold_bn(params["b1"], params["bn1_gamma"], params["bn1_beta"],
                      params["bn1_mean"], params["bn1_var"], Cp)
    s2, b2 = _fold_bn(params["b2"], params["bn2_gamma"], params["bn2_beta"],
                      params["bn2_mean"], params["bn2_var"], Cp)

    out = pl.pallas_call(
        _double_conv_kernel,
        out_shape=jax.ShapeDtypeStruct((N, H, W, Cp), jnp.float32),
        grid_spec=pltpu.PrefetchScalarGridSpec(
            num_scalar_prefetch=0,
            grid=(N,),
            in_specs=[
                pl.BlockSpec((1, H, W, Cp), lambda n: (n, 0, 0, 0)),
                pl.BlockSpec((9 * Cp, Cp), lambda n: (0, 0)),
                pl.BlockSpec((1, Cp), lambda n: (0, 0)),
                pl.BlockSpec((1, Cp), lambda n: (0, 0)),
                pl.BlockSpec((9 * Cp, Cp), lambda n: (0, 0)),
                pl.BlockSpec((1, Cp), lambda n: (0, 0)),
                pl.BlockSpec((1, Cp), lambda n: (0, 0)),
            ],
            out_specs=pl.BlockSpec((1, H, W, Cp), lambda n: (n, 0, 0, 0)),
            scratch_shapes=[pltpu.VMEM((H + 2, W + 2, Cp), compute_dtype)],
        ),
        compiler_params=pltpu.CompilerParams(
            dimension_semantics=("parallel",),
            vmem_limit_bytes=32 * 1024 * 1024,
        ),
    )(x, w1, s1, b1, w2, s2, b2)

    # Drop the channel padding and return NCHW (XLA fuses slice + transpose).
    return jnp.transpose(out[..., :Cout], (0, 3, 1, 2))


# ----------------------- deterministic parameters ------------------------------
def make_double_conv_params(key, in_channels, out_channels):
    """Deterministic synthetic parameters matching nn.Conv2d / nn.BatchNorm2d."""
    ks = jax.random.split(key, 8)
    p = {}
    p["w1"] = 0.1 * jax.random.normal(ks[0], (out_channels, in_channels, 3, 3), jnp.float32)
    p["b1"] = 0.05 * jax.random.normal(ks[1], (out_channels,), jnp.float32)
    p["bn1_gamma"] = 1.0 + 0.1 * jax.random.normal(ks[2], (out_channels,), jnp.float32)
    p["bn1_beta"] = 0.1 * jax.random.normal(ks[3], (out_channels,), jnp.float32)
    p["bn1_mean"] = 0.05 * jax.random.normal(ks[4], (out_channels,), jnp.float32)
    p["bn1_var"] = 1.0 + 0.1 * jax.nn.softplus(jax.random.normal(ks[5], (out_channels,), jnp.float32))

    p["w2"] = 0.1 * jax.random.normal(ks[6], (out_channels, out_channels, 3, 3), jnp.float32)
    p["b2"] = 0.05 * jax.random.normal(ks[7], (out_channels,), jnp.float32)
    k2 = jax.random.split(ks[7], 4)
    p["bn2_gamma"] = 1.0 + 0.1 * jax.random.normal(k2[0], (out_channels,), jnp.float32)
    p["bn2_beta"] = 0.1 * jax.random.normal(k2[1], (out_channels,), jnp.float32)
    p["bn2_mean"] = 0.05 * jax.random.normal(k2[2], (out_channels,), jnp.float32)
    p["bn2_var"] = 1.0 + 0.1 * jax.nn.softplus(jax.random.normal(k2[3], (out_channels,), jnp.float32))
    return p


# ----------------------- pure-JAX reference ------------------------------------
def _ref_block(x_nchw, w, b, gamma, beta, mean, var, eps=1e-5):
    y = jax.lax.conv_general_dilated(
        x_nchw, w, window_strides=(1, 1), padding="SAME",
        dimension_numbers=("NCHW", "OIHW", "NCHW"))
    y = y + b[None, :, None, None]
    y = (y - mean[None, :, None, None]) / jnp.sqrt(var[None, :, None, None] + eps)
    y = y * gamma[None, :, None, None] + beta[None, :, None, None]
    return jnp.maximum(y, 0.0)


def double_conv_ref(x_nchw, p):
    y = _ref_block(x_nchw, p["w1"], p["b1"], p["bn1_gamma"], p["bn1_beta"],
                   p["bn1_mean"], p["bn1_var"])
    y = _ref_block(y, p["w2"], p["b2"], p["bn2_gamma"], p["bn2_beta"],
                   p["bn2_mean"], p["bn2_var"])
    return y


if __name__ == "__main__":
    key = jax.random.PRNGKey(0)
    k_x, k_p = jax.random.split(key)

    N, Cin, H, W = 2, 4, 16, 16
    Cout = 8

    x = jax.random.normal(k_x, (N, Cin, H, W), jnp.float32)
    params = make_double_conv_params(k_p, Cin, Cout)

    ref = jax.block_until_ready(double_conv_ref(x, params))

    # Exact-algorithm check (f32 compute path).
    out_f32 = jax.block_until_ready(
        double_conv_forward(x, params, compute_dtype=jnp.float32))
    assert out_f32.shape == (N, Cout, H, W), out_f32.shape
    assert jnp.allclose(out_f32, ref, atol=1e-4, rtol=1e-4), \
        float(jnp.max(jnp.abs(out_f32 - ref)))

    # Default perf path: bf16 activations/weights, f32 MXU accumulation.
    out_bf16 = jax.block_until_ready(double_conv_forward(x, params))
    assert out_bf16.shape == (N, Cout, H, W), out_bf16.shape
    assert jnp.allclose(out_bf16, ref, atol=5e-2, rtol=5e-2), \
        float(jnp.max(jnp.abs(out_bf16 - ref)))

    print("KERNEL_OK")
</pallas_src>

<mosaic_0001>
module attributes {stable_mosaic.version = 11 : i64} {
  func.func @_double_conv_kernel(%arg0: i32, %arg1: memref<1x16x16x128xf32, #tpu.memory_space<vmem>>, %arg2: memref<1152x128xf32, #tpu.memory_space<vmem>>, %arg3: memref<1x128xf32, #tpu.memory_space<vmem>>, %arg4: memref<1x128xf32, #tpu.memory_space<vmem>>, %arg5: memref<1152x128xf32, #tpu.memory_space<vmem>>, %arg6: memref<1x128xf32, #tpu.memory_space<vmem>>, %arg7: memref<1x128xf32, #tpu.memory_space<vmem>>, %arg8: memref<1x16x16x128xf32, #tpu.memory_space<vmem>>, %arg9: memref<18x18x128xf32, #tpu.memory_space<vmem>>) attributes {dimension_semantics = [#tpu.dimension_semantics<parallel>], iteration_bounds = array<i64: 2>, scalar_prefetch = 0 : i64, scratch_operands = 1 : i64, tpu.core_type = #tpu.core_type<tc>, window_params = [{transform_indices = @transform_0, window_bounds = array<i64: 1, 16, 16, 128>}, {pipeline_mode = #tpu.pipeline_mode<synchronous>, transform_indices = @transform_1, window_bounds = array<i64: 1152, 128>}, {pipeline_mode = #tpu.pipeline_mode<synchronous>, transform_indices = @transform_2, window_bounds = array<i64: 1, 128>}, {pipeline_mode = #tpu.pipeline_mode<synchronous>, transform_indices = @transform_3, window_bounds = array<i64: 1, 128>}, {pipeline_mode = #tpu.pipeline_mode<synchronous>, transform_indices = @transform_4, window_bounds = array<i64: 1152, 128>}, {pipeline_mode = #tpu.pipeline_mode<synchronous>, transform_indices = @transform_5, window_bounds = array<i64: 1, 128>}, {pipeline_mode = #tpu.pipeline_mode<synchronous>, transform_indices = @transform_6, window_bounds = array<i64: 1, 128>}, {transform_indices = @transform_7, window_bounds = array<i64: 1, 16, 16, 128>}]} {
    %c0_i32 = arith.constant 0 : i32
    %0 = arith.cmpi eq, %arg0, %c0_i32 : i32
    %1 = arith.extui %0 : i1 to i32
    %c0_i32_0 = arith.constant 0 : i32
    %2 = arith.cmpi ne, %1, %c0_i32_0 : i32
    scf.if %2 {
      %cst_81 = arith.constant 0.000000e+00 : f32
      %76 = vector.broadcast %cst_81 : f32 to vector<18x18x128xf32>
      %c0_82 = arith.constant 0 : index
      %c0_83 = arith.constant 0 : index
      %c0_84 = arith.constant 0 : index
      %77 = vector.load %arg9[%c0_82, %c0_83, %c0_84] : memref<18x18x128xf32, #tpu.memory_space<vmem>>, vector<18x18x128xf32>
      tpu.vector_store %arg9[%c0_82, %c0_83, %c0_84], %76 {strides = array<i32>} : memref<18x18x128xf32, #tpu.memory_space<vmem>>, vector<18x18x128xf32>,
    } else {
    }
    %c0 = arith.constant 0 : index
    %c0_1 = arith.constant 0 : index
    %c0_2 = arith.constant 0 : index
    %c0_3 = arith.constant 0 : index
    %3 = vector.load %arg1[%c0, %c0_1, %c0_2, %c0_3] : memref<1x16x16x128xf32, #tpu.memory_space<vmem>>, vector<1x16x16x128xf32>
    %4 = vector.shape_cast %3 : vector<1x16x16x128xf32> to vector<16x16x128xf32>
    %c1 = arith.constant 1 : index
    %c1_4 = arith.constant 1 : index
    %c0_5 = arith.constant 0 : index
    %5 = vector.load %arg9[%c1, %c1_4, %c0_5] : memref<18x18x128xf32, #tpu.memory_space<vmem>>, vector<16x16x128xf32>
    tpu.vector_store %arg9[%c1, %c1_4, %c0_5], %4 {strides = array<i32>} : memref<18x18x128xf32, #tpu.memory_space<vmem>>, vector<16x16x128xf32>,
    %c0_6 = arith.constant 0 : index
    %c0_7 = arith.constant 0 : index
    %c0_8 = arith.constant 0 : index
    %6 = vector.load %arg9[%c0_6, %c0_7, %c0_8] : memref<18x18x128xf32, #tpu.memory_space<vmem>>, vector<16x16x128xf32>
    %7 = vector.shape_cast %6 : vector<16x16x128xf32> to vector<256x128xf32>
    %c0_9 = arith.constant 0 : index
    %c1_10 = arith.constant 1 : index
    %c0_11 = arith.constant 0 : index
    %8 = vector.load %arg9[%c0_9, %c1_10, %c0_11] : memref<18x18x128xf32, #tpu.memory_space<vmem>>, vector<16x16x128xf32>
    %9 = vector.shape_cast %8 : vector<16x16x128xf32> to vector<256x128xf32>
    %c0_12 = arith.constant 0 : index
    %c2 = arith.constant 2 : index
    %c0_13 = arith.constant 0 : index
    %10 = vector.load %arg9[%c0_12, %c2, %c0_13] : memref<18x18x128xf32, #tpu.memory_space<vmem>>, vector<16x16x128xf32>
    %11 = vector.shape_cast %10 : vector<16x16x128xf32> to vector<256x128xf32>
    %c1_14 = arith.constant 1 : index
    %c0_15 = arith.constant 0 : index
    %c0_16 = arith.constant 0 : index
    %12 = vector.load %arg9[%c1_14, %c0_15, %c0_16] : memref<18x18x128xf32, #tpu.memory_space<vmem>>, vector<16x16x128xf32>
    %13 = vector.shape_cast %12 : vector<16x16x128xf32> to vector<256x128xf32>
    %c1_17 = arith.constant 1 : index
    %c1_18 = arith.constant 1 : index
    %c0_19 = arith.constant 0 : index
    %14 = vector.load %arg9[%c1_17, %c1_18, %c0_19] : memref<18x18x128xf32, #tpu.memory_space<vmem>>, vector<16x16x128xf32>
    %15 = vector.shape_cast %14 : vector<16x16x128xf32> to vector<256x128xf32>
    %c1_20 = arith.constant 1 : index
    %c2_21 = arith.constant 2 : index
    %c0_22 = arith.constant 0 : index
    %16 = vector.load %arg9[%c1_20, %c2_21, %c0_22] : memref<18x18x128xf32, #tpu.memory_space<vmem>>, vector<16x16x128xf32>
    %17 = vector.shape_cast %16 : vector<16x16x128xf32> to vector<256x128xf32>
    %c2_23 = arith.constant 2 : index
    %c0_24 = arith.constant 0 : index
    %c0_25 = arith.constant 0 : index
    %18 = vector.load %arg9[%c2_23, %c0_24, %c0_25] : memref<18x18x128xf32, #tpu.memory_space<vmem>>, vector<16x16x128xf32>
    %19 = vector.shape_cast %18 : vector<16x16x128xf32> to vector<256x128xf32>
    %c2_26 = arith.constant 2 : index
    %c1_27 = arith.constant 1 : index
    %c0_28 = arith.constant 0 : index
    %20 = vector.load %arg9[%c2_26, %c1_27, %c0_28] : memref<18x18x128xf32, #tpu.memory_space<vmem>>, vector<16x16x128xf32>
    %21 = vector.shape_cast %20 : vector<16x16x128xf32> to vector<256x128xf32>
    %c2_29 = arith.constant 2 : index
    %c2_30 = arith.constant 2 : index
    %c0_31 = arith.constant 0 : index
    %22 = vector.load %arg9[%c2_29, %c2_30, %c0_31] : memref<18x18x128xf32, #tpu.memory_space<vmem>>, vector<16x16x128xf32>
    %23 = vector.shape_cast %22 : vector<16x16x128xf32> to vector<256x128xf32>
    %24 = tpu.concatenate %7, %9, %11, %13, %15, %17, %19, %21, %23 in 1 : vector<256x128xf32>, vector<256x128xf32>, vector<256x128xf32>, vector<256x128xf32>, vector<256x128xf32>, vector<256x128xf32>, vector<256x128xf32>, vector<256x128xf32>, vector<256x128xf32> -> vector<256x1152xf32>
    %c0_32 = arith.constant 0 : index
    %c0_33 = arith.constant 0 : index
    %25 = vector.load %arg2[%c0_32, %c0_33] : memref<1152x128xf32, #tpu.memory_space<vmem>>, vector<1152x128xf32>
    %cst = arith.constant dense<0.000000e+00> : vector<256x128xf32>
    %26 = tpu.matmul %24, %25, %cst {dimension_numbers = #tpu.dot_dimension_numbers<[1], [0], [0], [1], [0, 0, 1, 1], [], []>} : vector<256x1152xf32>, vector<1152x128xf32>, vector<256x128xf32> -> vector<256x128xf32>
    %c0_34 = arith.constant 0 : index
    %c0_35 = arith.constant 0 : index
    %27 = vector.load %arg3[%c0_34, %c0_35] : memref<1x128xf32, #tpu.memory_space<vmem>>, vector<1x128xf32>
    %28 = vector.shape_cast %27 : vector<1x128xf32> to vector<128xf32>
    %29 = vector.shape_cast %28 : vector<128xf32> to vector<1x128xf32>
    %30 = vector.broadcast %29 : vector<1x128xf32> to vector<256x128xf32>
    %31 = arith.mulf %26, %30 : vector<256x128xf32>
    %c0_36 = arith.constant 0 : index
    %c0_37 = arith.constant 0 : index
    %32 = vector.load %arg4[%c0_36, %c0_37] : memref<1x128xf32, #tpu.memory_space<vmem>>, vector<1x128xf32>
    %33 = vector.shape_cast %32 : vector<1x128xf32> to vector<128xf32>
    %34 = vector.shape_cast %33 : vector<128xf32> to vector<1x128xf32>
    %35 = vector.broadcast %34 : vector<1x128xf32> to vector<256x128xf32>
    %36 = arith.addf %31, %35 : vector<256x128xf32>
    %cst_38 = arith.constant 0.000000e+00 : f32
    %37 = vector.broadcast %cst_38 : f32 to vector<256x128xf32>
    %38 = arith.maximumf %36, %37 : vector<256x128xf32>
    %39 = vector.shape_cast %38 : vector<256x128xf32> to vector<16x16x128xf32>
    %c1_39 = arith.constant 1 : index
    %c1_40 = arith.constant 1 : index
    %c0_41 = arith.constant 0 : index
    %40 = vector.load %arg9[%c1_39, %c1_40, %c0_41] : memref<18x18x128xf32, #tpu.memory_space<vmem>>, vector<16x16x128xf32>
    tpu.vector_store %arg9[%c1_39, %c1_40, %c0_41], %39 {strides = array<i32>} : memref<18x18x128xf32, #tpu.memory_space<vmem>>, vector<16x16x128xf32>,
    %c0_42 = arith.constant 0 : index
    %c0_43 = arith.constant 0 : index
    %c0_44 = arith.constant 0 : index
    %41 = vector.load %arg9[%c0_42, %c0_43, %c0_44] : memref<18x18x128xf32, #tpu.memory_space<vmem>>, vector<16x16x128xf32>
    %42 = vector.shape_cast %41 : vector<16x16x128xf32> to vector<256x128xf32>
    %c0_45 = arith.constant 0 : index
    %c1_46 = arith.constant 1 : index
    %c0_47 = arith.constant 0 : index
    %43 = vector.load %arg9[%c0_45, %c1_46, %c0_47] : memref<18x18x128xf32, #tpu.memory_space<vmem>>, vector<16x16x128xf32>
    %44 = vector.shape_cast %43 : vector<16x16x128xf32> to vector<256x128xf32>
    %c0_48 = arith.constant 0 : index
    %c2_49 = arith.constant 2 : index
    %c0_50 = arith.constant 0 : index
    %45 = vector.load %arg9[%c0_48, %c2_49, %c0_50] : memref<18x18x128xf32, #tpu.memory_space<vmem>>, vector<16x16x128xf32>
    %46 = vector.shape_cast %45 : vector<16x16x128xf32> to vector<256x128xf32>
    %c1_51 = arith.constant 1 : index
    %c0_52 = arith.constant 0 : index
    %c0_53 = arith.constant 0 : index
    %47 = vector.load %arg9[%c1_51, %c0_52, %c0_53] : memref<18x18x128xf32, #tpu.memory_space<vmem>>, vector<16x16x128xf32>
    %48 = vector.shape_cast %47 : vector<16x16x128xf32> to vector<256x128xf32>
    %c1_54 = arith.constant 1 : index
    %c1_55 = arith.constant 1 : index
    %c0_56 = arith.constant 0 : index
    %49 = vector.load %arg9[%c1_54, %c1_55, %c0_56] : memref<18x18x128xf32, #tpu.memory_space<vmem>>, vector<16x16x128xf32>
    %50 = vector.shape_cast %49 : vector<16x16x128xf32> to vector<256x128xf32>
    %c1_57 = arith.constant 1 : index
    %c2_58 = arith.constant 2 : index
    %c0_59 = arith.constant 0 : index
    %51 = vector.load %arg9[%c1_57, %c2_58, %c0_59] : memref<18x18x128xf32, #tpu.memory_space<vmem>>, vector<16x16x128xf32>
    %52 = vector.shape_cast %51 : vector<16x16x128xf32> to vector<256x128xf32>
    %c2_60 = arith.constant 2 : index
    %c0_61 = arith.constant 0 : index
    %c0_62 = arith.constant 0 : index
    %53 = vector.load %arg9[%c2_60, %c0_61, %c0_62] : memref<18x18x128xf32, #tpu.memory_space<vmem>>, vector<16x16x128xf32>
    %54 = vector.shape_cast %53 : vector<16x16x128xf32> to vector<256x128xf32>
    %c2_63 = arith.constant 2 : index
    %c1_64 = arith.constant 1 : index
    %c0_65 = arith.constant 0 : index
    %55 = vector.load %arg9[%c2_63, %c1_64, %c0_65] : memref<18x18x128xf32, #tpu.memory_space<vmem>>, vector<16x16x128xf32>
    %56 = vector.shape_cast %55 : vector<16x16x128xf32> to vector<256x128xf32>
    %c2_66 = arith.constant 2 : index
    %c2_67 = arith.constant 2 : index
    %c0_68 = arith.constant 0 : index
    %57 = vector.load %arg9[%c2_66, %c2_67, %c0_68] : memref<18x18x128xf32, #tpu.memory_space<vmem>>, vector<16x16x128xf32>
    %58 = vector.shape_cast %57 : vector<16x16x128xf32> to vector<256x128xf32>
    %59 = tpu.concatenate %42, %44, %46, %48, %50, %52, %54, %56, %58 in 1 : vector<256x128xf32>, vector<256x128xf32>, vector<256x128xf32>, vector<256x128xf32>, vector<256x128xf32>, vector<256x128xf32>, vector<256x128xf32>, vector<256x128xf32>, vector<256x128xf32> -> vector<256x1152xf32>
    %c0_69 = arith.constant 0 : index
    %c0_70 = arith.constant 0 : index
    %60 = vector.load %arg5[%c0_69, %c0_70] : memref<1152x128xf32, #tpu.memory_space<vmem>>, vector<1152x128xf32>
    %cst_71 = arith.constant dense<0.000000e+00> : vector<256x128xf32>
    %61 = tpu.matmul %59, %60, %cst_71 {dimension_numbers = #tpu.dot_dimension_numbers<[1], [0], [0], [1], [0, 0, 1, 1], [], []>} : vector<256x1152xf32>, vector<1152x128xf32>, vector<256x128xf32> -> vector<256x128xf32>
    %c0_72 = arith.constant 0 : index
    %c0_73 = arith.constant 0 : index
    %62 = vector.load %arg6[%c0_72, %c0_73] : memref<1x128xf32, #tpu.memory_space<vmem>>, vector<1x128xf32>
    %63 = vector.shape_cast %62 : vector<1x128xf32> to vector<128xf32>
    %64 = vector.shape_cast %63 : vector<128xf32> to vector<1x128xf32>
    %65 = vector.broadcast %64 : vector<1x128xf32> to vector<256x128xf32>
    %66 = arith.mulf %61, %65 : vector<256x128xf32>
    %c0_74 = arith.constant 0 : index
    %c0_75 = arith.constant 0 : index
    %67 = vector.load %arg7[%c0_74, %c0_75] : memref<1x128xf32, #tpu.memory_space<vmem>>, vector<1x128xf32>
    %68 = vector.shape_cast %67 : vector<1x128xf32> to vector<128xf32>
    %69 = vector.shape_cast %68 : vector<128xf32> to vector<1x128xf32>
    %70 = vector.broadcast %69 : vector<1x128xf32> to vector<256x128xf32>
    %71 = arith.addf %66, %70 : vector<256x128xf32>
    %cst_76 = arith.constant 0.000000e+00 : f32
    %72 = vector.broadcast %cst_76 : f32 to vector<256x128xf32>
    %73 = arith.maximumf %71, %72 : vector<256x128xf32>
    %74 = vector.shape_cast %73 : vector<256x128xf32> to vector<1x16x16x128xf32>
    %c0_77 = arith.constant 0 : index
    %c0_78 = arith.constant 0 : index
    %c0_79 = arith.constant 0 : index
    %c0_80 = arith.constant 0 : index
    %75 = vector.load %arg8[%c0_77, %c0_78, %c0_79, %c0_80] : memref<1x16x16x128xf32, #tpu.memory_space<vmem>>, vector<1x16x16x128xf32>
    tpu.vector_store %arg8[%c0_77, %c0_78, %c0_79, %c0_80], %74 {strides = array<i32>} : memref<1x16x16x128xf32, #tpu.memory_space<vmem>>, vector<1x16x16x128xf32>,
    return
  }
  func.func @transform_0(%arg0: i32) -> (i32, i32, i32, i32) {
    %c0_i32 = arith.constant 0 : i32
    %c0_i32_0 = arith.constant 0 : i32
    %c0_i32_1 = arith.constant 0 : i32
    %c0_i32_2 = arith.constant 0 : i32
    return %arg0, %c0_i32, %c0_i32_0, %c0_i32_1 : i32, i32, i32, i32
  }
  func.func @transform_1(%arg0: i32) -> (i32, i32) {
    %c0_i32 = arith.constant 0 : i32
    %c0_i32_0 = arith.constant 0 : i32
    %c0_i32_1 = arith.constant 0 : i32
    return %c0_i32, %c0_i32_0 : i32, i32
  }
  func.func @transform_2(%arg0: i32) -> (i32, i32) {
    %c0_i32 = arith.constant 0 : i32
    %c0_i32_0 = arith.constant 0 : i32
    %c0_i32_1 = arith.constant 0 : i32
    return %c0_i32, %c0_i32_0 : i32, i32
  }
  func.func @transform_3(%arg0: i32) -> (i32, i32) {
    %c0_i32 = arith.constant 0 : i32
    %c0_i32_0 = arith.constant 0 : i32
    %c0_i32_1 = arith.constant 0 : i32
    return %c0_i32, %c0_i32_0 : i32, i32
  }
  func.func @transform_4(%arg0: i32) -> (i32, i32) {
    %c0_i32 = arith.constant 0 : i32
    %c0_i32_0 = arith.constant 0 : i32
    %c0_i32_1 = arith.constant 0 : i32
    return %c0_i32, %c0_i32_0 : i32, i32
  }
  func.func @transform_5(%arg0: i32) -> (i32, i32) {
    %c0_i32 = arith.constant 0 : i32
    %c0_i32_0 = arith.constant 0 : i32
    %c0_i32_1 = arith.constant 0 : i32
    return %c0_i32, %c0_i32_0 : i32, i32
  }
  func.func @transform_6(%arg0: i32) -> (i32, i32) {
    %c0_i32 = arith.constant 0 : i32
    %c0_i32_0 = arith.constant 0 : i32
    %c0_i32_1 = arith.constant 0 : i32
    return %c0_i32, %c0_i32_0 : i32, i32
  }
  func.func @transform_7(%arg0: i32) -> (i32, i32, i32, i32) {
    %c0_i32 = arith.constant 0 : i32
    %c0_i32_0 = arith.constant 0 : i32
    %c0_i32_1 = arith.constant 0 : i32
    %c0_i32_2 = arith.constant 0 : i32
    return %arg0, %c0_i32, %c0_i32_0, %c0_i32_1 : i32, i32, i32, i32
  }
}

</mosaic_0001>

<bundles_post_ra>
// kernel: double_conv_forward.1
= control target key start
LH: loop header
LB: loop body
LE: loop exit
PB: predicated region body
PF: predicated region fallthrough
CT: control target
= control target key end

     0   :  { %s5070_s24 = smov 0   ;;  %s7317_s0 = inlined_call_operand.vmem [shape: f32[2,16,16,128], index: 0, kind: input, shape index: {}]   ;;  %s7318_s1 = inlined_call_operand.vmem [shape: f32[1152,128], index: 1, kind: input, shape index: {}]   ;;  %s7319_s2 = inlined_call_operand.vmem [shape: f32[1,128], index: 2, kind: input, shape index: {}]   ;;  %s7320_s3 = inlined_call_operand.vmem [shape: f32[1,128], index: 3, kind: input, shape index: {}]   ;;  %s7321_s4 = inlined_call_operand.vmem [shape: f32[1152,128], index: 4, kind: input, shape index: {}]   ;;  %s7322_s5 = inlined_call_operand.vmem [shape: f32[1,128], index: 5, kind: input, shape index: {}]   ;;  %s7323_s6 = inlined_call_operand.vmem [shape: f32[1,128], index: 6, kind: input, shape index: {}]   ;;  %s7324_s7 = inlined_call_operand.vmem [shape: f32[2,16,16,128], index: 7, kind: output, shape index: {}]  }
   0x1 LB: > { %s3856_s25 = sadd.s32 4294967295, %s5026_s24   ;;  %p3860_p0 = scmp.ge.s32.totalorder %s5026_s24, 1  ;;  %s5026_s24 = sphi %s5070_s24, %s17_s24  }
   0x2   : > { %p237_p1 = scmp.lt.s32.totalorder %s5026_s24, 3 }
   0x4   : > { %p238_p2 = pnand %p3860_p0, %p237_p1 }
   0x6   : > { %241 = sbr.rel (%p238_p2) target bundleno = 1460 (0x5b4), region = 48 }
   0xd   : > { %p269_p3 = scmp.lt.s32.totalorder %s3856_s25, 1  ;;  %p3865_p4 = scmp.ne.s32.totalorder %s3856_s25, 0 }
   0xe   : > { %v5028_v0 = vmov (!%p3865_p4), 0.0  }
   0xf   : > { %s270_s26 = scalar_select %p269_p3, %s3856_s25, 1 }
  0x10   : > { %282 = sbr.rel (%p3865_p4) target bundleno = 43 (0x2b), region = 52  ;;  %283 = vst [vmem:[#allocation2] sm:$0xff] (!%p3865_p4), %v5028_v0  ;;  %284 = vst [vmem:[#allocation2 + $0x8] sm:$0xff] (!%p3865_p4), %v5028_v0 }
  0x11   : > { %s3872_s27 = sshll.u32 %s270_s26, 8  ;;  %285 = vst [vmem:[#allocation2 + $0x10] sm:$0x3] (!%p3865_p4), %v5028_v0  ;;  %286 = vst [vmem:[#allocation2 + $0x18] sm:$0xff] (!%p3865_p4), %v5028_v0 }
  0x12   : > { %s5081_s30 = scalar_lea.vmem %s7317_s0, %s3872_s27  ;;  %s5086_s10 = scalar_lea.vmem %s7324_s7, %s3872_s27  ;;  %287 = vst [vmem:[#allocation2 + $0x20] sm:$0xff] (!%p3865_p4), %v5028_v0  ;;  %288 = vst [vmem:[#allocation2 + $0x28] sm:$0x3] (!%p3865_p4), %v5028_v0 }
  0x13   : > { %289 = vst [vmem:[#allocation2 + $0x30] sm:$0xff] (!%p3865_p4), %v5028_v0  ;;  %290 = vst [vmem:[#allocation2 + $0x38] sm:$0xff] (!%p3865_p4), %v5028_v0 }
  0x14   : > { %291 = vst [vmem:[#allocation2 + $0x40] sm:$0x3] (!%p3865_p4), %v5028_v0  ;;  %292 = vst [vmem:[#allocation2 + $0x48] sm:$0xff] (!%p3865_p4), %v5028_v0 }
  0x15   : > { %293 = vst [vmem:[#allocation2 + $0x50] sm:$0xff] (!%p3865_p4), %v5028_v0  ;;  %294 = vst [vmem:[#allocation2 + $0x58] sm:$0x3] (!%p3865_p4), %v5028_v0 }
  0x16   : > { %295 = vst [vmem:[#allocation2 + $0x60] sm:$0xff] (!%p3865_p4), %v5028_v0  ;;  %296 = vst [vmem:[#allocation2 + $0x68] sm:$0xff] (!%p3865_p4), %v5028_v0 }
  0x17   : > { %297 = vst [vmem:[#allocation2 + $0x70] sm:$0x3] %v5028_v0  ;;  %298 = vst [vmem:[#allocation2 + $0x78] sm:$0xff] %v5028_v0 }
  0x18   : > { %299 = vst [vmem:[#allocation2 + $0x80] sm:$0xff] %v5028_v0  ;;  %300 = vst [vmem:[#allocation2 + $0x88] sm:$0x3] %v5028_v0 }
  0x19   : > { %301 = vst [vmem:[#allocation2 + $0x90] sm:$0xff] %v5028_v0  ;;  %302 = vst [vmem:[#allocation2 + $0x98] sm:$0xff] %v5028_v0 }
  0x1a   : > { %303 = vst [vmem:[#allocation2 + $0xa0] sm:$0x3] %v5028_v0  ;;  %304 = vst [vmem:[#allocation2 + $0xa8] sm:$0xff] %v5028_v0 }
  0x1b   : > { %305 = vst [vmem:[#allocation2 + $0xb0] sm:$0xff] %v5028_v0  ;;  %306 = vst [vmem:[#allocation2 + $0xb8] sm:$0x3] %v5028_v0 }
  0x1c   : > { %307 = vst [vmem:[#allocation2 + $0xc0] sm:$0xff] %v5028_v0  ;;  %308 = vst [vmem:[#allocation2 + $0xc8] sm:$0xff] %v5028_v0 }
  0x1d   : > { %309 = vst [vmem:[#allocation2 + $0xd0] sm:$0x3] %v5028_v0  ;;  %310 = vst [vmem:[#allocation2 + $0xd8] sm:$0xff] %v5028_v0 }
  0x1e   : > { %311 = vst [vmem:[#allocation2 + $0xe0] sm:$0xff] %v5028_v0  ;;  %312 = vst [vmem:[#allocation2 + $0xe8] sm:$0x3] %v5028_v0 }
  0x1f   : > { %313 = vst [vmem:[#allocation2 + $0xf0] sm:$0xff] %v5028_v0  ;;  %314 = vst [vmem:[#allocation2 + $0xf8] sm:$0xff] %v5028_v0 }
  0x20   : > { %315 = vst [vmem:[#allocation2 + $0x100] sm:$0x3] %v5028_v0  ;;  %316 = vst [vmem:[#allocation2 + $0x108] sm:$0xff] %v5028_v0 }
  0x21   : > { %317 = vst [vmem:[#allocation2 + $0x110] sm:$0xff] %v5028_v0  ;;  %318 = vst [vmem:[#allocation2 + $0x118] sm:$0x3] %v5028_v0 }
  0x22   : > { %319 = vst [vmem:[#allocation2 + $0x120] sm:$0xff] %v5028_v0  ;;  %320 = vst [vmem:[#allocation2 + $0x128] sm:$0xff] %v5028_v0 }
  0x23   : > { %321 = vst [vmem:[#allocation2 + $0x130] sm:$0x3] %v5028_v0  ;;  %322 = vst [vmem:[#allocation2 + $0x138] sm:$0xff] %v5028_v0 }
  0x24   : > { %323 = vst [vmem:[#allocation2 + $0x140] sm:$0xff] %v5028_v0  ;;  %324 = vst [vmem:[#allocation2 + $0x148] sm:$0x3] %v5028_v0 }
  0x25   : > { %325 = vst [vmem:[#allocation2 + $0x150] sm:$0xff] %v5028_v0  ;;  %326 = vst [vmem:[#allocation2 + $0x158] sm:$0xff] %v5028_v0 }
  0x26   : > { %327 = vst [vmem:[#allocation2 + $0x160] sm:$0x3] %v5028_v0  ;;  %328 = vst [vmem:[#allocation2 + $0x168] sm:$0xff] %v5028_v0 }
  0x27   : > { %329 = vst [vmem:[#allocation2 + $0x170] sm:$0xff] %v5028_v0  ;;  %330 = vst [vmem:[#allocation2 + $0x178] sm:$0x3] %v5028_v0 }
  0x28   : > { %331 = vst [vmem:[#allocation2 + $0x180] sm:$0xff] %v5028_v0  ;;  %332 = vst [vmem:[#allocation2 + $0x188] sm:$0xff] %v5028_v0 }
  0x29   : > { %333 = vst [vmem:[#allocation2 + $0x190] sm:$0x3] %v5028_v0  ;;  %334 = vst [vmem:[#allocation2 + $0x198] sm:$0xff] %v5028_v0 }
  0x2a   : > { %335 = vst [vmem:[#allocation2 + $0x1a0] sm:$0xff] %v5028_v0  ;;  %336 = vst [vmem:[#allocation2 + $0x1a8] sm:$0x3] %v5028_v0 }
  0x2b PF: > { %v691_v1 = vld [vmem:[%s7318_s1] sm:$0xff]  ;;  %v692_v2 = vld [vmem:[%s7318_s1 + $0x8] sm:$0xff]  ;;  %v693_v3 = vld [vmem:[%s7318_s1 + $0x10] sm:$0xff]  ;;  %v7325_v4 = vmov 0.0|0.0  }
  0x2c   : > { %4130 = vmatprep.subr.bf16.mxu0 %v7325_v4  ;;  %v4131_v5 = vpack.c.bf16 %v692_v2, %v691_v1  ;;  %v694_v6 = vld [vmem:[%s7318_s1 + $0x18] sm:$0xff]  ;;  %v695_v8 = vld [vmem:[%s7318_s1 + $0x20] sm:$0xff]  ;;  %v696_v9 = vld [vmem:[%s7318_s1 + $0x28] sm:$0xff] }
  0x2d   : > { %v4134_v7 = vpack.c.bf16 %v694_v6, %v693_v3  ;;  %v4137_v10 = vpack.c.bf16 %v696_v9, %v695_v8  ;;  %v697_v11 = vld [vmem:[%s7318_s1 + $0x30] sm:$0xff]  ;;  %v698_v12 = vld [vmem:[%s7318_s1 + $0x38] sm:$0xff]  ;;  %v434_v13 = vld [vmem:[#allocation2 + $0x1] sm:$0xff] }
  0x2e   : > { %4132 = vmatpush1.bf16.msra.mxu0 %v4131_v5  ;;  %v4140_v14 = vpack.c.bf16 %v698_v12, %v697_v11  ;;  %899 = vmatprep.mubr.f32.mxu0 %v434_v13  ;;  %v699_v15 = vld [vmem:[%s7318_s1 + $0x40] sm:$0xff]  ;;  %v700_v16 = vld [vmem:[%s7318_s1 + $0x48] sm:$0xff]  ;;  %v5131_v19 = vld [vmem:[%s5081_s30 + $0x10] sm:$0xff] }
  0x2f   : > { %4133 = vmatprep.subr.bf16.mxu0 %v7325_v4  ;;  %v5123_v17 = vld [vmem:[%s5081_s30] sm:$0xff]  ;;  %v5127_v18 = vld [vmem:[%s5081_s30 + $0x8] sm:$0xff]  ;;  %v4143_v20 = vpack.c.bf16 %v700_v16, %v699_v15  ;;  %v701_v21 = vld [vmem:[%s7318_s1 + $0x50] sm:$0xff]  ;;  %372 = vst [vmem:[#allocation2 + $0x31] sm:$0xff] %v5131_v19 }
  0x30   : > { %370 = vst [vmem:[#allocation2 + $0x19] sm:$0xff] %v5123_v17  ;;  %371 = vst [vmem:[#allocation2 + $0x21] sm:$0xff] %v5127_v18  ;;  %v5138_v22 = vld [vmem:[%s5081_s30 + $0x18] sm:$0xff]  ;;  %v5141_v23 = vld [vmem:[%s5081_s30 + $0x20] sm:$0xff] }
  0x31   : > { %v702_v24 = vld [vmem:[%s7318_s1 + $0x58] sm:$0xff]  ;;  %373 = vst [vmem:[#allocation2 + $0x39] sm:$0xff] %v5138_v22  ;;  %374 = vst [vmem:[#allocation2 + $0x49] sm:$0xff] %v5141_v23  ;;  %v5150_v25 = vld [vmem:[%s5081_s30 + $0x28] sm:$0xff] }
  0x32   : > { %4135 = vmatpush1.bf16.msra.mxu0 %v4134_v7  ;;  %v5153_v26 = vld [vmem:[%s5081_s30 + $0x30] sm:$0xff]  ;;  %375 = vst [vmem:[#allocation2 + $0x51] sm:$0xff] %v5150_v25  ;;  %v5158_v27 = vld [vmem:[%s5081_s30 + $0x38] sm:$0xff]  ;;  %v5162_v28 = vld [vmem:[%s5081_s30 + $0x40] sm:$0xff]  ;;  %v4146_v29 = vpack.c.bf16 %v702_v24, %v701_v21 }
  0x33   : > { %4136 = vmatprep.subr.bf16.mxu0 %v7325_v4  ;;  %376 = vst [vmem:[#allocation2 + $0x61] sm:$0xff] %v5153_v26  ;;  %377 = vst [vmem:[#allocation2 + $0x69] sm:$0xff] %v5158_v27  ;;  %v5166_v30 = vld [vmem:[%s5081_s30 + $0x48] sm:$0xff]  ;;  %v5169_v31 = vld [vmem:[%s5081_s30 + $0x50] sm:$0xff] }
  0x34   : > { %378 = vst [vmem:[#allocation2 + $0x79] sm:$0xff] %v5162_v28  ;;  %v703_v32 = vld [vmem:[%s7318_s1 + $0x60] sm:$0xff]  ;;  %v704_v33 = vld [vmem:[%s7318_s1 + $0x68] sm:$0xff]  ;;  %379 = vst [vmem:[#allocation2 + $0x81] sm:$0xff] %v5166_v30 }
  0x35   : > { %380 = vst [vmem:[#allocation2 + $0x91] sm:$0xff] %v5169_v31  ;;  %v5181_v34 = vld [vmem:[%s5081_s30 + $0x58] sm:$0xff]  ;;  %v5185_v35 = vld [vmem:[%s5081_s30 + $0x60] sm:$0xff]  ;;  %v5189_v36 = vld [vmem:[%s5081_s30 + $0x68] sm:$0xff]  ;;  %v4149_v37 = vpack.c.bf16 %v704_v33, %v703_v32 }
  0x36   : > { %4138 = vmatpush1.bf16.msra.mxu0 %v4137_v10  ;;  %381 = vst [vmem:[#allocation2 + $0x99] sm:$0xff] %v5181_v34  ;;  %382 = vst [vmem:[#allocation2 + $0xa9] sm:$0xff] %v5185_v35  ;;  %v5193_v38 = vld [vmem:[%s5081_s30 + $0x70] sm:$0xff]  ;;  %v706_v40 = vld [vmem:[%s7318_s1 + $0x78] sm:$0xff] }
  0x37   : > { %4139 = vmatprep.subr.bf16.mxu0 %v7325_v4  ;;  %383 = vst [vmem:[#allocation2 + $0xb1] sm:$0xff] %v5189_v36  ;;  %v705_v39 = vld [vmem:[%s7318_s1 + $0x70] sm:$0xff]  ;;  %384 = vst [vmem:[#allocation2 + $0xc1] sm:$0xff] %v5193_v38  ;;  %v5204_v41 = vld [vmem:[%s5081_s30 + $0x78] sm:$0xff] }
  0x38   : > { %385 = vst [vmem:[#allocation2 + $0xc9] sm:$0xff] %v5204_v41  ;;  %v5208_v42 = vld [vmem:[%s5081_s30 + $0x80] sm:$0xff]  ;;  %v4152_v43 = vpack.c.bf16 %v706_v40, %v705_v39  ;;  %v708_v45 = vld [vmem:[%s7318_s1 + $0x88] sm:$0xff]  ;;  %v5222_v47 = vld [vmem:[%s5081_s30 + $0x90] sm:$0xff] }
  0x39   : > { %v707_v44 = vld [vmem:[%s7318_s1 + $0x80] sm:$0xff]  ;;  %386 = vst [vmem:[#allocation2 + $0xd9] sm:$0xff] %v5208_v42  ;;  %v5219_v46 = vld [vmem:[%s5081_s30 + $0x88] sm:$0xff]  ;;  %388 = vst [vmem:[#allocation2 + $0xf1] sm:$0xff] %v5222_v47 }
  0x3a   : > { %4141 = vmatpush1.bf16.msra.mxu0 %v4140_v14  ;;  %387 = vst [vmem:[#allocation2 + $0xe1] sm:$0xff] %v5219_v46  ;;  %v5227_v48 = vld [vmem:[%s5081_s30 + $0x98] sm:$0xff]  ;;  %v5230_v49 = vld [vmem:[%s5081_s30 + $0xa0] sm:$0xff]  ;;  %v4155_v50 = vpack.c.bf16 %v708_v45, %v707_v44  ;;  %v709_v51 = vld [vmem:[%s7318_s1 + $0x90] sm:$0xff] }
  0x3b   : > { %4142 = vmatprep.subr.bf16.mxu0 %v7325_v4  ;;  %v710_v52 = vld [vmem:[%s7318_s1 + $0x98] sm:$0xff]  ;;  %389 = vst [vmem:[#allocation2 + $0xf9] sm:$0xff] %v5227_v48  ;;  %390 = vst [vmem:[#allocation2 + $0x109] sm:$0xff] %v5230_v49  ;;  %v5242_v53 = vld [vmem:[%s5081_s30 + $0xa8] sm:$0xff] }
  0x3c   : > { %v5245_v54 = vld [vmem:[%s5081_s30 + $0xb0] sm:$0xff]  ;;  %v5248_v55 = vld [vmem:[%s5081_s30 + $0xb8] sm:$0xff]  ;;  %391 = vst [vmem:[#allocation2 + $0x111] sm:$0xff] %v5242_v53  ;;  %v5254_v56 = vld [vmem:[%s5081_s30 + $0xc0] sm:$0xff]  ;;  %v4158_v57 = vpack.c.bf16 %v710_v52, %v709_v51 }
  0x3d   : > { %392 = vst [vmem:[#allocation2 + $0x121] sm:$0xff] %v5245_v54  ;;  %393 = vst [vmem:[#allocation2 + $0x129] sm:$0xff] %v5248_v55  ;;  %v711_v58 = vld [vmem:[%s7318_s1 + $0xa0] sm:$0xff]  ;;  %v712_v59 = vld [vmem:[%s7318_s1 + $0xa8] sm:$0xff] }
  0x3e   : > { %4144 = vmatpush1.bf16.msra.mxu0 %v4143_v20  ;;  %394 = vst [vmem:[#allocation2 + $0x139] sm:$0xff] %v5254_v56  ;;  %v5265_v60 = vld [vmem:[%s5081_s30 + $0xc8] sm:$0xff]  ;;  %v4161_v61 = vpack.c.bf16 %v712_v59, %v711_v58  ;;  %v713_v62 = vld [vmem:[%s7318_s1 + $0xb0] sm:$0xff]  ;;  %v714_v63 = vld [vmem:[%s7318_s1 + $0xb8] sm:$0xff] }
  0x3f   : > { %4145 = vmatprep.subr.bf16.mxu0 %v7325_v4  ;;  %395 = vst [vmem:[#allocation2 + $0x141] sm:$0xff] %v5265_v60  ;;  %v5276_v0 = vld [vmem:[%s5081_s30 + $0xd0] sm:$0xff]  ;;  %v4164_v1 = vpack.c.bf16 %v714_v63, %v713_v62  ;;  %v715_v2 = vld [vmem:[%s7318_s1 + $0xc0] sm:$0xff]  ;;  %v716_v3 = vld [vmem:[%s7318_s1 + $0xc8] sm:$0xff] }
  0x40   : > { %396 = vst [vmem:[#allocation2 + $0x151] sm:$0xff] %v5276_v0  ;;  %v5287_v5 = vld [vmem:[%s5081_s30 + $0xd8] sm:$0xff]  ;;  %v4167_v6 = vpack.c.bf16 %v716_v3, %v715_v2  ;;  %v717_v7 = vld [vmem:[%s7318_s1 + $0xd0] sm:$0xff]  ;;  %v5298_v9 = vld [vmem:[%s5081_s30 + $0xe0] sm:$0xff] }
  0x41   : > { %397 = vst [vmem:[#allocation2 + $0x159] sm:$0xff] %v5287_v5  ;;  %v718_v8 = vld [vmem:[%s7318_s1 + $0xd8] sm:$0xff]  ;;  %398 = vst [vmem:[#allocation2 + $0x169] sm:$0xff] %v5298_v9  ;;  %v719_v11 = vld [vmem:[%s7318_s1 + $0xe0] sm:$0xff] }
  0x42   : > { %4147 = vmatpush1.bf16.msra.mxu0 %v4146_v29  ;;  %v4170_v10 = vpack.c.bf16 %v718_v8, %v717_v7  ;;  %v720_v12 = vld [vmem:[%s7318_s1 + $0xe8] sm:$0xff]  ;;  %v721_v15 = vld [vmem:[%s7318_s1 + $0xf0] sm:$0xff]  ;;  %v722_v16 = vld [vmem:[%s7318_s1 + $0xf8] sm:$0xff] }
  0x43   : > { %4148 = vmatprep.subr.bf16.mxu0 %v7325_v4  ;;  %v5309_v13 = vld [vmem:[%s5081_s30 + $0xe8] sm:$0xff]  ;;  %v4173_v14 = vpack.c.bf16 %v720_v12, %v719_v11  ;;  %v4176_v20 = vpack.c.bf16 %v722_v16, %v721_v15  ;;  %v723_v21 = vld [vmem:[%s7318_s1 + $0x100] sm:$0xff]  ;;  %v726_v39 = vld [vmem:[%s7318_s1 + $0x118] sm:$0xff] }
  0x44   : > { %399 = vst [vmem:[#allocation2 + $0x171] sm:$0xff] %v5309_v13  ;;  %v724_v24 = vld [vmem:[%s7318_s1 + $0x108] sm:$0xff]  ;;  %v402_v29 = vld [vmem:[#allocation2] sm:$0xff]  ;;  %v729_v52 = vld [vmem:[%s7318_s1 + $0x130] sm:$0xff] }
  0x45   : > { %v4179_v32 = vpack.c.bf16 %v724_v24, %v723_v21  ;;  %v435_v33 = vld [vmem:[#allocation2 + $0x9] sm:$0xff]  ;;  %v727_v44 = vld [vmem:[%s7318_s1 + $0x120] sm:$0xff]  ;;  %v5365_v63 = vld [vmem:[#allocation2 + $0x32] sm:$0xff] }
  0x46   : > { %4150 = vmatpush1.bf16.msra.mxu0 %v4149_v37  ;;  %v725_v37 = vld [vmem:[%s7318_s1 + $0x110] sm:$0xff]  ;;  %v403_v40 = vld [vmem:[#allocation2 + $0x8] sm:$0xff]  ;;  %v5352_v58 = vld [vmem:[#allocation2 + $0x20] sm:$0xff]  ;;  %4002 = vmatprep.mubr.f32.mxu1 %v5365_v63 }
  0x47   : > { %4151 = vmatprep.subr.bf16.mxu0 %v7325_v4  ;;  %v728_v45 = vld [vmem:[%s7318_s1 + $0x128] sm:$0xff]  ;;  %v731_v59 = vld [vmem:[%s7318_s1 + $0x140] sm:$0xff]  ;;  %v5363_v62 = vld [vmem:[#allocation2 + $0x30] sm:$0xff] }
  0x48   : > { %v4185_v51 = vpack.c.bf16 %v728_v45, %v727_v44  ;;  %v734_v2 = vld [vmem:[%s7318_s1 + $0x158] sm:$0xff]  ;;  %v736_v7 = vld [vmem:[%s7318_s1 + $0x168] sm:$0xff]  ;;  %v5399_v12 = vld [vmem:[#allocation2 + $0x50] sm:$0xff] }
  0x49   : > { %v5388_v8 = vld [vmem:[#allocation2 + $0x48] sm:$0xff]  ;;  %v738_v11 = vld [vmem:[%s7318_s1 + $0x178] sm:$0xff]  ;;  %v5410_v16 = vld [vmem:[#allocation2 + $0x60] sm:$0xff] }
  0x4a   : > { %4153 = vmatpush1.bf16.msra.mxu0 %v4152_v43  ;;  %v4182_v43 = vpack.c.bf16 %v726_v39, %v725_v37  ;;  %v740_v15 = vld [vmem:[%s7318_s1 + $0x188] sm:$0xff]  ;;  %v742_v21 = vld [vmem:[%s7318_s1 + $0x198] sm:$0xff]  ;;  %v745_v37 = vld [vmem:[%s7318_s1 + $0x1b0] sm:$0xff] }
  0x4b   : > { %4154 = vmatprep.subr.bf16.mxu0 %v7325_v4  ;;  %v5421_v24 = vld [vmem:[#allocation2 + $0x68] sm:$0xff]  ;;  %v746_v39 = vld [vmem:[%s7318_s1 + $0x1b8] sm:$0xff]  ;;  %v5454_v45 = vld [vmem:[#allocation2 + $0x90] sm:$0xff] }
  0x4c   : > { %v748_v44 = vld [vmem:[%s7318_s1 + $0x1c8] sm:$0xff] }
  0x4e   : > { %4156 = vmatpush1.bf16.msra.mxu0 %v4155_v50  ;;  %v5341_v50 = vld [vmem:[#allocation2 + $0x18] sm:$0xff] }
  0x4f   : > { %4157 = vmatprep.subr.bf16.mxu0 %v7325_v4 }
  0x52   : > { %4159 = vmatpush1.bf16.msra.mxu0 %v4158_v57  ;;  %v730_v57 = vld [vmem:[%s7318_s1 + $0x138] sm:$0xff] }
  0x53   : > { %4160 = vmatprep.subr.bf16.mxu0 %v7325_v4 }
  0x56   : > { %4162 = vmatpush1.bf16.msra.mxu0 %v4161_v61  ;;  %v732_v61 = vld [vmem:[%s7318_s1 + $0x148] sm:$0xff] }
  0x57   : > { %4163 = vmatprep.subr.bf16.mxu0 %v7325_v4 }
  0x5a   : > { %4165 = vmatpush1.bf16.msra.mxu0 %v4164_v1  ;;  %v733_v1 = vld [vmem:[%s7318_s1 + $0x150] sm:$0xff] }
  0x5b   : > { %4166 = vmatprep.subr.bf16.mxu0 %v7325_v4  ;;  %v4194_v3 = vpack.c.bf16 %v734_v2, %v733_v1  ;;  %v754_v1 = vld [vmem:[%s7318_s1 + $0x1f8] sm:$0xff]  ;;  %v5487_v2 = vld [vmem:[#allocation2 + $0xb0] sm:$0xff] }
  0x5e   : > { %4168 = vmatpush1.bf16.msra.mxu0 %v4167_v6  ;;  %v735_v6 = vld [vmem:[%s7318_s1 + $0x160] sm:$0xff] }
  0x5f   : > { %4169 = vmatprep.subr.bf16.mxu0 %v7325_v4 }
  0x62   : > { %4171 = vmatpush1.bf16.msra.mxu0 %v4170_v10  ;;  %v737_v10 = vld [vmem:[%s7318_s1 + $0x170] sm:$0xff] }
  0x63   : > { %4172 = vmatprep.subr.bf16.mxu0 %v7325_v4 }
  0x66   : > { %4174 = vmatpush1.bf16.msra.mxu0 %v4173_v14  ;;  %v739_v14 = vld [vmem:[%s7318_s1 + $0x180] sm:$0xff] }
  0x67   : > { %4175 = vmatprep.subr.bf16.mxu0 %v7325_v4 }
  0x6a   : > { %4177 = vmatpush1.bf16.msra.mxu0 %v4176_v20  ;;  %v741_v20 = vld [vmem:[%s7318_s1 + $0x190] sm:$0xff] }
  0x6b   : > { %4178 = vmatprep.subr.bf16.mxu0 %v7325_v4 }
  0x6d   : > { %900 = vmatmul.mubr.f32.vlgmr.msra.gmra.mrb[0].mxu0 %v402_v29  ;;  %v743_v29 = vld [vmem:[%s7318_s1 + $0x1a0] sm:$0xff] }
  0x6e   : > { %4180 = vmatpush1.bf16.msra.mxu0 %v4179_v32  ;;  %904 = vmatprep.mubr.f32.mxu0 %v435_v33  ;;  %v744_v32 = vld [vmem:[%s7318_s1 + $0x1a8] sm:$0xff]  ;;  %v5432_v33 = vld [vmem:[#allocation2 + $0x78] sm:$0xff] }
  0x6f   : > { %4181 = vmatprep.subr.bf16.mxu0 %v7325_v4 }
  0x71   : > { %905 = vmatmul.mubr.f32.gmra.mrb[2].mxu0 %v403_v40  ;;  %v5443_v40 = vld [vmem:[#allocation2 + $0x80] sm:$0xff] }
  0x72   : > { %909 = vmatprep.mubr.f32.mxu0 %v5123_v17  ;;  %4183 = vmatpush1.bf16.msra.mxu0 %v4182_v43  ;;  %v4188_v17 = vpack.c.bf16 %v730_v57, %v729_v52  ;;  %v747_v43 = vld [vmem:[%s7318_s1 + $0x1c0] sm:$0xff]  ;;  %v750_v52 = vld [vmem:[%s7318_s1 + $0x1d8] sm:$0xff] }
  0x73   : > { %4184 = vmatprep.subr.bf16.mxu0 %v7325_v4  ;;  %v5465_v57 = vld [vmem:[#allocation2 + $0x98] sm:$0xff] }
  0x75   : > { %910 = vmatmul.mubr.f32.gmra.mrb[4].mxu0 %v5341_v50 }
  0x76   : > { %914 = vmatprep.mubr.f32.mxu0 %v5127_v18  ;;  %4186 = vmatpush1.bf16.msra.mxu0 %v4185_v51  ;;  %v4191_v18 = vpack.c.bf16 %v732_v61, %v731_v59  ;;  %v749_v51 = vld [vmem:[%s7318_s1 + $0x1d0] sm:$0xff]  ;;  %v752_v59 = vld [vmem:[%s7318_s1 + $0x1e8] sm:$0xff] }
  0x77   : > { %4187 = vmatprep.subr.bf16.mxu0 %v7325_v4  ;;  %v5476_v61 = vld [vmem:[#allocation2 + $0xa8] sm:$0xff] }
  0x79   : > { %915 = vmatmul.mubr.f32.gmra.mrb[6].mxu0 %v5352_v58 }
  0x7a   : > { %919 = vmatprep.mubr.f32.mxu0 %v5131_v19  ;;  %4189 = vmatpush1.bf16.msra.mxu0 %v4188_v17  ;;  %v5377_v19 = vld [vmem:[#allocation2 + $0x38] sm:$0xff]  ;;  %v751_v17 = vld [vmem:[%s7318_s1 + $0x1e0] sm:$0xff] }
  0x7b   : > { %4190 = vmatprep.subr.bf16.mxu0 %v7325_v4 }
  0x7d   : > { %920 = vmatmul.mubr.f32.gmra.mrb[8].mxu0 %v5363_v62 }
  0x7e   : > { %924 = vmatprep.mubr.f32.mxu0 %v5138_v22  ;;  %4192 = vmatpush1.bf16.msra.mxu0 %v4191_v18  ;;  %v4197_v22 = vpack.c.bf16 %v736_v7, %v735_v6  ;;  %v753_v18 = vld [vmem:[%s7318_s1 + $0x1f0] sm:$0xff]  ;;  %v5501_v6 = vld [vmem:[#allocation2 + $0xd8] sm:$0xff] }
  0x7f   : > { %4193 = vmatprep.subr.bf16.mxu0 %v7325_v4  ;;  %v5509_v7 = vld [vmem:[#allocation2 + $0xf0] sm:$0xff] }
  0x81   : > { %925 = vmatmul.mubr.f32.gmra.mrb[10].mxu0 %v5377_v19 }
  0x82   : > { %929 = vmatprep.mubr.f32.mxu0 %v5141_v23  ;;  %4195 = vmatpush1.bf16.msra.mxu0 %v4194_v3  ;;  %v4200_v23 = vpack.c.bf16 %v738_v11, %v737_v10  ;;  %v5492_v3 = vld [vmem:[#allocation2 + $0xc0] sm:$0xff]  ;;  %v756_v10 = vld [vmem:[%s7318_s1 + $0x208] sm:$0xff] }
  0x83   : > { %4196 = vmatprep.subr.bf16.mxu0 %v7325_v4 }
  0x85   : > { %930 = vmatmul.mubr.f32.gmra.mrb[12].mxu0 %v5388_v8 }
  0x86   : > { %934 = vmatprep.mubr.f32.mxu0 %v5150_v25  ;;  %4198 = vmatpush1.bf16.msra.mxu0 %v4197_v22  ;;  %v4203_v25 = vpack.c.bf16 %v740_v15, %v739_v14  ;;  %v5552_v22 = vld [vmem:[%s5081_s30 + $0xf8] sm:$0xff]  ;;  %v467_v14 = vld [vmem:[#allocation2 + $0xa] sm:$0xff] }
  0x87   : > { %4199 = vmatprep.subr.bf16.mxu0 %v7325_v4  ;;  %401 = vst [vmem:[#allocation2 + $0x189] sm:$0xff] %v5552_v22 }
  0x89   : > { %935 = vmatmul.mubr.f32.gmra.mrb[14].mxu0 %v5399_v12 }
  0x8a   : > { %939 = vmatprep.mubr.f32.mxu0 %v5153_v26  ;;  %4201 = vmatpush1.bf16.msra.mxu0 %v4200_v23  ;;  %v4206_v26 = vpack.c.bf16 %v742_v21, %v741_v20  ;;  %v758_v23 = vld [vmem:[%s7318_s1 + $0x218] sm:$0xff] }
  0x8b   : > { %4202 = vmatprep.subr.bf16.mxu0 %v7325_v4  ;;  %v5586_v20 = vld [vmem:[#allocation2 + $0x1a] sm:$0xff] }
  0x8d   : > { %940 = vmatmul.mubr.f32.gmra.mrb[16].mxu0 %v5410_v16 }
  0x8e   : > { %944 = vmatprep.mubr.f32.mxu0 %v5158_v27  ;;  %4204 = vmatpush1.bf16.msra.mxu0 %v4203_v25  ;;  %v4209_v27 = vpack.c.bf16 %v744_v32, %v743_v29  ;;  %v760_v25 = vld [vmem:[%s7318_s1 + $0x228] sm:$0xff]  ;;  %v763_v32 = vld [vmem:[%s7318_s1 + $0x240] sm:$0xff] }
  0x8f   : > { %4205 = vmatprep.subr.bf16.mxu0 %v7325_v4  ;;  %v5597_v29 = vld [vmem:[#allocation2 + $0x22] sm:$0xff] }
  0x91   : > { %945 = vmatmul.mubr.f32.gmra.mrb[18].mxu0 %v5421_v24 }
  0x92   : > { %949 = vmatprep.mubr.f32.mxu0 %v5162_v28  ;;  %4207 = vmatpush1.bf16.msra.mxu0 %v4206_v26  ;;  %v4212_v28 = vpack.c.bf16 %v746_v39, %v745_v37  ;;  %v762_v26 = vld [vmem:[%s7318_s1 + $0x238] sm:$0xff]  ;;  %v765_v37 = vld [vmem:[%s7318_s1 + $0x250] sm:$0xff] }
  0x93   : > { %4208 = vmatprep.subr.bf16.mxu0 %v7325_v4  ;;  %v766_v39 = vld [vmem:[%s7318_s1 + $0x258] sm:$0xff] }
  0x95   : > { %950 = vmatmul.mubr.f32.gmra.mrb[20].mxu0 %v5432_v33 }
  0x96   : > { %954 = vmatprep.mubr.f32.mxu0 %v5166_v30  ;;  %4210 = vmatpush1.bf16.msra.mxu0 %v4209_v27  ;;  %v4215_v30 = vpack.c.bf16 %v748_v44, %v747_v43  ;;  %v764_v27 = vld [vmem:[%s7318_s1 + $0x248] sm:$0xff]  ;;  %v767_v43 = vld [vmem:[%s7318_s1 + $0x260] sm:$0xff] }
  0x97   : > { %4211 = vmatprep.subr.bf16.mxu0 %v7325_v4  ;;  %v768_v44 = vld [vmem:[%s7318_s1 + $0x268] sm:$0xff] }
  0x99   : > { %955 = vmatmul.mubr.f32.gmra.mrb[22].mxu0 %v5443_v40 }
  0x9a   : > { %959 = vmatprep.mubr.f32.mxu0 %v5169_v31  ;;  %4213 = vmatpush1.bf16.msra.mxu0 %v4212_v28  ;;  %v4218_v31 = vpack.c.bf16 %v750_v52, %v749_v51  ;;  %v5617_v28 = vld [vmem:[#allocation2 + $0x3a] sm:$0xff]  ;;  %v769_v51 = vld [vmem:[%s7318_s1 + $0x270] sm:$0xff] }
  0x9b   : > { %4214 = vmatprep.subr.bf16.mxu0 %v7325_v4  ;;  %v770_v52 = vld [vmem:[%s7318_s1 + $0x278] sm:$0xff] }
  0x9d   : > { %960 = vmatmul.mubr.f32.gmra.mrb[24].mxu0 %v5454_v45 }
  0x9e   : > { %964 = vmatprep.mubr.f32.mxu0 %v5181_v34  ;;  %4216 = vmatpush1.bf16.msra.mxu0 %v4215_v30  ;;  %v4221_v34 = vpack.c.bf16 %v752_v59, %v751_v17  ;;  %v5628_v30 = vld [vmem:[#allocation2 + $0x4a] sm:$0xff]  ;;  %v771_v17 = vld [vmem:[%s7318_s1 + $0x280] sm:$0xff] }
  0x9f   : > { %4217 = vmatprep.subr.bf16.mxu0 %v7325_v4  ;;  %v772_v59 = vld [vmem:[%s7318_s1 + $0x288] sm:$0xff] }
  0xa1   : > { %965 = vmatmul.mubr.f32.gmra.mrb[26].mxu0 %v5465_v57 }
  0xa2   : > { %969 = vmatprep.mubr.f32.mxu0 %v5185_v35  ;;  %4219 = vmatpush1.bf16.msra.mxu0 %v4218_v31  ;;  %v4224_v35 = vpack.c.bf16 %v754_v1, %v753_v18  ;;  %v5639_v31 = vld [vmem:[#allocation2 + $0x52] sm:$0xff] }
  0xa3   : > { %4220 = vmatprep.subr.bf16.mxu0 %v7325_v4  ;;  %v773_v18 = vld [vmem:[%s7318_s1 + $0x290] sm:$0xff]  ;;  %v774_v1 = vld [vmem:[%s7318_s1 + $0x298] sm:$0xff] }
  0xa5   : > { %970 = vmatmul.mubr.f32.gmra.mrb[28].mxu0 %v5476_v61 }
  0xa6   : > { %974 = vmatprep.mubr.f32.mxu0 %v5189_v36  ;;  %4222 = vmatpush1.bf16.msra.mxu0 %v4221_v34  ;;  %v5497_v36 = vld [vmem:[#allocation2 + $0xc8] sm:$0xff] }
  0xa7   : > { %4223 = vmatprep.subr.bf16.mxu0 %v7325_v4  ;;  %v5650_v34 = vld [vmem:[#allocation2 + $0x62] sm:$0xff] }
  0xa9   : > { %975 = vmatmul.mubr.f32.gmra.mrb[30].mxu0 %v5487_v2 }
  0xaa   : > { %979 = vmatprep.mubr.f32.mxu0 %v5193_v38  ;;  %4225 = vmatpush1.bf16.msra.mxu0 %v4224_v35  ;;  %v5505_v38 = vld [vmem:[#allocation2 + $0xe0] sm:$0xff]  ;;  %v5661_v35 = vld [vmem:[#allocation2 + $0x6a] sm:$0xff] }
  0xab   : > { %4226 = vmatprep.subr.bf16.mxu0 %v7325_v4 }
  0xad   : > { %980 = vmatmul.mubr.f32.gmra.mrb[32].mxu0 %v5492_v3 }
  0xae   : > { %984 = vmatprep.mubr.f32.mxu0 %v5204_v41  ;;  %v5513_v41 = vld [vmem:[#allocation2 + $0xf8] sm:$0xff] }
  0xb1   : > { %985 = vmatmul.mubr.f32.gmra.mrb[34].mxu0 %v5497_v36 }
  0xb2   : > { %989 = vmatprep.mubr.f32.mxu0 %v5208_v42  ;;  %v5517_v42 = vld [vmem:[#allocation2 + $0x108] sm:$0xff] }
  0xb5   : > { %990 = vmatmul.mubr.f32.gmra.mrb[36].mxu0 %v5501_v6 }
  0xb6   : > { %994 = vmatprep.mubr.f32.mxu0 %v5219_v46  ;;  %v5521_v46 = vld [vmem:[#allocation2 + $0x110] sm:$0xff] }
  0xb9   : > { %995 = vmatmul.mubr.f32.gmra.mrb[38].mxu0 %v5505_v38 }
  0xba   : > { %999 = vmatprep.mubr.f32.mxu0 %v5222_v47  ;;  %v5525_v47 = vld [vmem:[#allocation2 + $0x120] sm:$0xff] }
  0xbd   : > { %1000 = vmatmul.mubr.f32.gmra.mrb[40].mxu0 %v5509_v7 }
  0xbe   : > { %1004 = vmatprep.mubr.f32.mxu0 %v5227_v48  ;;  %v5529_v48 = vld [vmem:[#allocation2 + $0x128] sm:$0xff] }
  0xc1   : > { %1005 = vmatmul.mubr.f32.gmra.mrb[42].mxu0 %v5513_v41 }
  0xc2   : > { %1009 = vmatprep.mubr.f32.mxu0 %v5230_v49  ;;  %v5533_v49 = vld [vmem:[#allocation2 + $0x138] sm:$0xff] }
  0xc5   : > { %1010 = vmatmul.mubr.f32.gmra.mrb[44].mxu0 %v5517_v42 }
  0xc6   : > { %1014 = vmatprep.mubr.f32.mxu0 %v5242_v53  ;;  %v5537_v53 = vld [vmem:[#allocation2 + $0x140] sm:$0xff] }
  0xc9   : > { %1015 = vmatmul.mubr.f32.gmra.mrb[46].mxu0 %v5521_v46 }
  0xca   : > { %1019 = vmatprep.mubr.f32.mxu0 %v5245_v54  ;;  %v5541_v54 = vld [vmem:[#allocation2 + $0x150] sm:$0xff] }
  0xcd   : > { %1020 = vmatmul.mubr.f32.gmra.mrb[48].mxu0 %v5525_v47 }
  0xce   : > { %1024 = vmatprep.mubr.f32.mxu0 %v5248_v55  ;;  %v5544_v55 = vld [vmem:[%s5081_s30 + $0xf0] sm:$0xff] }
  0xcf   : > { %400 = vst [vmem:[#allocation2 + $0x181] sm:$0xff] %v5544_v55 }
  0xd1   : > { %1025 = vmatmul.mubr.f32.gmra.mrb[50].mxu0 %v5529_v48 }
  0xd2   : > { %1029 = vmatprep.mubr.f32.mxu0 %v5254_v56  ;;  %v5549_v56 = vld [vmem:[#allocation2 + $0x158] sm:$0xff] }
  0xd5   : > { %1030 = vmatmul.mubr.f32.gmra.mrb[52].mxu0 %v5533_v49 }
  0xd6   : > { %1034 = vmatprep.mubr.f32.mxu0 %v5265_v60  ;;  %v5557_v60 = vld [vmem:[#allocation2 + $0x168] sm:$0xff] }
  0xd9   : > { %1035 = vmatmul.mubr.f32.gmra.mrb[54].mxu0 %v5537_v53 }
  0xda   : > { %1039 = vmatprep.mubr.f32.mxu0 %v5276_v0  ;;  %v5561_v0 = vld [vmem:[#allocation2 + $0x170] sm:$0xff] }
  0xdd   : > { %1040 = vmatmul.mubr.f32.gmra.mrb[56].mxu0 %v5541_v54 }
  0xde   : > { %1044 = vmatprep.mubr.f32.mxu0 %v5287_v5  ;;  %v755_v5 = vld [vmem:[%s7318_s1 + $0x200] sm:$0xff] }
  0xdf   : > { %v4227_v11 = vpack.c.bf16 %v756_v10, %v755_v5  ;;  %v775_v5 = vld [vmem:[%s7318_s1 + $0x2a0] sm:$0xff]  ;;  %v776_v10 = vld [vmem:[%s7318_s1 + $0x2a8] sm:$0xff] }
  0xe1   : > { %1045 = vmatmul.mubr.f32.gmra.mrb[58].mxu0 %v5549_v56 }
  0xe2   : > { %1049 = vmatprep.mubr.f32.mxu0 %v5298_v9  ;;  %v466_v9 = vld [vmem:[#allocation2 + $0x2] sm:$0xff] }
  0xe5   : > { %1050 = vmatmul.mubr.f32.gmra.mrb[60].mxu0 %v5557_v60 }
  0xe6   : > { %1054 = vmatprep.mubr.f32.mxu0 %v5309_v13  ;;  %v757_v13 = vld [vmem:[%s7318_s1 + $0x210] sm:$0xff] }
  0xe7   : > { %v4230_v15 = vpack.c.bf16 %v758_v23, %v757_v13  ;;  %v778_v13 = vld [vmem:[%s7318_s1 + $0x2b8] sm:$0xff]  ;;  %v5683_v23 = vld [vmem:[#allocation2 + $0x82] sm:$0xff] }
  0xe9   : > { %1055 = vmatmul.mubr.f32.gmra.mrb[62].mxu0 %v5561_v0 }
  0xea   : > { %1124 = vmatprep.mubr.f32.mxu0 %v5341_v50  ;;  %v759_v50 = vld [vmem:[%s7318_s1 + $0x220] sm:$0xff] }
  0xeb   : > { %v4233_v21 = vpack.c.bf16 %v760_v25, %v759_v50  ;;  %v5694_v50 = vld [vmem:[#allocation2 + $0x92] sm:$0xff] }
  0xec   : > { %v781_v25 = vld [vmem:[%s7318_s1 + $0x2d0] sm:$0xff] }
  0xed   : > { %1125 = vmatmul.mubr.f32.vlgmr.msra.gmra.mrb[0].mxu0 %v466_v9  ;;  %v5672_v9 = vld [vmem:[#allocation2 + $0x7a] sm:$0xff] }
  0xee   : > { %4228 = vmatpush1.bf16.msra.mxu0 %v4227_v11  ;;  %1129 = vmatprep.mubr.f32.mxu0 %v5352_v58  ;;  %v761_v58 = vld [vmem:[%s7318_s1 + $0x230] sm:$0xff] }
  0xef   : > { %4229 = vmatprep.subr.bf16.mxu0 %v7325_v4  ;;  %v777_v11 = vld [vmem:[%s7318_s1 + $0x2b0] sm:$0xff] }
  0xf1   : > { %1130 = vmatmul.mubr.f32.gmra.mrb[2].mxu0 %v467_v14  ;;  %v779_v14 = vld [vmem:[%s7318_s1 + $0x2c0] sm:$0xff] }
  0xf2   : > { %1134 = vmatprep.mubr.f32.mxu0 %v5363_v62  ;;  %4231 = vmatpush1.bf16.msra.mxu0 %v4230_v15  ;;  %v4236_v62 = vpack.c.bf16 %v762_v26, %v761_v58  ;;  %v780_v15 = vld [vmem:[%s7318_s1 + $0x2c8] sm:$0xff]  ;;  %v5705_v58 = vld [vmem:[#allocation2 + $0x9a] sm:$0xff] }
  0xf3   : > { %4232 = vmatprep.subr.bf16.mxu0 %v7325_v4  ;;  %v783_v26 = vld [vmem:[%s7318_s1 + $0x2e0] sm:$0xff] }
  0xf5   : > { %1135 = vmatmul.mubr.f32.gmra.mrb[4].mxu0 %v5586_v20 }
  0xf6   : > { %1139 = vmatprep.mubr.f32.mxu0 %v5377_v19  ;;  %4234 = vmatpush1.bf16.msra.mxu0 %v4233_v21  ;;  %v4239_v19 = vpack.c.bf16 %v764_v27, %v763_v32  ;;  %v782_v21 = vld [vmem:[%s7318_s1 + $0x2d8] sm:$0xff]  ;;  %v5716_v32 = vld [vmem:[#allocation2 + $0xaa] sm:$0xff] }
  0xf7   : > { %4235 = vmatprep.subr.bf16.mxu0 %v7325_v4  ;;  %v785_v27 = vld [vmem:[%s7318_s1 + $0x2f0] sm:$0xff] }
  0xf9   : > { %1140 = vmatmul.mubr.f32.gmra.mrb[6].mxu0 %v5597_v29 }
  0xfa   : > { %1144 = vmatprep.mubr.f32.mxu0 %v5388_v8  ;;  %4237 = vmatpush1.bf16.msra.mxu0 %v4236_v62  ;;  %v4242_v8 = vpack.c.bf16 %v766_v39, %v765_v37  ;;  %v784_v62 = vld [vmem:[%s7318_s1 + $0x2e8] sm:$0xff]  ;;  %v5727_v37 = vld [vmem:[#allocation2 + $0xb2] sm:$0xff] }
  0xfb   : > { %4238 = vmatprep.subr.bf16.mxu0 %v7325_v4  ;;  %v5732_v39 = vld [vmem:[#allocation2 + $0xc2] sm:$0xff] }
  0xfd   : > { %1145 = vmatmul.mubr.f32.gmra.mrb[8].mxu0 %v5365_v63 }
  0xfe   : > { %1149 = vmatprep.mubr.f32.mxu0 %v5399_v12  ;;  %4240 = vmatpush1.bf16.msra.mxu0 %v4239_v19  ;;  %v4245_v12 = vpack.c.bf16 %v768_v44, %v767_v43  ;;  %v786_v19 = vld [vmem:[%s7318_s1 + $0x2f8] sm:$0xff] }
  0xff   : > { %4241 = vmatprep.subr.bf16.mxu0 %v7325_v4  ;;  %v5749_v43 = vld [vmem:[#allocation2 + $0xf2] sm:$0xff] }
 0x101   : > { %1150 = vmatmul.mubr.f32.gmra.mrb[10].mxu0 %v5617_v28 }
 0x102   : > { %1154 = vmatprep.mubr.f32.mxu0 %v5410_v16  ;;  %4243 = vmatpush1.bf16.msra.mxu0 %v4242_v8  ;;  %v4248_v16 = vpack.c.bf16 %v770_v52, %v769_v51  ;;  %v5741_v8 = vld [vmem:[#allocation2 + $0xda] sm:$0xff]  ;;  %v5781_v52 = vld [vmem:[#allocation2 + $0x12a] sm:$0xff] }
 0x103   : > { %4244 = vmatprep.subr.bf16.mxu0 %v7325_v4 }
 0x105   : > { %1155 = vmatmul.mubr.f32.gmra.mrb[12].mxu0 %v5628_v30 }
 0x106   : > { %1159 = vmatprep.mubr.f32.mxu0 %v5421_v24  ;;  %4246 = vmatpush1.bf16.msra.mxu0 %v4245_v12  ;;  %v4251_v24 = vpack.c.bf16 %v772_v59, %v771_v17  ;;  %v822_v12 = vld [vmem:[%s7318_s1 + $0x418] sm:$0xff] }
 0x107   : > { %4247 = vmatprep.subr.bf16.mxu0 %v7325_v4  ;;  %v5791_v59 = vld [vmem:[#allocation2 + $0x13a] sm:$0xff] }
 0x109   : > { %1160 = vmatmul.mubr.f32.gmra.mrb[14].mxu0 %v5639_v31 }
 0x10a   : > { %1164 = vmatprep.mubr.f32.mxu0 %v5432_v33  ;;  %4249 = vmatpush1.bf16.msra.mxu0 %v4248_v16  ;;  %v4254_v33 = vpack.c.bf16 %v774_v1, %v773_v18  ;;  %v824_v16 = vld [vmem:[%s7318_s1 + $0x428] sm:$0xff] }
 0x10b   : > { %4250 = vmatprep.subr.bf16.mxu0 %v7325_v4  ;;  %v5801_v1 = vld [vmem:[#allocation2 + $0x142] sm:$0xff] }
 0x10d   : > { %1165 = vmatmul.mubr.f32.gmra.mrb[16].mxu0 %v5650_v34 }
 0x10e   : > { %1169 = vmatprep.mubr.f32.mxu0 %v5443_v40  ;;  %4252 = vmatpush1.bf16.msra.mxu0 %v4251_v24  ;;  %v4257_v40 = vpack.c.bf16 %v776_v10, %v775_v5  ;;  %v826_v24 = vld [vmem:[%s7318_s1 + $0x438] sm:$0xff] }
 0x10f   : > { %4253 = vmatprep.subr.bf16.mxu0 %v7325_v4  ;;  %v5811_v10 = vld [vmem:[#allocation2 + $0x152] sm:$0xff] }
 0x111   : > { %1170 = vmatmul.mubr.f32.gmra.mrb[18].mxu0 %v5661_v35 }
 0x112   : > { %1174 = vmatprep.mubr.f32.mxu0 %v5454_v45  ;;  %4255 = vmatpush1.bf16.msra.mxu0 %v4254_v33  ;;  %v4260_v45 = vpack.c.bf16 %v778_v13, %v777_v11  ;;  %v828_v33 = vld [vmem:[%s7318_s1 + $0x448] sm:$0xff]  ;;  %v5821_v13 = vld [vmem:[#allocation2 + $0x15a] sm:$0xff] }
 0x113   : > { %4256 = vmatprep.subr.bf16.mxu0 %v7325_v4 }
 0x115   : > { %1175 = vmatmul.mubr.f32.gmra.mrb[20].mxu0 %v5672_v9 }
 0x116   : > { %1179 = vmatprep.mubr.f32.mxu0 %v5465_v57  ;;  %4258 = vmatpush1.bf16.msra.mxu0 %v4257_v40  ;;  %v4263_v57 = vpack.c.bf16 %v780_v15, %v779_v14  ;;  %v830_v40 = vld [vmem:[%s7318_s1 + $0x458] sm:$0xff]  ;;  %v832_v14 = vld [vmem:[%s7318_s1 + $0x468] sm:$0xff] }
 0x117   : > { %4259 = vmatprep.subr.bf16.mxu0 %v7325_v4 }
 0x119   : > { %1180 = vmatmul.mubr.f32.gmra.mrb[22].mxu0 %v5683_v23 }
 0x11a   : > { %1184 = vmatprep.mubr.f32.mxu0 %v5476_v61  ;;  %4261 = vmatpush1.bf16.msra.mxu0 %v4260_v45  ;;  %v4266_v61 = vpack.c.bf16 %v782_v21, %v781_v25  ;;  %v831_v45 = vld [vmem:[%s7318_s1 + $0x460] sm:$0xff]  ;;  %v833_v25 = vld [vmem:[%s7318_s1 + $0x470] sm:$0xff]  ;;  %v834_v21 = vld [vmem:[%s7318_s1 + $0x478] sm:$0xff] }
 0x11b   : > { %4262 = vmatprep.subr.bf16.mxu0 %v7325_v4  ;;  %v4346_v15 = vpack.c.bf16 %v832_v14, %v831_v45  ;;  %v4994_v45 = vld [vmem:[#allocation2 + $0x61] sm:$0xff] }
 0x11c   : > { %v803_v14 = vld [vmem:[%s7318_s1 + $0x380] sm:$0xff] }
 0x11d   : > { %1185 = vmatmul.mubr.f32.gmra.mrb[24].mxu0 %v5694_v50 }
 0x11e   : > { %1189 = vmatprep.mubr.f32.mxu0 %v5487_v2  ;;  %4264 = vmatpush1.bf16.msra.mxu0 %v4263_v57  ;;  %v4269_v2 = vpack.c.bf16 %v784_v62, %v783_v26  ;;  %v5835_v57 = vld [vmem:[#allocation2 + $0x188] sm:$0xff]  ;;  %v5845_v26 = vld [vmem:[#allocation2 + $0x172] sm:$0xff]  ;;  %v787_v62 = vld [vmem:[%s7318_s1 + $0x300] sm:$0xff] }
 0x11f   : > { %4265 = vmatprep.subr.bf16.mxu0 %v7325_v4 }
 0x121   : > { %1190 = vmatmul.mubr.f32.gmra.mrb[26].mxu0 %v5705_v58 }
 0x122   : > { %1194 = vmatprep.mubr.f32.mxu0 %v5492_v3  ;;  %4267 = vmatpush1.bf16.msra.mxu0 %v4266_v61  ;;  %v4272_v3 = vpack.c.bf16 %v786_v19, %v785_v27  ;;  %v4350_v61 = vpack.c.bf16 %v834_v21, %v833_v25  ;;  %v789_v19 = vld [vmem:[%s7318_s1 + $0x310] sm:$0xff] }
 0x123   : > { %4268 = vmatprep.subr.bf16.mxu0 %v7325_v4  ;;  %v4995_v25 = vld [vmem:[#allocation2 + $0x69] sm:$0xff] }
 0x124   : > { %v805_v21 = vld [vmem:[%s7318_s1 + $0x390] sm:$0xff] }
 0x125   : > { %1195 = vmatmul.mubr.f32.gmra.mrb[28].mxu0 %v5716_v32 }
 0x126   : > { %1199 = vmatprep.mubr.f32.mxu0 %v5497_v36  ;;  %4270 = vmatpush1.bf16.msra.mxu0 %v4269_v2  ;;  %v5737_v36 = vld [vmem:[#allocation2 + $0xca] sm:$0xff] }
 0x127   : > { %4271 = vmatprep.subr.bf16.mxu0 %v7325_v4  ;;  %v788_v2 = vld [vmem:[%s7318_s1 + $0x308] sm:$0xff] }
 0x128   : > { %v4275_v27 = vpack.c.bf16 %v788_v2, %v787_v62  ;;  %v4996_v62 = vld [vmem:[#allocation2 + $0x79] sm:$0xff] }
 0x129   : > { %1200 = vmatmul.mubr.f32.gmra.mrb[30].mxu0 %v5727_v37  ;;  %v807_v2 = vld [vmem:[%s7318_s1 + $0x3a0] sm:$0xff] }
 0x12a   : > { %1204 = vmatprep.mubr.f32.mxu0 %v5501_v6  ;;  %4273 = vmatpush1.bf16.msra.mxu0 %v4272_v3  ;;  %v5745_v6 = vld [vmem:[#allocation2 + $0xe2] sm:$0xff]  ;;  %v790_v3 = vld [vmem:[%s7318_s1 + $0x318] sm:$0xff] }
 0x12b   : > { %4274 = vmatprep.subr.bf16.mxu0 %v7325_v4 }
 0x12d   : > { %1205 = vmatmul.mubr.f32.gmra.mrb[32].mxu0 %v5732_v39 }
 0x12e   : > { %1209 = vmatprep.mubr.f32.mxu0 %v5505_v38  ;;  %v5753_v38 = vld [vmem:[#allocation2 + $0xfa] sm:$0xff] }
 0x131   : > { %1210 = vmatmul.mubr.f32.gmra.mrb[34].mxu0 %v5737_v36 }
 0x132   : > { %1214 = vmatprep.mubr.f32.mxu0 %v5509_v7  ;;  %v5757_v7 = vld [vmem:[#allocation2 + $0x10a] sm:$0xff] }
 0x135   : > { %1215 = vmatmul.mubr.f32.gmra.mrb[36].mxu0 %v5741_v8 }
 0x136   : > { %1219 = vmatprep.mubr.f32.mxu0 %v5513_v41  ;;  %v5761_v41 = vld [vmem:[#allocation2 + $0x112] sm:$0xff] }
 0x139   : > { %1220 = vmatmul.mubr.f32.gmra.mrb[38].mxu0 %v5745_v6 }
 0x13a   : > { %1224 = vmatprep.mubr.f32.mxu0 %v5517_v42  ;;  %v819_v42 = vld [vmem:[%s7318_s1 + $0x400] sm:$0xff] }
 0x13d   : > { %1225 = vmatmul.mubr.f32.gmra.mrb[40].mxu0 %v5749_v43 }
 0x13e   : > { %1229 = vmatprep.mubr.f32.mxu0 %v5521_v46  ;;  %v820_v46 = vld [vmem:[%s7318_s1 + $0x408] sm:$0xff] }
 0x13f   : > { %v4322_v44 = vpack.c.bf16 %v820_v46, %v819_v42  ;;  %v4988_v42 = vld [vmem:[#allocation2 + $0x19] sm:$0xff]  ;;  %v4278_v46 = vpack.c.bf16 %v790_v3, %v789_v19  ;;  %v4997_v19 = vld [vmem:[#allocation2 + $0x81] sm:$0xff]  ;;  %v809_v3 = vld [vmem:[%s7318_s1 + $0x3b0] sm:$0xff] }
 0x141   : > { %1230 = vmatmul.mubr.f32.gmra.mrb[42].mxu0 %v5753_v38  ;;  %4323 = vmatprep.subr.bf16.mxu1 %v4322_v44 }
 0x142   : > { %1234 = vmatprep.mubr.f32.mxu0 %v5525_v47  ;;  %v5771_v47 = vld [vmem:[#allocation2 + $0x122] sm:$0xff]  ;;  %4325 = vmatpush3.bf16.msra.mxu1 %v4322_v44 }
 0x143   : > { %v792_v44 = vld [vmem:[%s7318_s1 + $0x328] sm:$0xff] }
 0x145   : > { %1235 = vmatmul.mubr.f32.gmra.mrb[44].mxu0 %v5757_v7 }
 0x146   : > { %1239 = vmatprep.mubr.f32.mxu0 %v5529_v48  ;;  %v821_v48 = vld [vmem:[%s7318_s1 + $0x410] sm:$0xff] }
 0x147   : > { %v4326_v51 = vpack.c.bf16 %v822_v12, %v821_v48  ;;  %v4989_v48 = vld [vmem:[#allocation2 + $0x21] sm:$0xff]  ;;  %v793_v12 = vld [vmem:[%s7318_s1 + $0x330] sm:$0xff] }
 0x149   : > { %1240 = vmatmul.mubr.f32.gmra.mrb[46].mxu0 %v5761_v41  ;;  %4327 = vmatprep.subr.bf16.mxu1 %v4326_v51 }
 0x14a   : > { %1244 = vmatprep.mubr.f32.mxu0 %v5533_v49  ;;  %4329 = vmatpush3.bf16.msra.mxu1 %v4326_v51  ;;  %v823_v49 = vld [vmem:[%s7318_s1 + $0x420] sm:$0xff]  ;;  %v794_v51 = vld [vmem:[%s7318_s1 + $0x338] sm:$0xff] }
 0x14b   : > { %v4330_v17 = vpack.c.bf16 %v824_v16, %v823_v49  ;;  %v4990_v49 = vld [vmem:[#allocation2 + $0x31] sm:$0xff]  ;;  %v795_v16 = vld [vmem:[%s7318_s1 + $0x340] sm:$0xff] }
 0x14d   : > { %1245 = vmatmul.mubr.f32.gmra.mrb[48].mxu0 %v5771_v47  ;;  %4331 = vmatprep.subr.bf16.mxu1 %v4330_v17 }
 0x14e   : > { %1249 = vmatprep.mubr.f32.mxu0 %v5537_v53  ;;  %4333 = vmatpush3.bf16.msra.mxu1 %v4330_v17  ;;  %v825_v53 = vld [vmem:[%s7318_s1 + $0x430] sm:$0xff]  ;;  %v796_v17 = vld [vmem:[%s7318_s1 + $0x348] sm:$0xff] }
 0x14f   : > { %v4334_v18 = vpack.c.bf16 %v826_v24, %v825_v53  ;;  %v4991_v53 = vld [vmem:[#allocation2 + $0x39] sm:$0xff]  ;;  %v797_v24 = vld [vmem:[%s7318_s1 + $0x350] sm:$0xff] }
 0x151   : > { %1250 = vmatmul.mubr.f32.gmra.mrb[50].mxu0 %v5781_v52  ;;  %4335 = vmatprep.subr.bf16.mxu1 %v4334_v18 }
 0x152   : > { %1254 = vmatprep.mubr.f32.mxu0 %v5541_v54  ;;  %4337 = vmatpush3.bf16.msra.mxu1 %v4334_v18  ;;  %v827_v54 = vld [vmem:[%s7318_s1 + $0x440] sm:$0xff]  ;;  %v798_v18 = vld [vmem:[%s7318_s1 + $0x358] sm:$0xff] }
 0x153   : > { %v4338_v5 = vpack.c.bf16 %v828_v33, %v827_v54  ;;  %v4992_v54 = vld [vmem:[#allocation2 + $0x49] sm:$0xff]  ;;  %v799_v33 = vld [vmem:[%s7318_s1 + $0x360] sm:$0xff] }
 0x155   : > { %1255 = vmatmul.mubr.f32.gmra.mrb[52].mxu0 %v5791_v59  ;;  %4339 = vmatprep.subr.bf16.mxu1 %v4338_v5 }
 0x156   : > { %1259 = vmatprep.mubr.f32.mxu0 %v5549_v56  ;;  %4341 = vmatpush3.bf16.msra.mxu1 %v4338_v5  ;;  %v829_v56 = vld [vmem:[%s7318_s1 + $0x450] sm:$0xff]  ;;  %v800_v5 = vld [vmem:[%s7318_s1 + $0x368] sm:$0xff] }
 0x157   : > { %v4342_v11 = vpack.c.bf16 %v830_v40, %v829_v56  ;;  %v4993_v56 = vld [vmem:[#allocation2 + $0x51] sm:$0xff] }
 0x158   : > { %v801_v40 = vld [vmem:[%s7318_s1 + $0x370] sm:$0xff] }
 0x159   : > { %1260 = vmatmul.mubr.f32.gmra.mrb[54].mxu0 %v5801_v1  ;;  %4343 = vmatprep.subr.bf16.mxu1 %v4342_v11 }
 0x15a   : > { %1264 = vmatprep.mubr.f32.mxu0 %v5557_v60  ;;  %v5823_v60 = vld [vmem:[#allocation2 + $0x180] sm:$0xff]  ;;  %4345 = vmatpush3.bf16.msra.mxu1 %v4342_v11  ;;  %v802_v11 = vld [vmem:[%s7318_s1 + $0x378] sm:$0xff] }
 0x15b   : > { %4347 = vmatprep.subr.bf16.mxu1 %v4346_v15 }
 0x15d   : > { %1265 = vmatmul.mubr.f32.gmra.mrb[56].mxu0 %v5811_v10 }
 0x15e   : > { %1269 = vmatprep.mubr.f32.mxu0 %v5561_v0  ;;  %v5833_v0 = vld [vmem:[#allocation2 + $0x16a] sm:$0xff]  ;;  %4349 = vmatpush3.bf16.msra.mxu1 %v4346_v15 }
 0x15f   : > { %4351 = vmatprep.subr.bf16.mxu1 %v4350_v61  ;;  %v804_v15 = vld [vmem:[%s7318_s1 + $0x388] sm:$0xff] }
 0x161   : > { %1270 = vmatmul.mubr.f32.gmra.mrb[58].mxu0 %v5821_v13 }
 0x162   : > { %1274 = vmatprep.mubr.f32.mxu0 %v5823_v60  ;;  %4353 = vmatpush3.bf16.msra.mxu1 %v4350_v61  ;;  %v806_v61 = vld [vmem:[%s7318_s1 + $0x398] sm:$0xff] }
 0x163   : > { %4354 = vmatprep.subr.bf16.mxu1 %v7325_v4 }
 0x165   : > { %1275 = vmatmul.mubr.f32.gmra.mrb[60].mxu0 %v5833_v0  ;;  %4003 = vmatmul.mubr.f32.vlgmr.msra.gmra.mrb[0].mxu1 %v5617_v28 }
 0x166   : > { %1279 = vmatprep.mubr.f32.mxu0 %v5835_v57  ;;  %4005 = vmatprep.mubr.f32.mxu1 %v5628_v30 }
 0x169   : > { %1280 = vmatmul.mubr.f32.gmra.mrb[62].mxu0 %v5845_v26  ;;  %4006 = vmatmul.mubr.f32.gmra.mrb[2].mxu1 %v5639_v31 }
 0x16a   : > { %1349 = vmatprep.mubr.f32.mxu0 %v5586_v20  ;;  %v791_v20 = vld [vmem:[%s7318_s1 + $0x320] sm:$0xff]  ;;  %4008 = vmatprep.mubr.f32.mxu1 %v5650_v34 }
 0x16d   : > { %1350 = vmatmul.mubr.f32.vlgmr.msra.gmra.mrb[0].mxu0 %v4988_v42  ;;  %4009 = vmatmul.mubr.f32.gmra.mrb[4].mxu1 %v5661_v35  ;;  %v810_v42 = vld [vmem:[%s7318_s1 + $0x3b8] sm:$0xff] }
 0x16e   : > { %4276 = vmatpush1.bf16.msra.mxu0 %v4275_v27  ;;  %1354 = vmatprep.mubr.f32.mxu0 %v5597_v29  ;;  %v4281_v29 = vpack.c.bf16 %v792_v44, %v791_v20  ;;  %v808_v27 = vld [vmem:[%s7318_s1 + $0x3a8] sm:$0xff]  ;;  %v811_v20 = vld [vmem:[%s7318_s1 + $0x3c0] sm:$0xff] }
 0x16f   : > { %4277 = vmatprep.subr.bf16.mxu0 %v7325_v4  ;;  %4011 = vmatprep.mubr.f32.mxu1 %v5672_v9  ;;  %v812_v44 = vld [vmem:[%s7318_s1 + $0x3c8] sm:$0xff] }
 0x171   : > { %1355 = vmatmul.mubr.f32.gmra.mrb[2].mxu0 %v4989_v48  ;;  %4012 = vmatmul.mubr.f32.gmra.mrb[6].mxu1 %v5683_v23  ;;  %v4999_v48 = vld [vmem:[#allocation2 + $0x99] sm:$0xff] }
 0x172   : > { %1359 = vmatprep.mubr.f32.mxu0 %v5365_v63  ;;  %4279 = vmatpush1.bf16.msra.mxu0 %v4278_v46  ;;  %v4284_v63 = vpack.c.bf16 %v794_v51, %v793_v12  ;;  %v4998_v46 = vld [vmem:[#allocation2 + $0x91] sm:$0xff]  ;;  %v5000_v51 = vld [vmem:[#allocation2 + $0xa9] sm:$0xff] }
 0x173   : > { %4280 = vmatprep.subr.bf16.mxu0 %v7325_v4  ;;  %4014 = vmatprep.mubr.f32.mxu1 %v5694_v50  ;;  %v814_v12 = vld [vmem:[%s7318_s1 + $0x3d8] sm:$0xff] }
 0x175   : > { %1360 = vmatmul.mubr.f32.gmra.mrb[4].mxu0 %v4990_v49  ;;  %4015 = vmatmul.mubr.f32.gmra.mrb[8].mxu1 %v5705_v58  ;;  %v815_v49 = vld [vmem:[%s7318_s1 + $0x3e0] sm:$0xff] }
 0x176   : > { %1364 = vmatprep.mubr.f32.mxu0 %v5617_v28  ;;  %4282 = vmatpush1.bf16.msra.mxu0 %v4281_v29  ;;  %v4287_v28 = vpack.c.bf16 %v796_v17, %v795_v16  ;;  %v813_v29 = vld [vmem:[%s7318_s1 + $0x3d0] sm:$0xff]  ;;  %v5992_v16 = vld [vmem:[#allocation2 + $0x182] sm:$0xff] }
 0x177   : > { %4283 = vmatprep.subr.bf16.mxu0 %v7325_v4  ;;  %4017 = vmatprep.mubr.f32.mxu1 %v5716_v32  ;;  %v5001_v17 = vld [vmem:[#allocation2 + $0xb1] sm:$0xff] }
 0x179   : > { %1365 = vmatmul.mubr.f32.gmra.mrb[6].mxu0 %v4991_v53  ;;  %4018 = vmatmul.mubr.f32.gmra.mrb[10].mxu1 %v5727_v37  ;;  %v593_v53 = vld [vmem:[#allocation2 + $0x18a] sm:$0xff] }
 0x17a   : > { %1369 = vmatprep.mubr.f32.mxu0 %v5628_v30  ;;  %4285 = vmatpush1.bf16.msra.mxu0 %v4284_v63  ;;  %v4290_v30 = vpack.c.bf16 %v798_v18, %v797_v24  ;;  %v816_v63 = vld [vmem:[%s7318_s1 + $0x3e8] sm:$0xff]  ;;  %v818_v24 = vld [vmem:[%s7318_s1 + $0x3f8] sm:$0xff] }
 0x17b   : > { %4286 = vmatprep.subr.bf16.mxu0 %v7325_v4  ;;  %4020 = vmatprep.mubr.f32.mxu1 %v5732_v39  ;;  %v5002_v18 = vld [vmem:[#allocation2 + $0xc1] sm:$0xff] }
 0x17d   : > { %1370 = vmatmul.mubr.f32.gmra.mrb[8].mxu0 %v4992_v54  ;;  %4021 = vmatmul.mubr.f32.gmra.mrb[12].mxu1 %v5737_v36  ;;  %v5003_v54 = vld [vmem:[#allocation2 + $0xc9] sm:$0xff] }
 0x17e   : > { %1374 = vmatprep.mubr.f32.mxu0 %v5639_v31  ;;  %4288 = vmatpush1.bf16.msra.mxu0 %v4287_v28  ;;  %v4293_v31 = vpack.c.bf16 %v800_v5, %v799_v33  ;;  %v817_v28 = vld [vmem:[%s7318_s1 + $0x3f0] sm:$0xff]  ;;  %v5005_v33 = vld [vmem:[#allocation2 + $0xe1] sm:$0xff] }
 0x17f   : > { %4289 = vmatprep.subr.bf16.mxu0 %v7325_v4  ;;  %4023 = vmatprep.mubr.f32.mxu1 %v5741_v8  ;;  %v5006_v5 = vld [vmem:[#allocation2 + $0xf1] sm:$0xff] }
 0x181   : > { %1375 = vmatmul.mubr.f32.gmra.mrb[10].mxu0 %v4993_v56  ;;  %4024 = vmatmul.mubr.f32.gmra.mrb[14].mxu1 %v5745_v6  ;;  %v5008_v56 = vld [vmem:[#allocation2 + $0x109] sm:$0xff] }
 0x182   : > { %1379 = vmatprep.mubr.f32.mxu0 %v5650_v34  ;;  %4291 = vmatpush1.bf16.msra.mxu0 %v4290_v30  ;;  %v4296_v34 = vpack.c.bf16 %v802_v11, %v801_v40  ;;  %v5004_v30 = vld [vmem:[#allocation2 + $0xd9] sm:$0xff]  ;;  %v595_v40 = vld [vmem:[#allocation2 + $0x30] sm:$0xff] }
 0x183   : > { %4292 = vmatprep.subr.bf16.mxu0 %v7325_v4  ;;  %4026 = vmatprep.mubr.f32.mxu1 %v5749_v43 }
 0x185   : > { %1380 = vmatmul.mubr.f32.gmra.mrb[12].mxu0 %v4994_v45  ;;  %4027 = vmatmul.mubr.f32.gmra.mrb[16].mxu1 %v5753_v38 }
 0x186   : > { %1384 = vmatprep.mubr.f32.mxu0 %v5661_v35  ;;  %4294 = vmatpush1.bf16.msra.mxu0 %v4293_v31  ;;  %v4299_v35 = vpack.c.bf16 %v804_v15, %v803_v14  ;;  %v689_v31 = vld [vmem:[#allocation2 + $0x19a] sm:$0xff]  ;;  %v2395_v14 = vld [vmem:[%s7321_s4 + $0x28] sm:$0xff] }
 0x187   : > { %4295 = vmatprep.subr.bf16.mxu0 %v7325_v4  ;;  %4029 = vmatprep.mubr.f32.mxu1 %v5757_v7  ;;  %v596_v15 = vld [vmem:[#allocation2 + $0x38] sm:$0xff] }
 0x189   : > { %1385 = vmatmul.mubr.f32.gmra.mrb[14].mxu0 %v4995_v25  ;;  %4030 = vmatmul.mubr.f32.gmra.mrb[18].mxu1 %v5761_v41  ;;  %v629_v25 = vld [vmem:[#allocation2 + $0x49] sm:$0xff] }
 0x18a   : > { %1389 = vmatprep.mubr.f32.mxu0 %v5672_v9  ;;  %4297 = vmatpush1.bf16.msra.mxu0 %v4296_v34  ;;  %v4302_v9 = vpack.c.bf16 %v806_v61, %v805_v21  ;;  %v2394_v34 = vld [vmem:[%s7321_s4 + $0x20] sm:$0xff]  ;;  %v2396_v21 = vld [vmem:[%s7321_s4 + $0x30] sm:$0xff]  ;;  %v2397_v61 = vld [vmem:[%s7321_s4 + $0x38] sm:$0xff] }
 0x18b   : > { %4298 = vmatprep.subr.bf16.mxu0 %v7325_v4  ;;  %4032 = vmatprep.mubr.f32.mxu1 %v5771_v47 }
 0x18d   : > { %1390 = vmatmul.mubr.f32.gmra.mrb[16].mxu0 %v4996_v62  ;;  %4033 = vmatmul.mubr.f32.gmra.mrb[20].mxu1 %v5781_v52  ;;  %v2518_v62 = vld [vmem:[%s7321_s4 + $0x400] sm:$0xff] }
 0x18e   : > { %1394 = vmatprep.mubr.f32.mxu0 %v5683_v23  ;;  %4300 = vmatpush1.bf16.msra.mxu0 %v4299_v35  ;;  %v4305_v23 = vpack.c.bf16 %v808_v27, %v807_v2  ;;  %v4361_v35 = vpack.c.bf16 %v2395_v14, %v2394_v34  ;;  %v2519_v2 = vld [vmem:[%s7321_s4 + $0x408] sm:$0xff]  ;;  %v630_v27 = vld [vmem:[#allocation2 + $0x51] sm:$0xff] }
 0x18f   : > { %4301 = vmatprep.subr.bf16.mxu0 %v7325_v4  ;;  %4035 = vmatprep.mubr.f32.mxu1 %v5791_v59  ;;  %v640_v34 = vld [vmem:[#allocation2 + $0xc9] sm:$0xff] }
 0x191   : > { %1395 = vmatmul.mubr.f32.gmra.mrb[18].mxu0 %v4997_v19  ;;  %4036 = vmatmul.mubr.f32.gmra.mrb[22].mxu1 %v5801_v1  ;;  %v6055_v19 = vpack.c.bf16 %v2519_v2, %v2518_v62  ;;  %v643_v62 = vld [vmem:[#allocation2 + $0xf1] sm:$0xff]  ;;  %v644_v2 = vld [vmem:[#allocation2 + $0xf9] sm:$0xff] }
 0x192   : > { %1399 = vmatprep.mubr.f32.mxu0 %v5694_v50  ;;  %4303 = vmatpush1.bf16.msra.mxu0 %v4302_v9  ;;  %v4308_v50 = vpack.c.bf16 %v810_v42, %v809_v3  ;;  %v597_v9 = vld [vmem:[#allocation2 + $0x48] sm:$0xff]  ;;  %v2398_v3 = vld [vmem:[%s7321_s4 + $0x40] sm:$0xff] }
 0x193   : > { %4304 = vmatprep.subr.bf16.mxu0 %v7325_v4  ;;  %4038 = vmatprep.mubr.f32.mxu1 %v5811_v10  ;;  %7353 = vst [vmem:[#allocation3_spill] sm:$0xff] %v6055_v19  ;;  %v2399_v42 = vld [vmem:[%s7321_s4 + $0x48] sm:$0xff] }
 0x195   : > { %1400 = vmatmul.mubr.f32.gmra.mrb[20].mxu0 %v4998_v46  ;;  %4039 = vmatmul.mubr.f32.gmra.mrb[24].mxu1 %v5821_v13  ;;  %v598_v46 = vld [vmem:[#allocation2 + $0x50] sm:$0xff] }
 0x196   : > { %1404 = vmatprep.mubr.f32.mxu0 %v5705_v58  ;;  %4306 = vmatpush1.bf16.msra.mxu0 %v4305_v23  ;;  %v4311_v58 = vpack.c.bf16 %v812_v44, %v811_v20  ;;  %v4364_v23 = vpack.c.bf16 %v2397_v61, %v2396_v21  ;;  %v4367_v20 = vpack.c.bf16 %v2399_v42, %v2398_v3  ;;  %v2400_v44 = vld [vmem:[%s7321_s4 + $0x50] sm:$0xff]  ;;  %v642_v21 = vld [vmem:[#allocation2 + $0xe1] sm:$0xff] }
 0x197   : > { %4307 = vmatprep.subr.bf16.mxu0 %v7325_v4  ;;  %4041 = vmatprep.mubr.f32.mxu1 %v5833_v0  ;;  %v610_v61 = vld [vmem:[#allocation2 + $0xe0] sm:$0xff]  ;;  %v613_v3 = vld [vmem:[#allocation2 + $0x108] sm:$0xff]  ;;  %v646_v42 = vld [vmem:[#allocation2 + $0x111] sm:$0xff] }
 0x199   : > { %1405 = vmatmul.mubr.f32.gmra.mrb[22].mxu0 %v4999_v48  ;;  %4042 = vmatmul.mubr.f32.gmra.mrb[26].mxu1 %v5845_v26  ;;  %v2401_v48 = vld [vmem:[%s7321_s4 + $0x58] sm:$0xff] }
 0x19a   : > { %1409 = vmatprep.mubr.f32.mxu0 %v5716_v32  ;;  %4309 = vmatpush1.bf16.msra.mxu0 %v4308_v50  ;;  %v4314_v32 = vpack.c.bf16 %v814_v12, %v813_v29  ;;  %v631_v50 = vld [vmem:[#allocation2 + $0x61] sm:$0xff]  ;;  %v632_v29 = vld [vmem:[#allocation2 + $0x69] sm:$0xff]  ;;  %v4370_v12 = vpack.c.bf16 %v2401_v48, %v2400_v44 }
 0x19b   : > { %4310 = vmatprep.subr.bf16.mxu0 %v7325_v4  ;;  %4044 = vmatprep.mubr.f32.mxu1 %v5992_v16  ;;  %v2418_v44 = vld [vmem:[%s7321_s4 + $0xe0] sm:$0xff]  ;;  %v2419_v48 = vld [vmem:[%s7321_s4 + $0xe8] sm:$0xff] }
 0x19d   : > { %1410 = vmatmul.mubr.f32.gmra.mrb[24].mxu0 %v5000_v51  ;;  %4045 = vmatmul.mubr.f32.gmra.mrb[28].mxu1 %v593_v53  ;;  %v2402_v51 = vld [vmem:[%s7321_s4 + $0x60] sm:$0xff] }
 0x19e   : > { %1414 = vmatprep.mubr.f32.mxu0 %v5727_v37  ;;  %4312 = vmatpush1.bf16.msra.mxu0 %v4311_v58  ;;  %v4317_v37 = vpack.c.bf16 %v816_v63, %v815_v49  ;;  %v599_v58 = vld [vmem:[#allocation2 + $0x60] sm:$0xff]  ;;  %v600_v49 = vld [vmem:[#allocation2 + $0x68] sm:$0xff] }
 0x19f   : > { %4313 = vmatprep.subr.bf16.mxu0 %v7325_v4  ;;  %4047 = vmatprep.mubr.f32.mxu1 %v689_v31  ;;  %v633_v63 = vld [vmem:[#allocation2 + $0x79] sm:$0xff]  ;;  %v605_v31 = vld [vmem:[#allocation2 + $0xa8] sm:$0xff] }
 0x1a1   : > { %1415 = vmatmul.mubr.f32.gmra.mrb[26].mxu0 %v5001_v17  ;;  %v2404_v17 = vld [vmem:[%s7321_s4 + $0x70] sm:$0xff] }
 0x1a2   : > { %1419 = vmatprep.mubr.f32.mxu0 %v5732_v39  ;;  %4315 = vmatpush1.bf16.msra.mxu0 %v4314_v32  ;;  %v4320_v39 = vpack.c.bf16 %v818_v24, %v817_v28  ;;  %v2403_v32 = vld [vmem:[%s7321_s4 + $0x68] sm:$0xff] }
 0x1a3   : > { %4316 = vmatprep.subr.bf16.mxu0 %v7325_v4  ;;  %v634_v28 = vld [vmem:[#allocation2 + $0x81] sm:$0xff] }
 0x1a5   : > { %1420 = vmatmul.mubr.f32.gmra.mrb[28].mxu0 %v5002_v18  ;;  %v2406_v18 = vld [vmem:[%s7321_s4 + $0x80] sm:$0xff] }
 0x1a6   : > { %1424 = vmatprep.mubr.f32.mxu0 %v5737_v36  ;;  %4318 = vmatpush1.bf16.msra.mxu0 %v4317_v37  ;;  %v5007_v36 = vld [vmem:[#allocation2 + $0xf9] sm:$0xff] }
 0x1a7   : > { %4319 = vmatprep.subr.bf16.mxu0 %v7325_v4  ;;  %v2405_v37 = vld [vmem:[%s7321_s4 + $0x78] sm:$0xff] }
 0x1a8   : > { %v4376_v24 = vpack.c.bf16 %v2405_v37, %v2404_v17  ;;  %v2520_v17 = vld [vmem:[%s7321_s4 + $0x410] sm:$0xff]  ;;  %v2521_v37 = vld [vmem:[%s7321_s4 + $0x418] sm:$0xff] }
 0x1a9   : > { %1425 = vmatmul.mubr.f32.gmra.mrb[30].mxu0 %v5003_v54  ;;  %v602_v54 = vld [vmem:[#allocation2 + $0x80] sm:$0xff] }
 0x1aa   : > { %1429 = vmatprep.mubr.f32.mxu0 %v5741_v8  ;;  %4321 = vmatpush1.bf16.msra.mxu0 %v4320_v39  ;;  %v5009_v8 = vld [vmem:[#allocation2 + $0x111] sm:$0xff]  ;;  %v2407_v39 = vld [vmem:[%s7321_s4 + $0x88] sm:$0xff] }
 0x1ab   : > { %4547 = vmatprep.subr.bf16.mxu0 %v6055_v19 }
 0x1ad   : > { %1430 = vmatmul.mubr.f32.gmra.mrb[32].mxu0 %v5004_v30  ;;  %v635_v30 = vld [vmem:[#allocation2 + $0x91] sm:$0xff] }
 0x1ae   : > { %1434 = vmatprep.mubr.f32.mxu0 %v5745_v6  ;;  %v5010_v6 = vld [vmem:[#allocation2 + $0x121] sm:$0xff] }
 0x1b1   : > { %1435 = vmatmul.mubr.f32.gmra.mrb[34].mxu0 %v5005_v33  ;;  %v4379_v33 = vpack.c.bf16 %v2407_v39, %v2406_v18  ;;  %v2134_v18 = vld [vmem:[#allocation2 + $0x1] sm:$0xff] }
 0x1b2   : > { %1439 = vmatprep.mubr.f32.mxu0 %v5749_v43  ;;  %v5011_v43 = vld [vmem:[#allocation2 + $0x129] sm:$0xff]  ;;  %v650_v39 = vld [vmem:[#allocation2 + $0x141] sm:$0xff] }
 0x1b5   : > { %1440 = vmatmul.mubr.f32.gmra.mrb[36].mxu0 %v5006_v5  ;;  %v2408_v5 = vld [vmem:[%s7321_s4 + $0x90] sm:$0xff] }
 0x1b6   : > { %1444 = vmatprep.mubr.f32.mxu0 %v5753_v38  ;;  %v5012_v38 = vld [vmem:[#allocation2 + $0x139] sm:$0xff] }
 0x1b9   : > { %1445 = vmatmul.mubr.f32.gmra.mrb[38].mxu0 %v5007_v36  ;;  %v2409_v36 = vld [vmem:[%s7321_s4 + $0x98] sm:$0xff] }
 0x1ba   : > { %1449 = vmatprep.mubr.f32.mxu0 %v5757_v7  ;;  %v5013_v7 = vld [vmem:[#allocation2 + $0x141] sm:$0xff] }
 0x1bd   : > { %1450 = vmatmul.mubr.f32.gmra.mrb[40].mxu0 %v5008_v56  ;;  %v603_v56 = vld [vmem:[#allocation2 + $0x90] sm:$0xff] }
 0x1be   : > { %1454 = vmatprep.mubr.f32.mxu0 %v5761_v41  ;;  %v5014_v41 = vld [vmem:[#allocation2 + $0x151] sm:$0xff] }
 0x1c1   : > { %1455 = vmatmul.mubr.f32.gmra.mrb[42].mxu0 %v5009_v8  ;;  %v636_v8 = vld [vmem:[#allocation2 + $0x99] sm:$0xff] }
 0x1c2   : > { %1459 = vmatprep.mubr.f32.mxu0 %v5771_v47  ;;  %v5015_v47 = vld [vmem:[#allocation2 + $0x159] sm:$0xff] }
 0x1c5   : > { %1460 = vmatmul.mubr.f32.gmra.mrb[44].mxu0 %v5010_v6  ;;  %v4382_v6 = vpack.c.bf16 %v2409_v36, %v2408_v5  ;;  %v2102_v5 = vld [vmem:[#allocation2] sm:$0xff] }
 0x1c6   : > { %1464 = vmatprep.mubr.f32.mxu0 %v5781_v52  ;;  %v5016_v52 = vld [vmem:[#allocation2 + $0x169] sm:$0xff]  ;;  %v618_v36 = vld [vmem:[#allocation2 + $0x140] sm:$0xff] }
 0x1c9   : > { %1465 = vmatmul.mubr.f32.gmra.mrb[46].mxu0 %v5011_v43  ;;  %v2410_v43 = vld [vmem:[%s7321_s4 + $0xa0] sm:$0xff] }
 0x1ca   : > { %1469 = vmatprep.mubr.f32.mxu0 %v5791_v59  ;;  %v5017_v59 = vld [vmem:[#allocation2 + $0x171] sm:$0xff] }
 0x1cd   : > { %1470 = vmatmul.mubr.f32.gmra.mrb[48].mxu0 %v5012_v38  ;;  %v2411_v38 = vld [vmem:[%s7321_s4 + $0xa8] sm:$0xff] }
 0x1ce   : > { %1474 = vmatprep.mubr.f32.mxu0 %v5801_v1  ;;  %v690_v1 = vld [vmem:[#allocation2 + $0x1a2] sm:$0xff] }
 0x1cf   : > { %4048 = vmatmul.mubr.f32.gmra.mrb[30].mxu1 %v690_v1  ;;  %v638_v1 = vld [vmem:[#allocation2 + $0xb1] sm:$0xff] }
 0x1d0   : > { %2598 = vmatprep.mubr.f32.mxu1 %v2134_v18 }
 0x1d1   : > { %1475 = vmatmul.mubr.f32.gmra.mrb[50].mxu0 %v5013_v7  ;;  %v604_v7 = vld [vmem:[#allocation2 + $0x98] sm:$0xff] }
 0x1d2   : > { %1479 = vmatprep.mubr.f32.mxu0 %v5811_v10  ;;  %v627_v10 = vld [vmem:[#allocation2 + $0x31] sm:$0xff] }
 0x1d5   : > { %1480 = vmatmul.mubr.f32.gmra.mrb[52].mxu0 %v5014_v41  ;;  %v637_v41 = vld [vmem:[#allocation2 + $0xa9] sm:$0xff] }
 0x1d6   : > { %1484 = vmatprep.mubr.f32.mxu0 %v5821_v13  ;;  %v2390_v13 = vld [vmem:[%s7321_s4] sm:$0xff] }
 0x1d9   : > { %1485 = vmatmul.mubr.f32.gmra.mrb[54].mxu0 %v5015_v47  ;;  %v4385_v47 = vpack.c.bf16 %v2411_v38, %v2410_v43  ;;  %v2524_v38 = vld [vmem:[%s7321_s4 + $0x430] sm:$0xff] }
 0x1da   : > { %1489 = vmatprep.mubr.f32.mxu0 %v5833_v0  ;;  %v2391_v0 = vld [vmem:[%s7321_s4 + $0x8] sm:$0xff] }
 0x1db   : > { %v4355_v11 = vpack.c.bf16 %v2391_v0, %v2390_v13  ;;  %v2414_v13 = vld [vmem:[%s7321_s4 + $0xc0] sm:$0xff]  ;;  %v2415_v0 = vld [vmem:[%s7321_s4 + $0xc8] sm:$0xff] }
 0x1dd   : > { %1490 = vmatmul.mubr.f32.gmra.mrb[56].mxu0 %v5016_v52  ;;  %4356 = vmatpush1.bf16.msra.mxu1 %v4355_v11  ;;  %v2412_v52 = vld [vmem:[%s7321_s4 + $0xb0] sm:$0xff]  ;;  %v4391_v11 = vpack.c.bf16 %v2415_v0, %v2414_v13  ;;  %v620_v13 = vld [vmem:[#allocation2 + $0x158] sm:$0xff] }
 0x1de   : > { %1494 = vmatprep.mubr.f32.mxu0 %v5845_v26  ;;  %v2392_v26 = vld [vmem:[%s7321_s4 + $0x10] sm:$0xff]  ;;  %4357 = vmatprep.subr.bf16.mxu1 %v7325_v4 }
 0x1e1   : > { %1495 = vmatmul.mubr.f32.gmra.mrb[58].mxu0 %v5017_v59  ;;  %v2413_v59 = vld [vmem:[%s7321_s4 + $0xb8] sm:$0xff] }
 0x1e2   : > { %1499 = vmatprep.mubr.f32.mxu0 %v5992_v16  ;;  %v4373_v16 = vpack.c.bf16 %v2403_v32, %v2402_v51  ;;  %v2420_v32 = vld [vmem:[%s7321_s4 + $0xf0] sm:$0xff] }
 0x1e5   : > { %1500 = vmatmul.mubr.f32.gmra.mrb[60].mxu0 %v5544_v55  ;;  %v2393_v55 = vld [vmem:[%s7321_s4 + $0x18] sm:$0xff] }
 0x1e6   : > { %1504 = vmatprep.mubr.f32.mxu0 %v593_v53  ;;  %v4358_v45 = vpack.c.bf16 %v2393_v55, %v2392_v26  ;;  %v601_v53 = vld [vmem:[#allocation2 + $0x78] sm:$0xff]  ;;  %v606_v26 = vld [vmem:[#allocation2 + $0xb0] sm:$0xff] }
 0x1e7   : > { %v2416_v55 = vld [vmem:[%s7321_s4 + $0xd0] sm:$0xff] }
 0x1e8   : > { %4359 = vmatpush1.bf16.msra.mxu1 %v4358_v45  ;;  %v607_v45 = vld [vmem:[#allocation2 + $0xc0] sm:$0xff] }
 0x1e9   : > { %1505 = vmatmul.mubr.f32.gmra.mrb[62].mxu0 %v5552_v22  ;;  %v628_v22 = vld [vmem:[#allocation2 + $0x39] sm:$0xff]  ;;  %4360 = vmatprep.subr.bf16.mxu1 %v7325_v4 }
 0x1ea   : > { %1574 = vmatprep.mubr.f32.mxu0 %v627_v10  ;;  %v4388_v10 = vpack.c.bf16 %v2413_v59, %v2412_v52  ;;  %v619_v52 = vld [vmem:[#allocation2 + $0x150] sm:$0xff]  ;;  %v652_v59 = vld [vmem:[#allocation2 + $0x159] sm:$0xff] }
 0x1ec   : > { %4362 = vmatpush1.bf16.msra.mxu1 %v4361_v35  ;;  %v609_v35 = vld [vmem:[#allocation2 + $0xd8] sm:$0xff] }
 0x1ed   : > { %1575 = vmatmul.mubr.f32.vlgmr.msra.gmra.mrb[0].mxu0 %v595_v40  ;;  %4363 = vmatprep.subr.bf16.mxu1 %v7325_v4  ;;  %v639_v40 = vld [vmem:[#allocation2 + $0xc1] sm:$0xff] }
 0x1ee   : > { %1579 = vmatprep.mubr.f32.mxu0 %v628_v22  ;;  %4549 = vmatpush3.bf16.msra.mxu0 %v6055_v19  ;;  %v2417_v22 = vld [vmem:[%s7321_s4 + $0xd8] sm:$0xff] }
 0x1ef   : > { %v4394_v14 = vpack.c.bf16 %v2417_v22, %v2416_v55  ;;  %v2529_v55 = vld [vmem:[%s7321_s4 + $0x458] sm:$0xff] }
 0x1f0   : > { %4365 = vmatpush1.bf16.msra.mxu1 %v4364_v23  ;;  %v645_v23 = vld [vmem:[#allocation2 + $0x109] sm:$0xff] }
 0x1f1   : > { %1580 = vmatmul.mubr.f32.gmra.mrb[2].mxu0 %v596_v15  ;;  %4366 = vmatprep.subr.bf16.mxu1 %v7325_v4  ;;  %v608_v15 = vld [vmem:[#allocation2 + $0xc8] sm:$0xff] }
 0x1f2   : > { %1584 = vmatprep.mubr.f32.mxu0 %v629_v25  ;;  %v641_v25 = vld [vmem:[#allocation2 + $0xd9] sm:$0xff] }
 0x1f4   : > { %4368 = vmatpush1.bf16.msra.mxu1 %v4367_v20  ;;  %v615_v20 = vld [vmem:[#allocation2 + $0x120] sm:$0xff] }
 0x1f5   : > { %1585 = vmatmul.mubr.f32.gmra.mrb[4].mxu0 %v597_v9  ;;  %4369 = vmatprep.subr.bf16.mxu1 %v7325_v4  ;;  %v611_v9 = vld [vmem:[#allocation2 + $0xf0] sm:$0xff] }
 0x1f6   : > { %1589 = vmatprep.mubr.f32.mxu0 %v630_v27  ;;  %v612_v27 = vld [vmem:[#allocation2 + $0xf8] sm:$0xff] }
 0x1f8   : > { %4371 = vmatpush1.bf16.msra.mxu1 %v4370_v12  ;;  %v616_v12 = vld [vmem:[#allocation2 + $0x128] sm:$0xff] }
 0x1f9   : > { %1590 = vmatmul.mubr.f32.gmra.mrb[6].mxu0 %v598_v46  ;;  %4372 = vmatprep.subr.bf16.mxu1 %v7325_v4  ;;  %v614_v46 = vld [vmem:[#allocation2 + $0x110] sm:$0xff] }
 0x1fa   : > { %1594 = vmatprep.mubr.f32.mxu0 %v631_v50  ;;  %v647_v50 = vld [vmem:[#allocation2 + $0x121] sm:$0xff] }
 0x1fc   : > { %4374 = vmatpush1.bf16.msra.mxu1 %v4373_v16 }
 0x1fd   : > { %1595 = vmatmul.mubr.f32.gmra.mrb[8].mxu0 %v599_v58  ;;  %4375 = vmatprep.subr.bf16.mxu1 %v7325_v4  ;;  %v648_v58 = vld [vmem:[#allocation2 + $0x129] sm:$0xff] }
 0x1fe   : > { %1599 = vmatprep.mubr.f32.mxu0 %v632_v29  ;;  %v4397_v29 = vpack.c.bf16 %v2419_v48, %v2418_v44  ;;  %v5019_v44 = vld [vmem:[#allocation2 + $0x189] sm:$0xff] }
 0x200   : > { %4377 = vmatpush1.bf16.msra.mxu1 %v4376_v24  ;;  %v617_v24 = vld [vmem:[#allocation2 + $0x138] sm:$0xff] }
 0x201   : > { %1600 = vmatmul.mubr.f32.gmra.mrb[10].mxu0 %v600_v49  ;;  %4378 = vmatprep.subr.bf16.mxu1 %v7325_v4  ;;  %v2421_v49 = vld [vmem:[%s7321_s4 + $0xf8] sm:$0xff] }
 0x202   : > { %1604 = vmatprep.mubr.f32.mxu0 %v633_v63  ;;  %v649_v63 = vld [vmem:[#allocation2 + $0x139] sm:$0xff] }
 0x204   : > { %4380 = vmatpush1.bf16.msra.mxu1 %v4379_v33 }
 0x205   : > { %1605 = vmatmul.mubr.f32.gmra.mrb[12].mxu0 %v601_v53  ;;  %4381 = vmatprep.subr.bf16.mxu1 %v7325_v4  ;;  %v4400_v53 = vpack.c.bf16 %v2421_v49, %v2420_v32  ;;  %v2427_v32 = vld [vmem:[%s7321_s4 + $0x128] sm:$0xff] }
 0x206   : > { %1609 = vmatprep.mubr.f32.mxu0 %v634_v28  ;;  %v6154_v28 = vpack.c.bf16 %v2521_v37, %v2520_v17  ;;  %v626_v17 = vld [vmem:[#allocation2 + $0x1a0] sm:$0xff] }
 0x208   : > { %4383 = vmatpush1.bf16.msra.mxu1 %v4382_v6  ;;  %7354 = vst [vmem:[#allocation4_spill] sm:$0xff] %v6154_v28  ;;  %4551 = vmatprep.subr.bf16.mxu0 %v6154_v28  ;;  %v2135_v6 = vld [vmem:[#allocation2 + $0x9] sm:$0xff] }
 0x209   : > { %1610 = vmatmul.mubr.f32.gmra.mrb[14].mxu0 %v602_v54  ;;  %4384 = vmatprep.subr.bf16.mxu1 %v7325_v4  ;;  %v2522_v54 = vld [vmem:[%s7321_s4 + $0x420] sm:$0xff] }
 0x20a   : > { %1614 = vmatprep.mubr.f32.mxu0 %v635_v30  ;;  %4553 = vmatpush3.bf16.msra.mxu0 %v6154_v28  ;;  %v2523_v30 = vld [vmem:[%s7321_s4 + $0x428] sm:$0xff] }
 0x20b   : > { %v6164_v33 = vpack.c.bf16 %v2523_v30, %v2522_v54  ;;  %v2430_v30 = vld [vmem:[%s7321_s4 + $0x140] sm:$0xff] }
 0x20c   : > { %4386 = vmatpush1.bf16.msra.mxu1 %v4385_v47 }
 0x20d   : > { %1615 = vmatmul.mubr.f32.gmra.mrb[16].mxu0 %v603_v56  ;;  %4387 = vmatprep.subr.bf16.mxu1 %v7325_v4  ;;  %7355 = vst [vmem:[#allocation5_spill] sm:$0xff] %v6164_v33  ;;  %v651_v56 = vld [vmem:[#allocation2 + $0x151] sm:$0xff] }
 0x20e   : > { %1619 = vmatprep.mubr.f32.mxu0 %v636_v8  ;;  %4555 = vmatprep.subr.bf16.mxu0 %v6164_v33 }
 0x20f   : > { %4557 = vmatpush3.bf16.msra.mxu0 %v6164_v33 }
 0x210   : > { %4389 = vmatpush1.bf16.msra.mxu1 %v4388_v10 }
 0x211   : > { %1620 = vmatmul.mubr.f32.gmra.mrb[18].mxu0 %v604_v7  ;;  %4390 = vmatprep.subr.bf16.mxu1 %v7325_v4  ;;  %v2525_v7 = vld [vmem:[%s7321_s4 + $0x438] sm:$0xff] }
 0x212   : > { %1624 = vmatprep.mubr.f32.mxu0 %v637_v41  ;;  %v2103_v41 = vld [vmem:[#allocation2 + $0x8] sm:$0xff]  ;;  %v6179_v47 = vpack.c.bf16 %v2525_v7, %v2524_v38  ;;  %v2432_v38 = vld [vmem:[%s7321_s4 + $0x150] sm:$0xff]  ;;  %v2433_v7 = vld [vmem:[%s7321_s4 + $0x158] sm:$0xff] }
 0x214   : > { %4392 = vmatpush1.bf16.msra.mxu1 %v4391_v11  ;;  %7356 = vst [vmem:[#allocation6_spill] sm:$0xff] %v6179_v47  ;;  %4559 = vmatprep.subr.bf16.mxu0 %v6179_v47  ;;  %v2528_v11 = vld [vmem:[%s7321_s4 + $0x450] sm:$0xff] }
 0x215   : > { %1625 = vmatmul.mubr.f32.gmra.mrb[20].mxu0 %v605_v31  ;;  %4393 = vmatprep.subr.bf16.mxu1 %v7325_v4  ;;  %v2526_v31 = vld [vmem:[%s7321_s4 + $0x440] sm:$0xff]  ;;  %v6203_v22 = vpack.c.bf16 %v2529_v55, %v2528_v11  ;;  %v2436_v55 = vld [vmem:[%s7321_s4 + $0x170] sm:$0xff] }
 0x216   : > { %1629 = vmatprep.mubr.f32.mxu0 %v638_v1  ;;  %4561 = vmatpush3.bf16.msra.mxu0 %v6179_v47  ;;  %v2527_v1 = vld [vmem:[%s7321_s4 + $0x448] sm:$0xff] }
 0x217   : > { %v6189_v10 = vpack.c.bf16 %v2527_v1, %v2526_v31  ;;  %7358 = vst [vmem:[#allocation8_spill] sm:$0xff] %v6203_v22  ;;  %v2434_v31 = vld [vmem:[%s7321_s4 + $0x160] sm:$0xff]  ;;  %v2435_v1 = vld [vmem:[%s7321_s4 + $0x168] sm:$0xff] }
 0x218   : > { %4395 = vmatpush1.bf16.msra.mxu1 %v4394_v14  ;;  %v621_v14 = vld [vmem:[#allocation2 + $0x168] sm:$0xff] }
 0x219   : > { %1630 = vmatmul.mubr.f32.gmra.mrb[22].mxu0 %v606_v26  ;;  %4396 = vmatprep.subr.bf16.mxu1 %v7325_v4  ;;  %7357 = vst [vmem:[#allocation7_spill] sm:$0xff] %v6189_v10  ;;  %v653_v26 = vld [vmem:[#allocation2 + $0x169] sm:$0xff] }
 0x21a   : > { %1634 = vmatprep.mubr.f32.mxu0 %v639_v40  ;;  %4563 = vmatprep.subr.bf16.mxu0 %v6189_v10 }
 0x21b   : > { %4565 = vmatpush3.bf16.msra.mxu0 %v6189_v10 }
 0x21c   : > { %4398 = vmatpush1.bf16.msra.mxu1 %v4397_v29  ;;  %4567 = vmatprep.subr.bf16.mxu0 %v6203_v22 }
 0x21d   : > { %1635 = vmatmul.mubr.f32.gmra.mrb[24].mxu0 %v607_v45  ;;  %4399 = vmatprep.subr.bf16.mxu1 %v7325_v4  ;;  %v2422_v45 = vld [vmem:[%s7321_s4 + $0x100] sm:$0xff] }
 0x21e   : > { %1639 = vmatprep.mubr.f32.mxu0 %v640_v34  ;;  %v2423_v34 = vld [vmem:[%s7321_s4 + $0x108] sm:$0xff] }
 0x21f   : > { %4569 = vmatpush3.bf16.msra.mxu0 %v6203_v22 }
 0x220   : > { %4401 = vmatpush1.bf16.msra.mxu1 %v4400_v53  ;;  %v2428_v53 = vld [vmem:[%s7321_s4 + $0x130] sm:$0xff] }
 0x221   : > { %1640 = vmatmul.mubr.f32.gmra.mrb[26].mxu0 %v608_v15  ;;  %4402 = vmatprep.subr.bf16.mxu1 %v7325_v4  ;;  %v4403_v15 = vpack.c.bf16 %v2423_v34, %v2422_v45  ;;  %v2437_v45 = vld [vmem:[%s7321_s4 + $0x178] sm:$0xff] }
 0x222   : > { %1644 = vmatprep.mubr.f32.mxu0 %v641_v25  ;;  %v654_v25 = vld [vmem:[#allocation2 + $0x171] sm:$0xff]  ;;  %v4424_v34 = vpack.c.bf16 %v2437_v45, %v2436_v55  ;;  %v6388_v45 = vld [vmem:[%s7319_s2] ss:$0 sm:$0xff] }
 0x223   : > { %2599 = vmatmul.mubr.f32.vlgmr.msra.gmra.mrb[32].mxu1 %v2102_v5  ;;  %v2431_v5 = vld [vmem:[%s7321_s4 + $0x148] sm:$0xff] }
 0x224   : > { %2603 = vmatprep.mubr.f32.mxu1 %v2135_v6  ;;  %4404 = vmatpush1.bf16.msra.mxu1 %v4403_v15 }
 0x225   : > { %1645 = vmatmul.mubr.f32.gmra.mrb[28].mxu0 %v609_v35  ;;  %v2530_v35 = vld [vmem:[%s7321_s4 + $0x460] sm:$0xff]  ;;  %4405 = vmatprep.subr.bf16.mxu1 %v7325_v4 }
 0x226   : > { %1649 = vmatprep.mubr.f32.mxu0 %v642_v21  ;;  %v2531_v21 = vld [vmem:[%s7321_s4 + $0x468] sm:$0xff] }
 0x227   : > { %2604 = vmatmul.mubr.f32.gmra.mrb[34].mxu1 %v2103_v41  ;;  %v4418_v41 = vpack.c.bf16 %v2433_v7, %v2432_v38  ;;  %v2448_v7 = vld [vmem:[%s7321_s4 + $0x1d0] sm:$0xff] }
 0x229   : > { %1650 = vmatmul.mubr.f32.gmra.mrb[30].mxu0 %v610_v61  ;;  %v6219_v61 = vpack.c.bf16 %v2531_v21, %v2530_v35  ;;  %v2439_v35 = vld [vmem:[%s7321_s4 + $0x188] sm:$0xff] }
 0x22a   : > { %1654 = vmatprep.mubr.f32.mxu0 %v643_v62  ;;  %v622_v62 = vld [vmem:[#allocation2 + $0x170] sm:$0xff] }
 0x22b   : > { %7359 = vst [vmem:[#allocation9_spill] sm:$0xff] %v6219_v61  ;;  %4571 = vmatprep.subr.bf16.mxu0 %v6219_v61 }
 0x22c   : > { %4573 = vmatpush3.bf16.msra.mxu0 %v6219_v61 }
 0x22d   : > { %1655 = vmatmul.mubr.f32.gmra.mrb[32].mxu0 %v611_v9 }
 0x22e   : > { %1659 = vmatprep.mubr.f32.mxu0 %v644_v2 }
 0x231   : > { %1660 = vmatmul.mubr.f32.gmra.mrb[34].mxu0 %v612_v27  ;;  %v2532_v27 = vld [vmem:[%s7321_s4 + $0x470] sm:$0xff] }
 0x232   : > { %1664 = vmatprep.mubr.f32.mxu0 %v645_v23  ;;  %v2533_v23 = vld [vmem:[%s7321_s4 + $0x478] sm:$0xff] }
 0x235   : > { %1665 = vmatmul.mubr.f32.gmra.mrb[36].mxu0 %v613_v3  ;;  %v6234_v3 = vpack.c.bf16 %v2533_v23, %v2532_v27  ;;  %v2440_v23 = vld [vmem:[%s7321_s4 + $0x190] sm:$0xff] }
 0x236   : > { %1669 = vmatprep.mubr.f32.mxu0 %v646_v42  ;;  %v2424_v42 = vld [vmem:[%s7321_s4 + $0x110] sm:$0xff] }
 0x237   : > { %7360 = vst [vmem:[#allocation10_spill] sm:$0xff] %v6234_v3  ;;  %4575 = vmatprep.subr.bf16.mxu0 %v6234_v3 }
 0x238   : > { %v6137_v51 = vpop.f32.mrb[0].mxu1  ;;  %4577 = vmatpush3.bf16.msra.mxu0 %v6234_v3 }
 0x239   : > { %1670 = vmatmul.mubr.f32.gmra.mrb[38].mxu0 %v614_v46  ;;  %v6146_v16 = vpop.f32.mrb[1].mxu1  ;;  %v2425_v46 = vld [vmem:[%s7321_s4 + $0x118] sm:$0xff] }
 0x23a   : > { %1674 = vmatprep.mubr.f32.mxu0 %v647_v50  ;;  %v5018_v50 = vld [vmem:[#allocation2 + $0x181] sm:$0xff] }
 0x23c   : > { %v6168_v8 = vpop.f32.mrb[2].mxu1 }
 0x23d   : > { %1675 = vmatmul.mubr.f32.gmra.mrb[40].mxu0 %v615_v20  ;;  %v6171_v43 = vpop.f32.mrb[3].mxu1  ;;  %v4406_v20 = vpack.c.bf16 %v2425_v46, %v2424_v42  ;;  %v2441_v42 = vld [vmem:[%s7321_s4 + $0x198] sm:$0xff] }
 0x23e   : > { %1679 = vmatprep.mubr.f32.mxu0 %v648_v58  ;;  %v657_v58 = vld [vmem:[#allocation2 + $0x199] sm:$0xff]  ;;  %v4430_v46 = vpack.c.bf16 %v2441_v42, %v2440_v23  ;;  %v2452_v42 = vld [vmem:[%s7321_s4 + $0x1f0] sm:$0xff] }
 0x23f   : > { %4407 = vmatpush1.bf16.msra.mxu1 %v4406_v20 }
 0x240   : > { %v6192_v0 = vpop.f32.mrb[4].mxu1  ;;  %4408 = vmatprep.subr.bf16.mxu1 %v7325_v4 }
 0x241   : > { %1680 = vmatmul.mubr.f32.gmra.mrb[42].mxu0 %v616_v12  ;;  %v6195_v40 = vpop.f32.mrb[5].mxu1  ;;  %v2426_v12 = vld [vmem:[%s7321_s4 + $0x120] sm:$0xff] }
 0x242   : > { %1684 = vmatprep.mubr.f32.mxu0 %v649_v63  ;;  %v4409_v49 = vpack.c.bf16 %v2427_v32, %v2426_v12  ;;  %v658_v63 = vld [vmem:[#allocation2 + $0x1a1] sm:$0xff] }
 0x244   : > { %v6223_v9 = vpop.f32.mrb[6].mxu1  ;;  %4410 = vmatpush1.bf16.msra.mxu1 %v4409_v49  ;;  %v2444_v49 = vld [vmem:[%s7321_s4 + $0x1b0] sm:$0xff] }
 0x245   : > { %1685 = vmatmul.mubr.f32.gmra.mrb[44].mxu0 %v617_v24  ;;  %v6226_v2 = vpop.f32.mrb[7].mxu1  ;;  %4411 = vmatprep.subr.bf16.mxu1 %v7325_v4  ;;  %v2429_v24 = vld [vmem:[%s7321_s4 + $0x138] sm:$0xff] }
 0x246   : > { %1689 = vmatprep.mubr.f32.mxu0 %v650_v39  ;;  %v4412_v18 = vpack.c.bf16 %v2429_v24, %v2428_v53 }
 0x248   : > { %v6246_v48 = vpop.f32.mrb[8].mxu1  ;;  %4413 = vmatpush1.bf16.msra.mxu1 %v4412_v18  ;;  %v2446_v18 = vld [vmem:[%s7321_s4 + $0x1c0] sm:$0xff] }
 0x249   : > { %1690 = vmatmul.mubr.f32.gmra.mrb[46].mxu0 %v618_v36  ;;  %v6248_v29 = vpop.f32.mrb[9].mxu1  ;;  %4414 = vmatprep.subr.bf16.mxu1 %v7325_v4  ;;  %v4415_v36 = vpack.c.bf16 %v2431_v5, %v2430_v30  ;;  %v2447_v30 = vld [vmem:[%s7321_s4 + $0x1c8] sm:$0xff] }
 0x24a   : > { %1694 = vmatprep.mubr.f32.mxu0 %v651_v56  ;;  %v4439_v5 = vpack.c.bf16 %v2447_v30, %v2446_v18 }
 0x24c   : > { %v6258_v37 = vpop.f32.mrb[10].mxu1  ;;  %4416 = vmatpush1.bf16.msra.mxu1 %v4415_v36 }
 0x24d   : > { %1695 = vmatmul.mubr.f32.gmra.mrb[48].mxu0 %v619_v52  ;;  %4417 = vmatprep.subr.bf16.mxu1 %v7325_v4 }
 0x24e   : > { %1699 = vmatprep.mubr.f32.mxu0 %v652_v59 }
 0x250   : > { %4419 = vmatpush1.bf16.msra.mxu1 %v4418_v41  ;;  %v2449_v41 = vld [vmem:[%s7321_s4 + $0x1d8] sm:$0xff] }
 0x251   : > { %1700 = vmatmul.mubr.f32.gmra.mrb[50].mxu0 %v620_v13  ;;  %4420 = vmatprep.subr.bf16.mxu1 %v7325_v4  ;;  %v4421_v13 = vpack.c.bf16 %v2435_v1, %v2434_v31  ;;  %v4442_v31 = vpack.c.bf16 %v2449_v41, %v2448_v7  ;;  %v2450_v1 = vld [vmem:[%s7321_s4 + $0x1e0] sm:$0xff] }
 0x252   : > { %1704 = vmatprep.mubr.f32.mxu0 %v653_v26 }
 0x254   : > { %4422 = vmatpush1.bf16.msra.mxu1 %v4421_v13  ;;  %v2451_v13 = vld [vmem:[%s7321_s4 + $0x1e8] sm:$0xff] }
 0x255   : > { %1705 = vmatmul.mubr.f32.gmra.mrb[52].mxu0 %v621_v14  ;;  %4423 = vmatprep.subr.bf16.mxu1 %v7325_v4 }
 0x256   : > { %1709 = vmatprep.mubr.f32.mxu0 %v654_v25  ;;  %v2438_v25 = vld [vmem:[%s7321_s4 + $0x180] sm:$0xff] }
 0x257   : > { %v4427_v21 = vpack.c.bf16 %v2439_v35, %v2438_v25 }
 0x258   : > { %4425 = vmatpush1.bf16.msra.mxu1 %v4424_v34  ;;  %v4445_v34 = vpack.c.bf16 %v2451_v13, %v2450_v1 }
 0x259   : > { %1710 = vmatmul.mubr.f32.gmra.mrb[54].mxu0 %v622_v62  ;;  %4426 = vmatprep.subr.bf16.mxu1 %v7325_v4 }
 0x25a   : > { %1714 = vmatprep.mubr.f32.mxu0 %v5018_v50 }
 0x25c   : > { %4428 = vmatpush1.bf16.msra.mxu1 %v4427_v21  ;;  %v6394_v21 = vld [vmem:[%s7320_s3] ss:$0 sm:$0xff] }
 0x25d   : > { %1715 = vmatmul.mubr.f32.gmra.mrb[56].mxu0 %v5823_v60  ;;  %v625_v60 = vld [vmem:[#allocation2 + $0x198] sm:$0xff]  ;;  %4429 = vmatprep.subr.bf16.mxu1 %v7325_v4 }
 0x25e   : > { %1719 = vmatprep.mubr.f32.mxu0 %v5019_v44  ;;  %v2442_v44 = vld [vmem:[%s7321_s4 + $0x1a0] sm:$0xff] }
 0x260   : > { %4431 = vmatpush1.bf16.msra.mxu1 %v4430_v46  ;;  %v2453_v46 = vld [vmem:[%s7321_s4 + $0x1f8] sm:$0xff] }
 0x261   : > { %1720 = vmatmul.mubr.f32.gmra.mrb[58].mxu0 %v5835_v57  ;;  %v6260_v57 = vpop.f32.mrb[11].mxu1  ;;  %4432 = vmatprep.subr.bf16.mxu1 %v7325_v4 }
 0x262   : > { %1724 = vmatprep.mubr.f32.mxu0 %v657_v58  ;;  %v6269_v39 = vpop.f32.mrb[12].mxu1  ;;  %v2443_v58 = vld [vmem:[%s7321_s4 + $0x1a8] sm:$0xff] }
 0x263   : > { %v6271_v54 = vpop.f32.mrb[13].mxu1  ;;  %v4433_v12 = vpack.c.bf16 %v2443_v58, %v2442_v44  ;;  %v4448_v44 = vpack.c.bf16 %v2453_v46, %v2452_v42 }
 0x264   : > { %v6280_v56 = vpop.f32.mrb[14].mxu1 }
 0x265   : > { %1725 = vmatmul.mubr.f32.gmra.mrb[60].mxu0 %v625_v60  ;;  %v6282_v6 = vpop.f32.mrb[15].mxu1  ;;  %4434 = vmatpush1.bf16.msra.mxu1 %v4433_v12 }
 0x266   : > { %1729 = vmatprep.mubr.f32.mxu0 %v658_v63  ;;  %v6291_v52 = vpop.f32.mrb[16].mxu1  ;;  %4435 = vmatprep.subr.bf16.mxu1 %v7325_v4  ;;  %v2445_v63 = vld [vmem:[%s7321_s4 + $0x1b8] sm:$0xff] }
 0x267   : > { %v6293_v59 = vpop.f32.mrb[17].mxu1 }
 0x268   : > { %v6302_v26 = vpop.f32.mrb[18].mxu1 }
 0x269   : > { %1730 = vmatmul.mubr.f32.gmra.mrb[62].mxu0 %v626_v17  ;;  %v6304_v11 = vpop.f32.mrb[19].mxu1  ;;  %v4436_v17 = vpack.c.bf16 %v2445_v63, %v2444_v49 }
 0x26a   : > { %v6313_v14 = vpop.f32.mrb[20].mxu1 }
 0x26b   : > { %v6315_v15 = vpop.f32.mrb[21].mxu1  ;;  %4437 = vmatpush1.bf16.msra.mxu1 %v4436_v17 }
 0x26c   : > { %v6324_v62 = vpop.f32.mrb[22].mxu1  ;;  %4438 = vmatprep.subr.bf16.mxu1 %v7325_v4 }
 0x26d   : > { %v6326_v27 = vpop.f32.mrb[23].mxu1 }
 0x26e   : > { %v6335_v50 = vpop.f32.mrb[24].mxu1 }
 0x26f   : > { %v6337_v20 = vpop.f32.mrb[25].mxu1  ;;  %4440 = vmatpush1.bf16.msra.mxu1 %v4439_v5 }
 0x270   : > { %v6346_v32 = vpop.f32.mrb[26].mxu1  ;;  %4441 = vmatprep.subr.bf16.mxu1 %v7325_v4 }
 0x271   : > { %v6348_v60 = vpop.f32.mrb[27].mxu1 }
 0x272   : > { %v6357_v53 = vpop.f32.mrb[28].mxu1 }
 0x273   : > { %v6359_v24 = vpop.f32.mrb[29].mxu1  ;;  %4443 = vmatpush1.bf16.msra.mxu1 %v4442_v31 }
 0x274   : > { %4444 = vmatprep.subr.bf16.mxu1 %v7325_v4 }
 0x277   : > { %4446 = vmatpush1.bf16.msra.mxu1 %v4445_v34 }
 0x278   : > { %4447 = vmatprep.subr.bf16.mxu1 %v7325_v4 }
 0x27b   : > { %4449 = vmatpush1.bf16.msra.mxu1 %v4448_v44 }
 0x27c   : > { %4450 = vmatprep.subr.bf16.mxu1 %v7325_v4 }
 0x2a2   : > { %v6368_v36 = vpop.f32.mrb[30].mxu1 }
 0x2a3   : > { %v6370_v38 = vpop.f32.mrb[31].mxu1 }
 0x2c0   : > { %v1576_v55 = vpop.f32.mrb[0].mxu0 }
 0x2c1   : > { %v1802_v25 = vadd.f32 %v6146_v16, %v1576_v55  ;;  %v1578_v35 = vpop.f32.mrb[1].mxu0 }
 0x2c3   : > { %v1967_v23 = vmul.f32 %v6388_v45, %v1802_v25 }
 0x2c4   : > { %v1581_v16 = vpop.f32.mrb[2].mxu0 }
 0x2c5   : > { %v2006_v58 = vadd.f32 %v6394_v21, %v1967_v23  ;;  %v1807_v12 = vadd.f32 %v6137_v51, %v1581_v16  ;;  %v1583_v49 = vpop.f32.mrb[3].mxu0 }
 0x2c7   : > { %v2038_v63 = vmax.f32 %v2006_v58, 0.0  ;;  %v1968_v17 = vmul.f32 %v6388_v45, %v1807_v12 }
 0x2c8   : > { %v1586_v18 = vpop.f32.mrb[4].mxu0 }
 0x2c9   : > { %2070 = vst [vmem:[#allocation2 + $0x19] sm:$0xff] %v2038_v63  ;;  %v2007_v30 = vadd.f32 %v6394_v21, %v1968_v17  ;;  %v1812_v5 = vadd.f32 %v6171_v43, %v1586_v18  ;;  %v1588_v7 = vpop.f32.mrb[5].mxu0  ;;  %2608 = vmatprep.mubr.f32.mxu1 %v2038_v63 }
 0x2cb   : > { %v2039_v41 = vmax.f32 %v2007_v30, 0.0  ;;  %v1969_v31 = vmul.f32 %v6388_v45, %v1812_v5 }
 0x2cc   : > { %v1591_v1 = vpop.f32.mrb[6].mxu0 }
 0x2cd   : > { %2071 = vst [vmem:[#allocation2 + $0x21] sm:$0xff] %v2039_v41  ;;  %v2008_v51 = vadd.f32 %v6394_v21, %v1969_v31  ;;  %v1817_v13 = vadd.f32 %v6168_v8, %v1591_v1  ;;  %v1593_v55 = vpop.f32.mrb[7].mxu0 }
 0x2cf   : > { %v2040_v34 = vmax.f32 %v2008_v51, 0.0  ;;  %v1970_v25 = vmul.f32 %v6388_v45, %v1817_v13 }
 0x2d0   : > { %v1596_v35 = vpop.f32.mrb[8].mxu0  ;;  %v6414_v23 = vld [vmem:[#allocation2 + $0x18] sm:$0xff] }
 0x2d1   : > { %2072 = vst [vmem:[#allocation2 + $0x31] sm:$0xff] %v2040_v34  ;;  %v2009_v43 = vadd.f32 %v6394_v21, %v1970_v25  ;;  %v1822_v42 = vadd.f32 %v6195_v40, %v1596_v35  ;;  %v1598_v46 = vpop.f32.mrb[9].mxu0  ;;  %2609 = vmatmul.mubr.f32.gmra.mrb[36].mxu1 %v6414_v23 }
 0x2d2   : > { %2613 = vmatprep.mubr.f32.mxu1 %v2039_v41 }
 0x2d3   : > { %v2041_v16 = vmax.f32 %v2009_v43, 0.0  ;;  %v1971_v44 = vmul.f32 %v6388_v45, %v1822_v42 }
 0x2d4   : > { %v1601_v8 = vpop.f32.mrb[10].mxu0  ;;  %v6420_v58 = vld [vmem:[#allocation2 + $0x20] sm:$0xff] }
 0x2d5   : > { %2073 = vst [vmem:[#allocation2 + $0x39] sm:$0xff] %v2041_v16  ;;  %v2010_v12 = vadd.f32 %v6394_v21, %v1971_v44  ;;  %v1827_v49 = vadd.f32 %v6192_v0, %v1601_v8  ;;  %v1603_v63 = vpop.f32.mrb[11].mxu0  ;;  %2614 = vmatmul.mubr.f32.gmra.mrb[38].mxu1 %v6420_v58 }
 0x2d6   : > { %2618 = vmatprep.mubr.f32.mxu1 %v2040_v34 }
 0x2d7   : > { %v2042_v40 = vmax.f32 %v2010_v12, 0.0  ;;  %v1972_v17 = vmul.f32 %v6388_v45, %v1827_v49 }
 0x2d8   : > { %v1606_v18 = vpop.f32.mrb[12].mxu0  ;;  %v6426_v30 = vld [vmem:[#allocation2 + $0x30] sm:$0xff] }
 0x2d9   : > { %2074 = vst [vmem:[#allocation2 + $0x49] sm:$0xff] %v2042_v40  ;;  %v2011_v5 = vadd.f32 %v6394_v21, %v1972_v17  ;;  %v1832_v7 = vadd.f32 %v6226_v2, %v1606_v18  ;;  %v1608_v41 = vpop.f32.mrb[13].mxu0  ;;  %2619 = vmatmul.mubr.f32.gmra.mrb[40].mxu1 %v6426_v30 }
 0x2da   : > { %2623 = vmatprep.mubr.f32.mxu1 %v2041_v16 }
 0x2db   : > { %v2043_v0 = vmax.f32 %v2011_v5, 0.0  ;;  %v1973_v31 = vmul.f32 %v6388_v45, %v1832_v7 }
 0x2dc   : > { %v1611_v1 = vpop.f32.mrb[14].mxu0  ;;  %v6432_v51 = vld [vmem:[#allocation2 + $0x32] sm:$0xff]  ;;  %v6436_v55 = vld [vmem:[#allocation2 + $0x3a] sm:$0xff] }
 0x2dd   : > { %v6434_v13 = vld [vmem:[#allocation2 + $0x38] sm:$0xff]  ;;  %2075 = vst [vmem:[#allocation2 + $0x51] sm:$0xff] %v2043_v0  ;;  %v2012_v34 = vadd.f32 %v6394_v21, %v1973_v31  ;;  %v1837_v25 = vadd.f32 %v6223_v9, %v1611_v1  ;;  %v1613_v2 = vpop.f32.mrb[15].mxu0  ;;  %4082 = vmatprep.mubr.f32.mxu0 %v6432_v51 }
 0x2de   : > { %2624 = vmatmul.mubr.f32.gmra.mrb[42].mxu1 %v6434_v13  ;;  %4083 = vmatmul.mubr.f32.vlgmr.msra.gmra.mrb[64].mxu0 %v6436_v55 }
 0x2df   : > { %2628 = vmatprep.mubr.f32.mxu1 %v2042_v40  ;;  %v2044_v35 = vmax.f32 %v2012_v34, 0.0  ;;  %v1974_v43 = vmul.f32 %v6388_v45, %v1837_v25 }
 0x2e0   : > { %v1616_v42 = vpop.f32.mrb[16].mxu0  ;;  %v6444_v46 = vld [vmem:[#allocation2 + $0x48] sm:$0xff] }
 0x2e1   : > { %2076 = vst [vmem:[#allocation2 + $0x61] sm:$0xff] %v2044_v35  ;;  %v2013_v16 = vadd.f32 %v6394_v21, %v1974_v43  ;;  %v1842_v44 = vadd.f32 %v6248_v29, %v1616_v42  ;;  %v1618_v9 = vpop.f32.mrb[17].mxu0 }
 0x2e2   : > { %2629 = vmatmul.mubr.f32.gmra.mrb[44].mxu1 %v6444_v46 }
 0x2e3   : > { %2633 = vmatprep.mubr.f32.mxu1 %v2043_v0  ;;  %v2045_v8 = vmax.f32 %v2013_v16, 0.0  ;;  %v1975_v12 = vmul.f32 %v6388_v45, %v1842_v44 }
 0x2e4   : > { %v1621_v49 = vpop.f32.mrb[18].mxu0  ;;  %v6450_v63 = vld [vmem:[#allocation2 + $0x4a] sm:$0xff]  ;;  %v6454_v17 = vld [vmem:[#allocation2 + $0x52] sm:$0xff] }
 0x2e5   : > { %v6452_v40 = vld [vmem:[#allocation2 + $0x50] sm:$0xff]  ;;  %2077 = vst [vmem:[#allocation2 + $0x69] sm:$0xff] %v2045_v8  ;;  %v2014_v18 = vadd.f32 %v6394_v21, %v1975_v12  ;;  %v1847_v5 = vadd.f32 %v6246_v48, %v1621_v49  ;;  %v1623_v29 = vpop.f32.mrb[19].mxu0  ;;  %4085 = vmatprep.mubr.f32.mxu0 %v6450_v63 }
 0x2e6   : > { %2634 = vmatmul.mubr.f32.gmra.mrb[46].mxu1 %v6452_v40  ;;  %4086 = vmatmul.mubr.f32.gmra.mrb[66].mxu0 %v6454_v17 }
 0x2e7   : > { %2638 = vmatprep.mubr.f32.mxu1 %v2044_v35  ;;  %v2046_v7 = vmax.f32 %v2014_v18, 0.0  ;;  %v1976_v41 = vmul.f32 %v6388_v45, %v1847_v5 }
 0x2e8   : > { %v1626_v0 = vpop.f32.mrb[20].mxu0  ;;  %v6462_v31 = vld [vmem:[#allocation2 + $0x60] sm:$0xff] }
 0x2e9   : > { %2078 = vst [vmem:[#allocation2 + $0x79] sm:$0xff] %v2046_v7  ;;  %v2015_v1 = vadd.f32 %v6394_v21, %v1976_v41  ;;  %v1852_v34 = vadd.f32 %v6260_v57, %v1626_v0  ;;  %v1628_v48 = vpop.f32.mrb[21].mxu0 }
 0x2ea   : > { %2639 = vmatmul.mubr.f32.gmra.mrb[48].mxu1 %v6462_v31 }
 0x2eb   : > { %2643 = vmatprep.mubr.f32.mxu1 %v2045_v8  ;;  %v2047_v25 = vmax.f32 %v2015_v1, 0.0  ;;  %v1977_v2 = vmul.f32 %v6388_v45, %v1852_v34 }
 0x2ec   : > { %v1631_v43 = vpop.f32.mrb[22].mxu0  ;;  %v6468_v35 = vld [vmem:[#allocation2 + $0x62] sm:$0xff]  ;;  %v6472_v16 = vld [vmem:[#allocation2 + $0x6a] sm:$0xff] }
 0x2ed   : > { %v6470_v42 = vld [vmem:[#allocation2 + $0x68] sm:$0xff]  ;;  %2079 = vst [vmem:[#allocation2 + $0x81] sm:$0xff] %v2047_v25  ;;  %v2016_v44 = vadd.f32 %v6394_v21, %v1977_v2  ;;  %v1857_v9 = vadd.f32 %v6258_v37, %v1631_v43  ;;  %v1633_v57 = vpop.f32.mrb[23].mxu0  ;;  %4088 = vmatprep.mubr.f32.mxu0 %v6468_v35 }
 0x2ee   : > { %2644 = vmatmul.mubr.f32.gmra.mrb[50].mxu1 %v6470_v42  ;;  %4089 = vmatmul.mubr.f32.gmra.mrb[68].mxu0 %v6472_v16 }
 0x2ef   : > { %2648 = vmatprep.mubr.f32.mxu1 %v2046_v7  ;;  %v2048_v8 = vmax.f32 %v2016_v44, 0.0  ;;  %v1978_v12 = vmul.f32 %v6388_v45, %v1857_v9 }
 0x2f0   : > { %v1636_v49 = vpop.f32.mrb[24].mxu0  ;;  %v6480_v18 = vld [vmem:[#allocation2 + $0x78] sm:$0xff] }
 0x2f1   : > { %2080 = vst [vmem:[#allocation2 + $0x91] sm:$0xff] %v2048_v8  ;;  %v2017_v5 = vadd.f32 %v6394_v21, %v1978_v12  ;;  %v1862_v29 = vadd.f32 %v6271_v54, %v1636_v49  ;;  %v1638_v37 = vpop.f32.mrb[25].mxu0 }
 0x2f2   : > { %2649 = vmatmul.mubr.f32.gmra.mrb[52].mxu1 %v6480_v18 }
 0x2f3   : > { %2653 = vmatprep.mubr.f32.mxu1 %v2047_v25  ;;  %v2049_v41 = vmax.f32 %v2017_v5, 0.0  ;;  %v1979_v0 = vmul.f32 %v6388_v45, %v1862_v29 }
 0x2f4   : > { %v1641_v1 = vpop.f32.mrb[26].mxu0  ;;  %v6486_v7 = vld [vmem:[#allocation2 + $0x7a] sm:$0xff]  ;;  %v6490_v48 = vld [vmem:[#allocation2 + $0x82] sm:$0xff] }
 0x2f5   : > { %v6488_v34 = vld [vmem:[#allocation2 + $0x80] sm:$0xff]  ;;  %2081 = vst [vmem:[#allocation2 + $0x99] sm:$0xff] %v2049_v41  ;;  %v2018_v2 = vadd.f32 %v6394_v21, %v1979_v0  ;;  %v1867_v43 = vadd.f32 %v6269_v39, %v1641_v1  ;;  %v1643_v54 = vpop.f32.mrb[27].mxu0  ;;  %4091 = vmatprep.mubr.f32.mxu0 %v6486_v7 }
 0x2f6   : > { %2654 = vmatmul.mubr.f32.gmra.mrb[54].mxu1 %v6488_v34  ;;  %4092 = vmatmul.mubr.f32.gmra.mrb[70].mxu0 %v6490_v48 }
 0x2f7   : > { %2658 = vmatprep.mubr.f32.mxu1 %v2048_v8  ;;  %v2050_v25 = vmax.f32 %v2018_v2, 0.0  ;;  %v1980_v44 = vmul.f32 %v6388_v45, %v1867_v43 }
 0x2f8   : > { %v1646_v9 = vpop.f32.mrb[28].mxu0  ;;  %v6498_v57 = vld [vmem:[#allocation2 + $0x90] sm:$0xff] }
 0x2f9   : > { %2082 = vst [vmem:[#allocation2 + $0xa9] sm:$0xff] %v2050_v25  ;;  %v2019_v12 = vadd.f32 %v6394_v21, %v1980_v44  ;;  %v1872_v49 = vadd.f32 %v6282_v6, %v1646_v9  ;;  %v1648_v39 = vpop.f32.mrb[29].mxu0 }
 0x2fa   : > { %2659 = vmatmul.mubr.f32.gmra.mrb[56].mxu1 %v6498_v57 }
 0x2fb   : > { %2663 = vmatprep.mubr.f32.mxu1 %v2049_v41  ;;  %v2051_v5 = vmax.f32 %v2019_v12, 0.0  ;;  %v1981_v29 = vmul.f32 %v6388_v45, %v1872_v49 }
 0x2fc   : > { %v1651_v37 = vpop.f32.mrb[30].mxu0  ;;  %v6504_v8 = vld [vmem:[#allocation2 + $0x92] sm:$0xff]  ;;  %v6508_v1 = vld [vmem:[#allocation2 + $0x9a] sm:$0xff] }
 0x2fd   : > { %v6506_v0 = vld [vmem:[#allocation2 + $0x98] sm:$0xff]  ;;  %2083 = vst [vmem:[#allocation2 + $0xb1] sm:$0xff] %v2051_v5  ;;  %v2020_v2 = vadd.f32 %v6394_v21, %v1981_v29  ;;  %v1877_v43 = vadd.f32 %v6280_v56, %v1651_v37  ;;  %v1653_v6 = vpop.f32.mrb[31].mxu0  ;;  %4094 = vmatprep.mubr.f32.mxu0 %v6504_v8 }
 0x2fe   : > { %2664 = vmatmul.mubr.f32.gmra.mrb[58].mxu1 %v6506_v0  ;;  %4095 = vmatmul.mubr.f32.gmra.mrb[72].mxu0 %v6508_v1 }
 0x2ff   : > { %2668 = vmatprep.mubr.f32.mxu1 %v2050_v25  ;;  %v2052_v41 = vmax.f32 %v2020_v2, 0.0  ;;  %v1982_v54 = vmul.f32 %v6388_v45, %v1877_v43 }
 0x300   : > { %v1656_v44 = vpop.f32.mrb[32].mxu0  ;;  %v6516_v9 = vld [vmem:[#allocation2 + $0xa8] sm:$0xff] }
 0x301   : > { %2084 = vst [vmem:[#allocation2 + $0xc1] sm:$0xff] %v2052_v41  ;;  %v2021_v12 = vadd.f32 %v6394_v21, %v1982_v54  ;;  %v1882_v49 = vadd.f32 %v6293_v59, %v1656_v44  ;;  %v1658_v56 = vpop.f32.mrb[33].mxu0 }
 0x302   : > { %2669 = vmatmul.mubr.f32.gmra.mrb[60].mxu1 %v6516_v9 }
 0x303   : > { %2673 = vmatprep.mubr.f32.mxu1 %v2051_v5  ;;  %v2053_v39 = vmax.f32 %v2021_v12, 0.0  ;;  %v1983_v29 = vmul.f32 %v6388_v45, %v1882_v49 }
 0x304   : > { %v1661_v37 = vpop.f32.mrb[34].mxu0  ;;  %v6522_v25 = vld [vmem:[#allocation2 + $0xaa] sm:$0xff]  ;;  %v6526_v43 = vld [vmem:[#allocation2 + $0xb2] sm:$0xff] }
 0x305   : > { %v6524_v2 = vld [vmem:[#allocation2 + $0xb0] sm:$0xff]  ;;  %2085 = vst [vmem:[#allocation2 + $0xc9] sm:$0xff] %v2053_v39  ;;  %v2022_v6 = vadd.f32 %v6394_v21, %v1983_v29  ;;  %v1887_v54 = vadd.f32 %v6291_v52, %v1661_v37  ;;  %v1663_v59 = vpop.f32.mrb[35].mxu0  ;;  %4097 = vmatprep.mubr.f32.mxu0 %v6522_v25 }
 0x306   : > { %2674 = vmatmul.mubr.f32.gmra.mrb[62].mxu1 %v6524_v2  ;;  %4098 = vmatmul.mubr.f32.gmra.mrb[74].mxu0 %v6526_v43 }
 0x307   : > { %2678 = vmatprep.mubr.f32.mxu1 %v2052_v41  ;;  %v2054_v5 = vmax.f32 %v2022_v6, 0.0  ;;  %v1984_v44 = vmul.f32 %v6388_v45, %v1887_v54 }
 0x308   : > { %v1666_v12 = vpop.f32.mrb[36].mxu0  ;;  %v6534_v49 = vld [vmem:[#allocation2 + $0xc0] sm:$0xff] }
 0x309   : > { %2086 = vst [vmem:[#allocation2 + $0xd9] sm:$0xff] %v2054_v5  ;;  %v2023_v56 = vadd.f32 %v6394_v21, %v1984_v44  ;;  %v1892_v29 = vadd.f32 %v6304_v11, %v1666_v12  ;;  %v1668_v52 = vpop.f32.mrb[37].mxu0 }
 0x30a   : > { %2679 = vmatmul.mubr.f32.gmra.mrb[64].mxu1 %v6534_v49 }
 0x30b   : > { %2683 = vmatprep.mubr.f32.mxu1 %v2053_v39  ;;  %v2055_v37 = vmax.f32 %v2023_v56, 0.0  ;;  %v1985_v59 = vmul.f32 %v6388_v45, %v1892_v29 }
 0x30c   : > { %v1671_v4 = vpop.f32.mrb[38].mxu0  ;;  %v6540_v41 = vld [vmem:[#allocation2 + $0xc2] sm:$0xff]  ;;  %v6544_v54 = vld [vmem:[#allocation2 + $0xca] sm:$0xff] }
 0x30d   : > { %v6542_v6 = vld [vmem:[#allocation2 + $0xc8] sm:$0xff]  ;;  %2087 = vst [vmem:[#allocation2 + $0xe1] sm:$0xff] %v2055_v37  ;;  %v2024_v3 = vadd.f32 %v6394_v21, %v1985_v59  ;;  %v1897_v44 = vadd.f32 %v6302_v26, %v1671_v4  ;;  %v1673_v11 = vpop.f32.mrb[39].mxu0  ;;  %4100 = vmatprep.mubr.f32.mxu0 %v6540_v41 }
 0x30e   : > { %2684 = vmatmul.mubr.f32.gmra.mrb[66].mxu1 %v6542_v6  ;;  %4101 = vmatmul.mubr.f32.gmra.mrb[76].mxu0 %v6544_v54 }
 0x30f   : > { %2688 = vmatprep.mubr.f32.mxu1 %v2054_v5  ;;  %v2056_v39 = vmax.f32 %v2024_v3, 0.0  ;;  %v1986_v12 = vmul.f32 %v6388_v45, %v1897_v44 }
 0x310   : > { %v1676_v56 = vpop.f32.mrb[40].mxu0  ;;  %v6552_v29 = vld [vmem:[#allocation2 + $0xd8] sm:$0xff] }
 0x311   : > { %2088 = vst [vmem:[#allocation2 + $0xf1] sm:$0xff] %v2056_v39  ;;  %v2025_v52 = vadd.f32 %v6394_v21, %v1986_v12  ;;  %v1902_v59 = vadd.f32 %v6315_v15, %v1676_v56  ;;  %v1678_v4 = vpop.f32.mrb[41].mxu0 }
 0x312   : > { %2689 = vmatmul.mubr.f32.gmra.mrb[68].mxu1 %v6552_v29 }
 0x313   : > { %2693 = vmatprep.mubr.f32.mxu1 %v2055_v37  ;;  %v2057_v26 = vmax.f32 %v2025_v52, 0.0  ;;  %v1987_v11 = vmul.f32 %v6388_v45, %v1902_v59 }
 0x314   : > { %v1681_v61 = vpop.f32.mrb[42].mxu0  ;;  %v6558_v5 = vld [vmem:[#allocation2 + $0xda] sm:$0xff]  ;;  %v6562_v44 = vld [vmem:[#allocation2 + $0xe2] sm:$0xff] }
 0x315   : > { %v6560_v3 = vld [vmem:[#allocation2 + $0xe0] sm:$0xff]  ;;  %2089 = vst [vmem:[#allocation2 + $0xf9] sm:$0xff] %v2057_v26  ;;  %v2026_v22 = vadd.f32 %v6394_v21, %v1987_v11  ;;  %v1907_v12 = vadd.f32 %v6313_v14, %v1681_v61  ;;  %v1683_v15 = vpop.f32.mrb[43].mxu0  ;;  %4103 = vmatprep.mubr.f32.mxu0 %v6558_v5 }
 0x316   : > { %2694 = vmatmul.mubr.f32.gmra.mrb[70].mxu1 %v6560_v3  ;;  %4104 = vmatmul.mubr.f32.gmra.mrb[78].mxu0 %v6562_v44 }
 0x317   : > { %2698 = vmatprep.mubr.f32.mxu1 %v2056_v39  ;;  %v2058_v37 = vmax.f32 %v2026_v22, 0.0  ;;  %v1988_v56 = vmul.f32 %v6388_v45, %v1907_v12 }
 0x318   : > { %v1686_v52 = vpop.f32.mrb[44].mxu0  ;;  %v6570_v59 = vld [vmem:[#allocation2 + $0xf0] sm:$0xff] }
 0x319   : > { %2090 = vst [vmem:[#allocation2 + $0x109] sm:$0xff] %v2058_v37  ;;  %v2027_v4 = vadd.f32 %v6394_v21, %v1988_v56  ;;  %v1912_v11 = vadd.f32 %v6326_v27, %v1686_v52  ;;  %v1688_v61 = vpop.f32.mrb[45].mxu0 }
 0x31a   : > { %2699 = vmatmul.mubr.f32.gmra.mrb[72].mxu1 %v6570_v59 }
 0x31b   : > { %2703 = vmatprep.mubr.f32.mxu1 %v2057_v26  ;;  %v2059_v14 = vmax.f32 %v2027_v4, 0.0  ;;  %v1989_v15 = vmul.f32 %v6388_v45, %v1912_v11 }
 0x31c   : > { %v1691_v10 = vpop.f32.mrb[46].mxu0  ;;  %v6576_v39 = vld [vmem:[#allocation2 + $0xf2] sm:$0xff]  ;;  %v6580_v12 = vld [vmem:[#allocation2 + $0xfa] sm:$0xff] }
 0x31d   : > { %v6578_v22 = vld [vmem:[#allocation2 + $0xf8] sm:$0xff]  ;;  %2091 = vst [vmem:[#allocation2 + $0x111] sm:$0xff] %v2059_v14  ;;  %v2028_v47 = vadd.f32 %v6394_v21, %v1989_v15  ;;  %v1917_v56 = vadd.f32 %v6324_v62, %v1691_v10  ;;  %v1693_v27 = vpop.f32.mrb[47].mxu0  ;;  %4106 = vmatprep.mubr.f32.mxu0 %v6576_v39 }
 0x31e   : > { %2704 = vmatmul.mubr.f32.gmra.mrb[74].mxu1 %v6578_v22  ;;  %4107 = vmatmul.mubr.f32.gmra.mrb[80].mxu0 %v6580_v12 }
 0x31f   : > { %2708 = vmatprep.mubr.f32.mxu1 %v2058_v37  ;;  %v2060_v26 = vmax.f32 %v2028_v47, 0.0  ;;  %v1990_v52 = vmul.f32 %v6388_v45, %v1917_v56 }
 0x320   : > { %v1696_v4 = vpop.f32.mrb[48].mxu0  ;;  %v6588_v11 = vld [vmem:[#allocation2 + $0x108] sm:$0xff] }
 0x321   : > { %2092 = vst [vmem:[#allocation2 + $0x121] sm:$0xff] %v2060_v26  ;;  %v2029_v61 = vadd.f32 %v6394_v21, %v1990_v52  ;;  %v1922_v15 = vadd.f32 %v6337_v20, %v1696_v4  ;;  %v1698_v10 = vpop.f32.mrb[49].mxu0 }
 0x322   : > { %2709 = vmatmul.mubr.f32.gmra.mrb[76].mxu1 %v6588_v11 }
 0x323   : > { %2713 = vmatprep.mubr.f32.mxu1 %v2059_v14  ;;  %v2061_v62 = vmax.f32 %v2029_v61, 0.0  ;;  %v1991_v27 = vmul.f32 %v6388_v45, %v1922_v15 }
 0x324   : > { %v1701_v33 = vpop.f32.mrb[50].mxu0  ;;  %v6594_v37 = vld [vmem:[#allocation2 + $0x10a] sm:$0xff]  ;;  %v6598_v56 = vld [vmem:[#allocation2 + $0x112] sm:$0xff] }
 0x325   : > { %v6596_v47 = vld [vmem:[#allocation2 + $0x110] sm:$0xff]  ;;  %7361 = vst [vmem:[#allocation11_spill] sm:$0xff] %v6598_v56  ;;  %2093 = vst [vmem:[#allocation2 + $0x129] sm:$0xff] %v2061_v62  ;;  %v2030_v28 = vadd.f32 %v6394_v21, %v1991_v27  ;;  %v1927_v52 = vadd.f32 %v6335_v50, %v1701_v33  ;;  %v1703_v20 = vpop.f32.mrb[51].mxu0  ;;  %4109 = vmatprep.mubr.f32.mxu0 %v6594_v37 }
 0x326   : > { %2714 = vmatmul.mubr.f32.gmra.mrb[78].mxu1 %v6596_v47  ;;  %4110 = vmatmul.mubr.f32.gmra.mrb[82].mxu0 %v6598_v56 }
 0x327   : > { %2718 = vmatprep.mubr.f32.mxu1 %v2060_v26  ;;  %v2062_v14 = vmax.f32 %v2030_v28, 0.0  ;;  %v1992_v4 = vmul.f32 %v6388_v45, %v1927_v52 }
 0x328   : > { %v1706_v61 = vpop.f32.mrb[52].mxu0  ;;  %v6606_v15 = vld [vmem:[#allocation2 + $0x120] sm:$0xff] }
 0x329   : > { %2094 = vst [vmem:[#allocation2 + $0x139] sm:$0xff] %v2062_v14  ;;  %v2031_v10 = vadd.f32 %v6394_v21, %v1992_v4  ;;  %v1932_v27 = vadd.f32 %v6348_v60, %v1706_v61  ;;  %v1708_v33 = vpop.f32.mrb[53].mxu0 }
 0x32a   : > { %2719 = vmatmul.mubr.f32.gmra.mrb[80].mxu1 %v6606_v15 }
 0x32b   : > { %2723 = vmatprep.mubr.f32.mxu1 %v2061_v62  ;;  %v2063_v50 = vmax.f32 %v2031_v10, 0.0  ;;  %v1993_v20 = vmul.f32 %v6388_v45, %v1932_v27 }
 0x32c   : > { %v1711_v19 = vpop.f32.mrb[54].mxu0  ;;  %v6612_v26 = vld [vmem:[#allocation2 + $0x122] sm:$0xff]  ;;  %v6616_v52 = vld [vmem:[#allocation2 + $0x12a] sm:$0xff] }
 0x32d   : > { %v6614_v28 = vld [vmem:[#allocation2 + $0x128] sm:$0xff]  ;;  %7362 = vst [vmem:[#allocation12_spill] sm:$0xff] %v6616_v52  ;;  %2095 = vst [vmem:[#allocation2 + $0x141] sm:$0xff] %v2063_v50  ;;  %v2032_v56 = vadd.f32 %v6394_v21, %v1993_v20  ;;  %v1937_v4 = vadd.f32 %v6346_v32, %v1711_v19  ;;  %v1713_v60 = vpop.f32.mrb[55].mxu0  ;;  %4112 = vmatprep.mubr.f32.mxu0 %v6612_v26 }
 0x32e   : > { %2724 = vmatmul.mubr.f32.gmra.mrb[82].mxu1 %v6614_v28  ;;  %4113 = vmatmul.mubr.f32.gmra.mrb[84].mxu0 %v6616_v52 }
 0x32f   : > { %2728 = vmatprep.mubr.f32.mxu1 %v2062_v14  ;;  %v6623_v62 = vmax.f32 %v2032_v56, 0.0  ;;  %v1994_v61 = vmul.f32 %v6388_v45, %v1937_v4 }
 0x330   : > { %v1716_v10 = vpop.f32.mrb[56].mxu0  ;;  %v6626_v27 = vld [vmem:[#allocation2 + $0x138] sm:$0xff] }
 0x331   : > { %7363 = vst [vmem:[#allocation13_spill] sm:$0xff] %v6623_v62  ;;  %2096 = vst [vmem:[#allocation2 + $0x151] sm:$0xff] %v6623_v62  ;;  %v2033_v33 = vadd.f32 %v6394_v21, %v1994_v61  ;;  %v1942_v19 = vadd.f32 %v6359_v24, %v1716_v10  ;;  %v1718_v32 = vpop.f32.mrb[57].mxu0 }
 0x332   : > { %2729 = vmatmul.mubr.f32.gmra.mrb[84].mxu1 %v6626_v27 }
 0x333   : > { %2733 = vmatprep.mubr.f32.mxu1 %v2063_v50  ;;  %v6632_v20 = vmax.f32 %v2033_v33, 0.0  ;;  %v1995_v56 = vmul.f32 %v6388_v45, %v1942_v19 }
 0x334   : > { %v1721_v14 = vpop.f32.mrb[58].mxu0  ;;  %v6635_v60 = vld [vmem:[#allocation2 + $0x13a] sm:$0xff]  ;;  %v6639_v52 = vld [vmem:[#allocation2 + $0x142] sm:$0xff] }
 0x335   : > { %v6637_v4 = vld [vmem:[#allocation2 + $0x140] sm:$0xff]  ;;  %7364 = vst [vmem:[#allocation14_spill] sm:$0xff] %v6639_v52  ;;  %2097 = vst [vmem:[#allocation2 + $0x159] sm:$0xff] %v6632_v20  ;;  %v2034_v61 = vadd.f32 %v6394_v21, %v1995_v56  ;;  %v1947_v24 = vadd.f32 %v6357_v53, %v1721_v14  ;;  %v1723_v10 = vpop.f32.mrb[59].mxu0  ;;  %4115 = vmatprep.mubr.f32.mxu0 %v6635_v60 }
 0x336   : > { %2734 = vmatmul.mubr.f32.gmra.mrb[86].mxu1 %v6637_v4  ;;  %4116 = vmatmul.mubr.f32.gmra.mrb[86].mxu0 %v6639_v52 }
 0x337   : > { %2738 = vmatprep.mubr.f32.mxu1 %v6623_v62  ;;  %v6648_v50 = vmax.f32 %v2034_v61, 0.0  ;;  %v1996_v33 = vmul.f32 %v6388_v45, %v1947_v24 }
 0x338   : > { %v1726_v19 = vpop.f32.mrb[60].mxu0  ;;  %v6651_v32 = vld [vmem:[#allocation2 + $0x150] sm:$0xff] }
 0x339   : > { %2098 = vst [vmem:[#allocation2 + $0x169] sm:$0xff] %v6648_v50  ;;  %v2035_v53 = vadd.f32 %v6394_v21, %v1996_v33  ;;  %v1952_v56 = vadd.f32 %v6370_v38, %v1726_v19  ;;  %v1728_v14 = vpop.f32.mrb[61].mxu0 }
 0x33a   : > { %2739 = vmatmul.mubr.f32.gmra.mrb[88].mxu1 %v6651_v32 }
 0x33b   : > { %2743 = vmatprep.mubr.f32.mxu1 %v6632_v20  ;;  %v6658_v10 = vmax.f32 %v2035_v53, 0.0  ;;  %v1997_v61 = vmul.f32 %v6388_v45, %v1952_v56 }
 0x33c   : > { %v1731_v62 = vpop.f32.mrb[62].mxu0  ;;  %v6661_v24 = vld [vmem:[#allocation2 + $0x158] sm:$0xff] }
 0x33d   : > { %2099 = vst [vmem:[#allocation2 + $0x171] sm:$0xff] %v6658_v10  ;;  %v6665_v52 = vadd.f32 %v6394_v21, %v1997_v61  ;;  %v1957_v33 = vadd.f32 %v6368_v36, %v1731_v62  ;;  %v1733_v38 = vpop.f32.mrb[63].mxu0  ;;  %v2454_v62 = vld [vmem:[%s7321_s4 + $0x200] sm:$0xff] }
 0x33e   : > { %2744 = vmatmul.mubr.f32.gmra.mrb[90].mxu1 %v6661_v24  ;;  %v2456_v38 = vld [vmem:[%s7321_s4 + $0x210] sm:$0xff] }
 0x33f   : > { %2748 = vmatprep.mubr.f32.mxu1 %v6648_v50  ;;  %v7350_v19 = vmax.f32 %v6665_v52, 0.0  ;;  %v1998_v53 = vmul.f32 %v6388_v45, %v1957_v33  ;;  %v2455_v45 = vld [vmem:[%s7321_s4 + $0x208] sm:$0xff] }
 0x340   : > { %v6672_v56 = vld [vmem:[#allocation2 + $0x168] sm:$0xff]  ;;  %v4451_v33 = vpack.c.bf16 %v2455_v45, %v2454_v62 }
 0x341   : > { %2100 = vst [vmem:[#allocation2 + $0x181] sm:$0xff] %v7350_v19  ;;  %v6677_v14 = vadd.f32 %v6394_v21, %v1998_v53  ;;  %v2166_v21 = vld [vmem:[#allocation2 + $0x2] sm:$0xff]  ;;  %v2457_v53 = vld [vmem:[%s7321_s4 + $0x218] sm:$0xff]  ;;  %v2167_v19 = vld [vmem:[#allocation2 + $0xa] sm:$0xff] }
 0x342   : > { %2749 = vmatmul.mubr.f32.gmra.mrb[92].mxu1 %v6672_v56  ;;  %v2459_v62 = vld [vmem:[%s7321_s4 + $0x228] sm:$0xff] }
 0x343   : > { %7365 = vst [vmem:[#allocation15_spill] sm:$0xff] %v6677_v14  ;;  %2753 = vmatprep.mubr.f32.mxu1 %v6658_v10  ;;  %v7351_v36 = vmax.f32 %v6677_v14, 0.0  ;;  %v7366_v14 = vmov 0.0|0.0  }
 0x344   : > { %v6688_v61 = vld [vmem:[#allocation2 + $0x170] sm:$0xff] }
 0x345   : > { %2101 = vst [vmem:[#allocation2 + $0x189] sm:$0xff] %v7351_v36  ;;  %v4454_v36 = vpack.c.bf16 %v2457_v53, %v2456_v38  ;;  %v6727_v38 = vld [vmem:[#allocation2 + $0x22] sm:$0xff]  ;;  %v2464_v53 = vld [vmem:[%s7321_s4 + $0x250] sm:$0xff] }
 0x346   : > { %2754 = vmatmul.mubr.f32.gmra.mrb[94].mxu1 %v6688_v61 }
 0x347   : > { %2823 = vmatprep.mubr.f32.mxu1 %v6414_v23  ;;  %v2458_v23 = vld [vmem:[%s7321_s4 + $0x220] sm:$0xff] }
 0x348   : > { %v4457_v45 = vpack.c.bf16 %v2459_v62, %v2458_v23  ;;  %v2465_v23 = vld [vmem:[%s7321_s4 + $0x258] sm:$0xff] }
 0x349   : > { %v4466_v62 = vpack.c.bf16 %v2465_v23, %v2464_v53  ;;  %v2481_v53 = vld [vmem:[%s7321_s4 + $0x2d8] sm:$0xff]  ;;  %v2483_v23 = vld [vmem:[%s7321_s4 + $0x2e8] sm:$0xff] }
 0x34a   : > { %2824 = vmatmul.mubr.f32.vlgmr.msra.gmra.mrb[32].mxu1 %v2166_v21  ;;  %v2461_v21 = vld [vmem:[%s7321_s4 + $0x238] sm:$0xff] }
 0x34b   : > { %2828 = vmatprep.mubr.f32.mxu1 %v6420_v58  ;;  %4452 = vmatpush1.bf16.msra.mxu1 %v4451_v33  ;;  %v2460_v58 = vld [vmem:[%s7321_s4 + $0x230] sm:$0xff]  ;;  %v6716_v33 = vld [vmem:[#allocation2 + $0x1a] sm:$0xff] }
 0x34c   : > { %4453 = vmatprep.subr.bf16.mxu1 %v7366_v14 }
 0x34e   : > { %2829 = vmatmul.mubr.f32.gmra.mrb[34].mxu1 %v2167_v19  ;;  %v2462_v19 = vld [vmem:[%s7321_s4 + $0x240] sm:$0xff] }
 0x34f   : > { %2833 = vmatprep.mubr.f32.mxu1 %v6426_v30  ;;  %4455 = vmatpush1.bf16.msra.mxu1 %v4454_v36  ;;  %v4460_v30 = vpack.c.bf16 %v2461_v21, %v2460_v58  ;;  %v2463_v36 = vld [vmem:[%s7321_s4 + $0x248] sm:$0xff]  ;;  %v2469_v58 = vld [vmem:[%s7321_s4 + $0x278] sm:$0xff] }
 0x350   : > { %4456 = vmatprep.subr.bf16.mxu1 %v7366_v14  ;;  %v2471_v21 = vld [vmem:[%s7321_s4 + $0x288] sm:$0xff] }
 0x352   : > { %2834 = vmatmul.mubr.f32.gmra.mrb[36].mxu1 %v6716_v33 }
 0x353   : > { %2838 = vmatprep.mubr.f32.mxu1 %v6434_v13  ;;  %4458 = vmatpush1.bf16.msra.mxu1 %v4457_v45  ;;  %v4463_v13 = vpack.c.bf16 %v2463_v36, %v2462_v19  ;;  %v2467_v45 = vld [vmem:[%s7321_s4 + $0x268] sm:$0xff]  ;;  %v2477_v36 = vld [vmem:[%s7321_s4 + $0x2b8] sm:$0xff] }
 0x354   : > { %4459 = vmatprep.subr.bf16.mxu1 %v7366_v14  ;;  %v2475_v19 = vld [vmem:[%s7321_s4 + $0x2a8] sm:$0xff] }
 0x356   : > { %2839 = vmatmul.mubr.f32.gmra.mrb[38].mxu1 %v6727_v38 }
 0x357   : > { %2843 = vmatprep.mubr.f32.mxu1 %v6444_v46  ;;  %4461 = vmatpush1.bf16.msra.mxu1 %v4460_v30  ;;  %v2466_v46 = vld [vmem:[%s7321_s4 + $0x260] sm:$0xff]  ;;  %v2473_v30 = vld [vmem:[%s7321_s4 + $0x298] sm:$0xff] }
 0x358   : > { %4462 = vmatprep.subr.bf16.mxu1 %v7366_v14 }
 0x35a   : > { %2844 = vmatmul.mubr.f32.gmra.mrb[40].mxu1 %v6432_v51  ;;  %v4469_v51 = vpack.c.bf16 %v2467_v45, %v2466_v46 }
 0x35b   : > { %2848 = vmatprep.mubr.f32.mxu1 %v6452_v40  ;;  %4464 = vmatpush1.bf16.msra.mxu1 %v4463_v13  ;;  %v2468_v40 = vld [vmem:[%s7321_s4 + $0x270] sm:$0xff]  ;;  %v2479_v13 = vld [vmem:[%s7321_s4 + $0x2c8] sm:$0xff] }
 0x35c   : > { %4465 = vmatprep.subr.bf16.mxu1 %v7366_v14 }
 0x35e   : > { %2849 = vmatmul.mubr.f32.gmra.mrb[42].mxu1 %v6436_v55  ;;  %v4472_v55 = vpack.c.bf16 %v2469_v58, %v2468_v40  ;;  %v2231_v40 = vld [vmem:[#allocation2 + $0x21] sm:$0xff]  ;;  %v2264_v58 = vld [vmem:[#allocation2 + $0x32] sm:$0xff] }
 0x35f   : > { %2853 = vmatprep.mubr.f32.mxu1 %v6462_v31  ;;  %4467 = vmatpush1.bf16.msra.mxu1 %v4466_v62  ;;  %v2470_v31 = vld [vmem:[%s7321_s4 + $0x280] sm:$0xff]  ;;  %v2485_v62 = vld [vmem:[%s7321_s4 + $0x2f8] sm:$0xff] }
 0x360   : > { %4468 = vmatprep.subr.bf16.mxu1 %v7366_v14 }
 0x362   : > { %2854 = vmatmul.mubr.f32.gmra.mrb[44].mxu1 %v6450_v63  ;;  %v4475_v63 = vpack.c.bf16 %v2471_v21, %v2470_v31  ;;  %v2493_v31 = vld [vmem:[%s7321_s4 + $0x338] sm:$0xff] }
 0x363   : > { %2858 = vmatprep.mubr.f32.mxu1 %v6470_v42  ;;  %4470 = vmatpush1.bf16.msra.mxu1 %v4469_v51  ;;  %v2472_v42 = vld [vmem:[%s7321_s4 + $0x290] sm:$0xff]  ;;  %v2491_v51 = vld [vmem:[%s7321_s4 + $0x328] sm:$0xff] }
 0x364   : > { %4471 = vmatprep.subr.bf16.mxu1 %v7366_v14  ;;  %v6921_v21 = vld [vmem:[#allocation2 + $0x31] sm:$0xff] }
 0x366   : > { %2859 = vmatmul.mubr.f32.gmra.mrb[46].mxu1 %v6454_v17  ;;  %v4478_v17 = vpack.c.bf16 %v2473_v30, %v2472_v42  ;;  %v2265_v42 = vld [vmem:[#allocation2 + $0x3a] sm:$0xff] }
 0x367   : > { %2863 = vmatprep.mubr.f32.mxu1 %v6480_v18  ;;  %4473 = vmatpush1.bf16.msra.mxu1 %v4472_v55  ;;  %v2474_v18 = vld [vmem:[%s7321_s4 + $0x2a0] sm:$0xff] }
 0x368   : > { %4474 = vmatprep.subr.bf16.mxu1 %v7366_v14 }
 0x36a   : > { %2864 = vmatmul.mubr.f32.gmra.mrb[48].mxu1 %v6468_v35  ;;  %v4481_v35 = vpack.c.bf16 %v2475_v19, %v2474_v18  ;;  %v2494_v18 = vld [vmem:[%s7321_s4 + $0x340] sm:$0xff]  ;;  %v2495_v19 = vld [vmem:[%s7321_s4 + $0x348] sm:$0xff] }
 0x36b   : > { %2868 = vmatprep.mubr.f32.mxu1 %v6488_v34  ;;  %4476 = vmatpush1.bf16.msra.mxu1 %v4475_v63  ;;  %v2476_v34 = vld [vmem:[%s7321_s4 + $0x2b0] sm:$0xff] }
 0x36c   : > { %4477 = vmatprep.subr.bf16.mxu1 %v7366_v14 }
 0x36e   : > { %2869 = vmatmul.mubr.f32.gmra.mrb[50].mxu1 %v6472_v16  ;;  %v4484_v16 = vpack.c.bf16 %v2477_v36, %v2476_v34  ;;  %v2266_v34 = vld [vmem:[#allocation2 + $0x4a] sm:$0xff]  ;;  %v4511_v36 = vpack.c.bf16 %v2495_v19, %v2494_v18 }
 0x36f   : > { %2873 = vmatprep.mubr.f32.mxu1 %v6498_v57  ;;  %4479 = vmatpush1.bf16.msra.mxu1 %v4478_v17  ;;  %v2478_v57 = vld [vmem:[%s7321_s4 + $0x2c0] sm:$0xff] }
 0x370   : > { %4480 = vmatprep.subr.bf16.mxu1 %v7366_v14 }
 0x372   : > { %2874 = vmatmul.mubr.f32.gmra.mrb[52].mxu1 %v6486_v7  ;;  %v4487_v7 = vpack.c.bf16 %v2479_v13, %v2478_v57  ;;  %v2497_v57 = vld [vmem:[%s7321_s4 + $0x358] sm:$0xff]  ;;  %v6945_v13 = vld [vmem:[#allocation2 + $0x49] sm:$0xff] }
 0x373   : > { %2878 = vmatprep.mubr.f32.mxu1 %v6506_v0  ;;  %4482 = vmatpush1.bf16.msra.mxu1 %v4481_v35  ;;  %v2480_v0 = vld [vmem:[%s7321_s4 + $0x2d0] sm:$0xff]  ;;  %v6935_v35 = vld [vmem:[#allocation2 + $0x39] sm:$0xff] }
 0x374   : > { %4483 = vmatprep.subr.bf16.mxu1 %v7366_v14 }
 0x376   : > { %2879 = vmatmul.mubr.f32.gmra.mrb[54].mxu1 %v6490_v48  ;;  %v4490_v48 = vpack.c.bf16 %v2481_v53, %v2480_v0  ;;  %v2267_v0 = vld [vmem:[#allocation2 + $0x52] sm:$0xff] }
 0x377   : > { %2883 = vmatprep.mubr.f32.mxu1 %v6516_v9  ;;  %4485 = vmatpush1.bf16.msra.mxu1 %v4484_v16  ;;  %v2482_v9 = vld [vmem:[%s7321_s4 + $0x2e0] sm:$0xff]  ;;  %v2496_v16 = vld [vmem:[%s7321_s4 + $0x350] sm:$0xff] }
 0x378   : > { %4486 = vmatprep.subr.bf16.mxu1 %v7366_v14 }
 0x37a   : > { %2884 = vmatmul.mubr.f32.gmra.mrb[56].mxu1 %v6504_v8  ;;  %v4493_v8 = vpack.c.bf16 %v2483_v23, %v2482_v9  ;;  %v2498_v9 = vld [vmem:[%s7321_s4 + $0x360] sm:$0xff]  ;;  %v2499_v23 = vld [vmem:[%s7321_s4 + $0x368] sm:$0xff] }
 0x37b   : > { %2888 = vmatprep.mubr.f32.mxu1 %v6524_v2  ;;  %4488 = vmatpush1.bf16.msra.mxu1 %v4487_v7  ;;  %v2484_v2 = vld [vmem:[%s7321_s4 + $0x2f0] sm:$0xff] }
 0x37c   : > { %4489 = vmatprep.subr.bf16.mxu1 %v7366_v14 }
 0x37e   : > { %2889 = vmatmul.mubr.f32.gmra.mrb[58].mxu1 %v6508_v1  ;;  %v4496_v1 = vpack.c.bf16 %v2485_v62, %v2484_v2  ;;  %v2268_v2 = vld [vmem:[#allocation2 + $0x62] sm:$0xff]  ;;  %v4517_v62 = vpack.c.bf16 %v2499_v23, %v2498_v9  ;;  %v2509_v9 = vld [vmem:[%s7321_s4 + $0x3b8] sm:$0xff] }
 0x37f   : > { %2893 = vmatprep.mubr.f32.mxu1 %v6534_v49  ;;  %4491 = vmatpush1.bf16.msra.mxu1 %v4490_v48  ;;  %v4514_v48 = vpack.c.bf16 %v2497_v57, %v2496_v16  ;;  %v7007_v16 = vld [vmem:[#allocation2 + $0x81] sm:$0xff]  ;;  %v2272_v57 = vld [vmem:[#allocation2 + $0x92] sm:$0xff] }
 0x380   : > { %4492 = vmatprep.subr.bf16.mxu1 %v7366_v14  ;;  %v7017_v23 = vld [vmem:[#allocation2 + $0x91] sm:$0xff] }
 0x382   : > { %2894 = vmatmul.mubr.f32.gmra.mrb[60].mxu1 %v6522_v25  ;;  %v7367_v25 = vld [vmem:[#allocation11_spill] sm:$0xff] }
 0x383   : > { %2898 = vmatprep.mubr.f32.mxu1 %v6542_v6  ;;  %4494 = vmatpush1.bf16.msra.mxu1 %v4493_v8  ;;  %v7369_v6 = vld [vmem:[#allocation14_spill] sm:$0xff]  ;;  %v6959_v8 = vld [vmem:[#allocation2 + $0x51] sm:$0xff] }
 0x384   : > { %4495 = vmatprep.subr.bf16.mxu1 %v7366_v14 }
 0x386   : > { %2899 = vmatmul.mubr.f32.gmra.mrb[62].mxu1 %v6526_v43  ;;  %v7368_v43 = vld [vmem:[#allocation12_spill] sm:$0xff] }
 0x387   : > { %2903 = vmatprep.mubr.f32.mxu1 %v6552_v29  ;;  %4497 = vmatpush1.bf16.msra.mxu1 %v4496_v1  ;;  %v2500_v1 = vld [vmem:[%s7321_s4 + $0x370] sm:$0xff] }
 0x388   : > { %4498 = vmatprep.subr.bf16.mxu1 %v7366_v14 }
 0x38a   : > { %2904 = vmatmul.mubr.f32.gmra.mrb[64].mxu1 %v6540_v41 }
 0x38b   : > { %2908 = vmatprep.mubr.f32.mxu1 %v6560_v3  ;;  %v6870_v3 = vld [vmem:[#allocation2 + $0x15a] sm:$0xff] }
 0x38e   : > { %2909 = vmatmul.mubr.f32.gmra.mrb[66].mxu1 %v6544_v54  ;;  %v6862_v54 = vld [vmem:[#allocation2 + $0x152] sm:$0xff] }
 0x38f   : > { %2913 = vmatprep.mubr.f32.mxu1 %v6570_v59  ;;  %v6876_v59 = vld [vmem:[#allocation2 + $0x16a] sm:$0xff] }
 0x392   : > { %2914 = vmatmul.mubr.f32.gmra.mrb[68].mxu1 %v6558_v5 }
 0x393   : > { %2918 = vmatprep.mubr.f32.mxu1 %v6578_v22 }
 0x396   : > { %2919 = vmatmul.mubr.f32.gmra.mrb[70].mxu1 %v6562_v44  ;;  %v6873_v44 = vld [vmem:[#allocation2 + $0x180] sm:$0xff] }
 0x397   : > { %2923 = vmatprep.mubr.f32.mxu1 %v6588_v11  ;;  %v6881_v11 = vld [vmem:[#allocation2 + $0x188] sm:$0xff] }
 0x39a   : > { %2924 = vmatmul.mubr.f32.gmra.mrb[72].mxu1 %v6576_v39 }
 0x39b   : > { %2928 = vmatprep.mubr.f32.mxu1 %v6596_v47 }
 0x39e   : > { %2929 = vmatmul.mubr.f32.gmra.mrb[74].mxu1 %v6580_v12 }
 0x39f   : > { %2933 = vmatprep.mubr.f32.mxu1 %v6606_v15  ;;  %v2486_v15 = vld [vmem:[%s7321_s4 + $0x300] sm:$0xff] }
 0x3a2   : > { %2934 = vmatmul.mubr.f32.gmra.mrb[76].mxu1 %v6594_v37 }
 0x3a3   : > { %2938 = vmatprep.mubr.f32.mxu1 %v6614_v28  ;;  %v2487_v28 = vld [vmem:[%s7321_s4 + $0x308] sm:$0xff] }
 0x3a6   : > { %2939 = vmatmul.mubr.f32.gmra.mrb[78].mxu1 %v7367_v25 }
 0x3a7   : > { %2943 = vmatprep.mubr.f32.mxu1 %v6626_v27  ;;  %v6892_v27 = vld [vmem:[#allocation2 + $0x172] sm:$0xff] }
 0x3aa   : > { %2944 = vmatmul.mubr.f32.gmra.mrb[80].mxu1 %v6612_v26 }
 0x3ab   : > { %2948 = vmatprep.mubr.f32.mxu1 %v6637_v4  ;;  %v4499_v4 = vpack.c.bf16 %v2487_v28, %v2486_v15  ;;  %v2501_v15 = vld [vmem:[%s7321_s4 + $0x378] sm:$0xff]  ;;  %v6969_v28 = vld [vmem:[#allocation2 + $0x61] sm:$0xff] }
 0x3ae   : > { %2949 = vmatmul.mubr.f32.gmra.mrb[82].mxu1 %v7368_v43 }
 0x3af   : > { %2953 = vmatprep.mubr.f32.mxu1 %v6651_v32  ;;  %v2488_v32 = vld [vmem:[%s7321_s4 + $0x310] sm:$0xff] }
 0x3b1   : > { %v6854_v49 = vpop.f32.mrb[64].mxu0 }
 0x3b2   : > { %2954 = vmatmul.mubr.f32.gmra.mrb[84].mxu1 %v6635_v60  ;;  %v6857_v41 = vpop.f32.mrb[65].mxu0 }
 0x3b3   : > { %2958 = vmatprep.mubr.f32.mxu1 %v6661_v24  ;;  %v2489_v24 = vld [vmem:[%s7321_s4 + $0x318] sm:$0xff] }
 0x3b4   : > { %v4502_v45 = vpack.c.bf16 %v2489_v24, %v2488_v32  ;;  %v2269_v32 = vld [vmem:[#allocation2 + $0x6a] sm:$0xff] }
 0x3b6   : > { %2959 = vmatmul.mubr.f32.gmra.mrb[86].mxu1 %v7369_v6 }
 0x3b7   : > { %2963 = vmatprep.mubr.f32.mxu1 %v6672_v56  ;;  %v2230_v56 = vld [vmem:[#allocation2 + $0x19] sm:$0xff] }
 0x3b9   : > { %v6864_v29 = vpop.f32.mrb[66].mxu0 }
 0x3ba   : > { %2964 = vmatmul.mubr.f32.gmra.mrb[88].mxu1 %v6862_v54  ;;  %v6867_v5 = vpop.f32.mrb[67].mxu0 }
 0x3bb   : > { %2968 = vmatprep.mubr.f32.mxu1 %v6688_v61 }
 0x3be   : > { %2969 = vmatmul.mubr.f32.gmra.mrb[90].mxu1 %v6870_v3 }
 0x3bf   : > { %2973 = vmatprep.mubr.f32.mxu1 %v6873_v44 }
 0x3c1   : > { %v6878_v22 = vpop.f32.mrb[68].mxu0 }
 0x3c2   : > { %2974 = vmatmul.mubr.f32.gmra.mrb[92].mxu1 %v6876_v59  ;;  %v6883_v47 = vpop.f32.mrb[69].mxu0 }
 0x3c3   : > { %2978 = vmatprep.mubr.f32.mxu1 %v6881_v11 }
 0x3c6   : > { %2979 = vmatmul.mubr.f32.gmra.mrb[94].mxu1 %v6892_v27 }
 0x3c7   : > { %3048 = vmatprep.mubr.f32.mxu1 %v6716_v33  ;;  %v2490_v33 = vld [vmem:[%s7321_s4 + $0x320] sm:$0xff] }
 0x3c8   : > { %v4505_v55 = vpack.c.bf16 %v2491_v51, %v2490_v33  ;;  %v2503_v33 = vld [vmem:[%s7321_s4 + $0x388] sm:$0xff] }
 0x3c9   : > { %v6902_v61 = vpop.f32.mrb[70].mxu0  ;;  %v6983_v51 = vld [vmem:[#allocation2 + $0x69] sm:$0xff] }
 0x3ca   : > { %3049 = vmatmul.mubr.f32.vlgmr.msra.gmra.mrb[32].mxu1 %v2230_v56  ;;  %v6904_v46 = vpop.f32.mrb[71].mxu0  ;;  %v4520_v56 = vpack.c.bf16 %v2501_v15, %v2500_v1 }
 0x3cb   : > { %3053 = vmatprep.mubr.f32.mxu1 %v6727_v38  ;;  %4500 = vmatpush1.bf16.msra.mxu1 %v4499_v4  ;;  %v2492_v38 = vld [vmem:[%s7321_s4 + $0x330] sm:$0xff] }
 0x3cc   : > { %4501 = vmatprep.subr.bf16.mxu1 %v7366_v14  ;;  %v4508_v17 = vpack.c.bf16 %v2493_v31, %v2492_v38  ;;  %v2505_v38 = vld [vmem:[%s7321_s4 + $0x398] sm:$0xff] }
 0x3cd   : > { %v6993_v31 = vld [vmem:[#allocation2 + $0x79] sm:$0xff] }
 0x3ce   : > { %3054 = vmatmul.mubr.f32.gmra.mrb[34].mxu1 %v2231_v40  ;;  %v2270_v40 = vld [vmem:[#allocation2 + $0x7a] sm:$0xff] }
 0x3cf   : > { %3058 = vmatprep.mubr.f32.mxu1 %v2264_v58  ;;  %4503 = vmatpush1.bf16.msra.mxu1 %v4502_v45  ;;  %v2502_v45 = vld [vmem:[%s7321_s4 + $0x380] sm:$0xff] }
 0x3d0   : > { %4504 = vmatprep.subr.bf16.mxu1 %v7366_v14  ;;  %v4523_v58 = vpack.c.bf16 %v2503_v33, %v2502_v45  ;;  %v7031_v45 = vld [vmem:[#allocation2 + $0x99] sm:$0xff]  ;;  %v2274_v33 = vld [vmem:[#allocation2 + $0xaa] sm:$0xff] }
 0x3d1   : > { %v6923_v63 = vpop.f32.mrb[72].mxu0 }
 0x3d2   : > { %3059 = vmatmul.mubr.f32.gmra.mrb[36].mxu1 %v6921_v21  ;;  %v6926_v30 = vpop.f32.mrb[73].mxu0 }
 0x3d3   : > { %3063 = vmatprep.mubr.f32.mxu1 %v2265_v42  ;;  %4506 = vmatpush1.bf16.msra.mxu1 %v4505_v55  ;;  %v2504_v55 = vld [vmem:[%s7321_s4 + $0x390] sm:$0xff] }
 0x3d4   : > { %4507 = vmatprep.subr.bf16.mxu1 %v7366_v14  ;;  %v4526_v19 = vpack.c.bf16 %v2505_v38, %v2504_v55  ;;  %v2513_v55 = vld [vmem:[%s7321_s4 + $0x3d8] sm:$0xff]  ;;  %v7041_v38 = vld [vmem:[#allocation2 + $0xa9] sm:$0xff] }
 0x3d6   : > { %3064 = vmatmul.mubr.f32.gmra.mrb[38].mxu1 %v6935_v35 }
 0x3d7   : > { %3068 = vmatprep.mubr.f32.mxu1 %v2266_v34  ;;  %4509 = vmatpush1.bf16.msra.mxu1 %v4508_v17  ;;  %v2271_v17 = vld [vmem:[#allocation2 + $0x82] sm:$0xff] }
 0x3d8   : > { %4510 = vmatprep.subr.bf16.mxu1 %v7366_v14  ;;  %v2506_v34 = vld [vmem:[%s7321_s4 + $0x3a0] sm:$0xff] }
 0x3d9   : > { %v6947_v7 = vpop.f32.mrb[74].mxu0 }
 0x3da   : > { %3069 = vmatmul.mubr.f32.gmra.mrb[40].mxu1 %v6945_v13  ;;  %v6950_v53 = vpop.f32.mrb[75].mxu0 }
 0x3db   : > { %3073 = vmatprep.mubr.f32.mxu1 %v2267_v0  ;;  %4512 = vmatpush1.bf16.msra.mxu1 %v4511_v36  ;;  %v2507_v36 = vld [vmem:[%s7321_s4 + $0x3a8] sm:$0xff] }
 0x3dc   : > { %4513 = vmatprep.subr.bf16.mxu1 %v7366_v14  ;;  %v4529_v0 = vpack.c.bf16 %v2507_v36, %v2506_v34 }
 0x3de   : > { %3074 = vmatmul.mubr.f32.gmra.mrb[42].mxu1 %v6959_v8 }
 0x3df   : > { %3078 = vmatprep.mubr.f32.mxu1 %v2268_v2  ;;  %4515 = vmatpush1.bf16.msra.mxu1 %v4514_v48  ;;  %v2508_v48 = vld [vmem:[%s7321_s4 + $0x3b0] sm:$0xff] }
 0x3e0   : > { %4516 = vmatprep.subr.bf16.mxu1 %v7366_v14  ;;  %v4532_v15 = vpack.c.bf16 %v2509_v9, %v2508_v48  ;;  %v7055_v48 = vld [vmem:[#allocation2 + $0xb1] sm:$0xff]  ;;  %v2276_v9 = vld [vmem:[#allocation2 + $0xc2] sm:$0xff] }
 0x3e1   : > { %v6971_v4 = vpop.f32.mrb[76].mxu0 }
 0x3e2   : > { %3079 = vmatmul.mubr.f32.gmra.mrb[44].mxu1 %v6969_v28  ;;  %v6974_v24 = vpop.f32.mrb[77].mxu0 }
 0x3e3   : > { %3083 = vmatprep.mubr.f32.mxu1 %v2269_v32  ;;  %4518 = vmatpush1.bf16.msra.mxu1 %v4517_v62  ;;  %v2273_v62 = vld [vmem:[#allocation2 + $0x9a] sm:$0xff] }
 0x3e4   : > { %4519 = vmatprep.subr.bf16.mxu1 %v7366_v14  ;;  %v2510_v32 = vld [vmem:[%s7321_s4 + $0x3c0] sm:$0xff] }
 0x3e6   : > { %3084 = vmatmul.mubr.f32.gmra.mrb[46].mxu1 %v6983_v51 }
 0x3e7   : > { %3088 = vmatprep.mubr.f32.mxu1 %v2270_v40  ;;  %4521 = vmatpush1.bf16.msra.mxu1 %v4520_v56  ;;  %v2511_v56 = vld [vmem:[%s7321_s4 + $0x3c8] sm:$0xff] }
 0x3e8   : > { %4522 = vmatprep.subr.bf16.mxu1 %v7366_v14  ;;  %v4535_v40 = vpack.c.bf16 %v2511_v56, %v2510_v32  ;;  %v2517_v32 = vld [vmem:[%s7321_s4 + $0x3f8] sm:$0xff]  ;;  %v7065_v56 = vld [vmem:[#allocation2 + $0xc1] sm:$0xff] }
 0x3e9   : > { %v6995_v42 = vpop.f32.mrb[78].mxu0 }
 0x3ea   : > { %3089 = vmatmul.mubr.f32.gmra.mrb[48].mxu1 %v6993_v31  ;;  %v6998_v18 = vpop.f32.mrb[79].mxu0 }
 0x3eb   : > { %3093 = vmatprep.mubr.f32.mxu1 %v2271_v17  ;;  %4524 = vmatpush1.bf16.msra.mxu1 %v4523_v58  ;;  %v2512_v58 = vld [vmem:[%s7321_s4 + $0x3d0] sm:$0xff] }
 0x3ec   : > { %4525 = vmatprep.subr.bf16.mxu1 %v7366_v14  ;;  %v4538_v36 = vpack.c.bf16 %v2513_v55, %v2512_v58 }
 0x3ee   : > { %3094 = vmatmul.mubr.f32.gmra.mrb[50].mxu1 %v7007_v16 }
 0x3ef   : > { %3098 = vmatprep.mubr.f32.mxu1 %v2272_v57  ;;  %4527 = vmatpush1.bf16.msra.mxu1 %v4526_v19  ;;  %v2275_v19 = vld [vmem:[#allocation2 + $0xb2] sm:$0xff]  ;;  %v2514_v57 = vld [vmem:[%s7321_s4 + $0x3e0] sm:$0xff] }
 0x3f0   : > { %4528 = vmatprep.subr.bf16.mxu1 %v7366_v14 }
 0x3f1   : > { %v7019_v2 = vpop.f32.mrb[80].mxu0 }
 0x3f2   : > { %3099 = vmatmul.mubr.f32.gmra.mrb[52].mxu1 %v7017_v23  ;;  %v7022_v1 = vpop.f32.mrb[81].mxu0 }
 0x3f3   : > { %3103 = vmatprep.mubr.f32.mxu1 %v2273_v62  ;;  %4530 = vmatpush1.bf16.msra.mxu1 %v4529_v0  ;;  %v2515_v0 = vld [vmem:[%s7321_s4 + $0x3e8] sm:$0xff] }
 0x3f4   : > { %4531 = vmatprep.subr.bf16.mxu1 %v7366_v14  ;;  %v4541_v62 = vpack.c.bf16 %v2515_v0, %v2514_v57  ;;  %v7370_v57 = vld [vmem:[#allocation3_spill] sm:$0xff]  ;;  %v7077_v0 = vld [vmem:[#allocation2 + $0xd9] sm:$0xff] }
 0x3f6   : > { %3104 = vmatmul.mubr.f32.gmra.mrb[54].mxu1 %v7031_v45 }
 0x3f7   : > { %3108 = vmatprep.mubr.f32.mxu1 %v2274_v33  ;;  %4533 = vmatpush1.bf16.msra.mxu1 %v4532_v15  ;;  %v2516_v15 = vld [vmem:[%s7321_s4 + $0x3f0] sm:$0xff] }
 0x3f8   : > { %4534 = vmatprep.subr.bf16.mxu1 %v7366_v14  ;;  %v4544_v55 = vpack.c.bf16 %v2517_v32, %v2516_v15  ;;  %v7088_v15 = vld [vmem:[#allocation2 + $0xf1] sm:$0xff]  ;;  %v7092_v32 = vld [vmem:[#allocation2 + $0xf9] sm:$0xff] }
 0x3f9   : > { %v7043_v17 = vpop.f32.mrb[82].mxu0 }
 0x3fa   : > { %3109 = vmatmul.mubr.f32.gmra.mrb[56].mxu1 %v7041_v38  ;;  %v7046_v34 = vpop.f32.mrb[83].mxu0 }
 0x3fb   : > { %3113 = vmatprep.mubr.f32.mxu1 %v2275_v19  ;;  %4536 = vmatpush1.bf16.msra.mxu1 %v4535_v40  ;;  %v2277_v40 = vld [vmem:[#allocation2 + $0xca] sm:$0xff] }
 0x3fc   : > { %4537 = vmatprep.subr.bf16.mxu1 %v7366_v14  ;;  %v7073_v19 = vld [vmem:[#allocation2 + $0xc9] sm:$0xff] }
 0x3fe   : > { %3114 = vmatmul.mubr.f32.gmra.mrb[58].mxu1 %v7055_v48 }
 0x3ff   : > { %3118 = vmatprep.mubr.f32.mxu1 %v2276_v9  ;;  %4539 = vmatpush1.bf16.msra.mxu1 %v4538_v36  ;;  %v2278_v36 = vld [vmem:[#allocation2 + $0xda] sm:$0xff] }
 0x400   : > { %4540 = vmatprep.subr.bf16.mxu1 %v7366_v14 }
 0x401   : > { %v7067_v33 = vpop.f32.mrb[84].mxu0 }
 0x402   : > { %3119 = vmatmul.mubr.f32.gmra.mrb[60].mxu1 %v7065_v56  ;;  %v7070_v58 = vpop.f32.mrb[85].mxu0 }
 0x403   : > { %3123 = vmatprep.mubr.f32.mxu1 %v2277_v40  ;;  %4542 = vmatpush1.bf16.msra.mxu1 %v4541_v62  ;;  %v2279_v40 = vld [vmem:[#allocation2 + $0xe2] sm:$0xff] }
 0x404   : > { %4543 = vmatprep.subr.bf16.mxu1 %v7366_v14  ;;  %v7084_v14 = vld [vmem:[#allocation2 + $0xe1] sm:$0xff] }
 0x406   : > { %3124 = vmatmul.mubr.f32.gmra.mrb[62].mxu1 %v7073_v19 }
 0x407   : > { %3128 = vmatprep.mubr.f32.mxu1 %v2278_v36  ;;  %4545 = vmatpush1.bf16.msra.mxu1 %v4544_v55  ;;  %v7096_v55 = vld [vmem:[#allocation2 + $0x109] sm:$0xff]  ;;  %v7100_v36 = vld [vmem:[#allocation2 + $0x111] sm:$0xff] }
 0x408   : > { %4578 = vmatprep.subr.bf16.mxu1 %v7370_v57 }
 0x409   : > { %v7079_v9 = vpop.f32.mrb[86].mxu0 }
 0x40a   : > { %3129 = vmatmul.mubr.f32.gmra.mrb[64].mxu1 %v7077_v0  ;;  %v7082_v62 = vpop.f32.mrb[87].mxu0 }
 0x40b   : > { %3133 = vmatprep.mubr.f32.mxu1 %v2279_v40 }
 0x40e   : > { %3134 = vmatmul.mubr.f32.gmra.mrb[66].mxu1 %v7084_v14 }
 0x40f   : > { %3138 = vmatprep.mubr.f32.mxu1 %v6576_v39  ;;  %v7104_v39 = vld [vmem:[#allocation2 + $0x121] sm:$0xff] }
 0x412   : > { %3139 = vmatmul.mubr.f32.gmra.mrb[68].mxu1 %v7088_v15 }
 0x413   : > { %3143 = vmatprep.mubr.f32.mxu1 %v6580_v12  ;;  %v7108_v12 = vld [vmem:[#allocation2 + $0x129] sm:$0xff] }
 0x416   : > { %3144 = vmatmul.mubr.f32.gmra.mrb[70].mxu1 %v7092_v32 }
 0x417   : > { %3148 = vmatprep.mubr.f32.mxu1 %v6594_v37  ;;  %v7112_v37 = vld [vmem:[#allocation2 + $0x139] sm:$0xff] }
 0x41a   : > { %3149 = vmatmul.mubr.f32.gmra.mrb[72].mxu1 %v7096_v55 }
 0x41b   : > { %3153 = vmatprep.mubr.f32.mxu1 %v7367_v25  ;;  %v7116_v25 = vld [vmem:[#allocation2 + $0x141] sm:$0xff] }
 0x41e   : > { %3154 = vmatmul.mubr.f32.gmra.mrb[74].mxu1 %v7100_v36 }
 0x41f   : > { %3158 = vmatprep.mubr.f32.mxu1 %v6612_v26  ;;  %v7371_v26 = vld [vmem:[#allocation13_spill] sm:$0xff] }
 0x422   : > { %3159 = vmatmul.mubr.f32.gmra.mrb[76].mxu1 %v7104_v39 }
 0x423   : > { %3163 = vmatprep.mubr.f32.mxu1 %v7368_v43  ;;  %v7372_v43 = vmax.f32 %v6665_v52, 0.0  ;;  %v7376_v52 = vld [vmem:[#allocation5_spill] sm:$0xff] }
 0x426   : > { %3164 = vmatmul.mubr.f32.gmra.mrb[78].mxu1 %v7108_v12 }
 0x427   : > { %3168 = vmatprep.mubr.f32.mxu1 %v6635_v60  ;;  %v7127_v60 = vld [vmem:[#allocation2 + $0x182] sm:$0xff] }
 0x42a   : > { %3169 = vmatmul.mubr.f32.gmra.mrb[80].mxu1 %v7112_v37 }
 0x42b   : > { %3173 = vmatprep.mubr.f32.mxu1 %v7369_v6  ;;  %v7132_v6 = vld [vmem:[#allocation2 + $0x18a] sm:$0xff] }
 0x42e   : > { %3174 = vmatmul.mubr.f32.gmra.mrb[82].mxu1 %v7116_v25 }
 0x42f   : > { %3178 = vmatprep.mubr.f32.mxu1 %v6862_v54 }
 0x432   : > { %3179 = vmatmul.mubr.f32.gmra.mrb[84].mxu1 %v7371_v26  ;;  %v2295_v26 = vld [vmem:[#allocation2 + $0x38] sm:$0xff] }
 0x433   : > { %3183 = vmatprep.mubr.f32.mxu1 %v6870_v3 }
 0x436   : > { %3184 = vmatmul.mubr.f32.gmra.mrb[86].mxu1 %v6632_v20  ;;  %v7373_v20 = vld [vmem:[#allocation15_spill] sm:$0xff] }
 0x437   : > { %3188 = vmatprep.mubr.f32.mxu1 %v6876_v59  ;;  %v7374_v40 = vmax.f32 %v7373_v20, 0.0  ;;  %v7379_v20 = vld [vmem:[#allocation8_spill] sm:$0xff] }
 0x43a   : > { %3189 = vmatmul.mubr.f32.gmra.mrb[88].mxu1 %v6648_v50  ;;  %v2294_v50 = vld [vmem:[#allocation2 + $0x30] sm:$0xff] }
 0x43b   : > { %3193 = vmatprep.mubr.f32.mxu1 %v6892_v27 }
 0x43e   : > { %3194 = vmatmul.mubr.f32.gmra.mrb[90].mxu1 %v6658_v10  ;;  %v7375_v10 = vld [vmem:[#allocation4_spill] sm:$0xff] }
 0x43f   : > { %3198 = vmatprep.mubr.f32.mxu1 %v7127_v60 }
 0x442   : > { %3199 = vmatmul.mubr.f32.gmra.mrb[92].mxu1 %v7372_v43  ;;  %v2296_v43 = vld [vmem:[#allocation2 + $0x48] sm:$0xff] }
 0x443   : > { %3203 = vmatprep.mubr.f32.mxu1 %v7132_v6 }
 0x446   : > { %3204 = vmatmul.mubr.f32.gmra.mrb[94].mxu1 %v7374_v40  ;;  %v7380_v40 = vld [vmem:[#allocation9_spill] sm:$0xff] }
 0x447   : > { %3273 = vmatprep.mubr.f32.mxu1 %v6921_v21  ;;  %v7377_v21 = vld [vmem:[#allocation6_spill] sm:$0xff] }
 0x44a   : > { %3274 = vmatmul.mubr.f32.vlgmr.msra.gmra.mrb[32].mxu1 %v2294_v50  ;;  %v7381_v50 = vld [vmem:[#allocation10_spill] sm:$0xff] }
 0x44b   : > { %3278 = vmatprep.mubr.f32.mxu1 %v6935_v35  ;;  %4586 = vmatpush3.bf16.msra.mxu1 %v7370_v57  ;;  %v2297_v35 = vld [vmem:[#allocation2 + $0x50] sm:$0xff] }
 0x44c   : > { %4579 = vmatprep.subr.bf16.mxu1 %v7375_v10  ;;  %v7378_v57 = vld [vmem:[#allocation7_spill] sm:$0xff] }
 0x44e   : > { %3279 = vmatmul.mubr.f32.gmra.mrb[34].mxu1 %v2295_v26  ;;  %v2304_v26 = vld [vmem:[#allocation2 + $0xa8] sm:$0xff] }
 0x44f   : > { %3283 = vmatprep.mubr.f32.mxu1 %v6945_v13  ;;  %4587 = vmatpush3.bf16.msra.mxu1 %v7375_v10  ;;  %v2298_v13 = vld [vmem:[#allocation2 + $0x60] sm:$0xff]  ;;  %v2302_v10 = vld [vmem:[#allocation2 + $0x90] sm:$0xff] }
 0x450   : > { %4580 = vmatprep.subr.bf16.mxu1 %v7376_v52 }
 0x452   : > { %3284 = vmatmul.mubr.f32.gmra.mrb[36].mxu1 %v2296_v43  ;;  %v2350_v43 = vld [vmem:[#allocation2 + $0x151] sm:$0xff] }
 0x453   : > { %3288 = vmatprep.mubr.f32.mxu1 %v6959_v8  ;;  %4588 = vmatpush3.bf16.msra.mxu1 %v7376_v52  ;;  %v2299_v8 = vld [vmem:[#allocation2 + $0x68] sm:$0xff]  ;;  %v2306_v52 = vld [vmem:[#allocation2 + $0xc0] sm:$0xff] }
 0x454   : > { %4581 = vmatprep.subr.bf16.mxu1 %v7377_v21 }
 0x456   : > { %3289 = vmatmul.mubr.f32.gmra.mrb[38].mxu1 %v2297_v35  ;;  %v2352_v35 = vld [vmem:[#allocation2 + $0x169] sm:$0xff] }
 0x457   : > { %3293 = vmatprep.mubr.f32.mxu1 %v6969_v28  ;;  %4589 = vmatpush3.bf16.msra.mxu1 %v7377_v21  ;;  %v2300_v28 = vld [vmem:[#allocation2 + $0x78] sm:$0xff] }
 0x458   : > { %4582 = vmatprep.subr.bf16.mxu1 %v7378_v57  ;;  %v2351_v21 = vld [vmem:[#allocation2 + $0x159] sm:$0xff] }
 0x45a   : > { %3294 = vmatmul.mubr.f32.gmra.mrb[40].mxu1 %v2298_v13  ;;  %v2354_v13 = vld [vmem:[#allocation2 + $0x181] sm:$0xff] }
 0x45b   : > { %3298 = vmatprep.mubr.f32.mxu1 %v6983_v51  ;;  %4590 = vmatpush3.bf16.msra.mxu1 %v7378_v57  ;;  %v2301_v51 = vld [vmem:[#allocation2 + $0x80] sm:$0xff]  ;;  %v2353_v57 = vld [vmem:[#allocation2 + $0x171] sm:$0xff] }
 0x45c   : > { %4583 = vmatprep.subr.bf16.mxu1 %v7379_v20 }
 0x45e   : > { %3299 = vmatmul.mubr.f32.gmra.mrb[42].mxu1 %v2299_v8  ;;  %v2324_v8 = vld [vmem:[#allocation2 + $0x198] sm:$0xff] }
 0x45f   : > { %3303 = vmatprep.mubr.f32.mxu1 %v6993_v31  ;;  %4591 = vmatpush3.bf16.msra.mxu1 %v7379_v20  ;;  %v2303_v31 = vld [vmem:[#allocation2 + $0x98] sm:$0xff] }
 0x460   : > { %4584 = vmatprep.subr.bf16.mxu1 %v7380_v40  ;;  %v2356_v20 = vld [vmem:[#allocation2 + $0x199] sm:$0xff] }
 0x462   : > { %3304 = vmatmul.mubr.f32.gmra.mrb[44].mxu1 %v2300_v28  ;;  %v2325_v28 = vld [vmem:[#allocation2 + $0x1a0] sm:$0xff] }
 0x463   : > { %3308 = vmatprep.mubr.f32.mxu1 %v7007_v16  ;;  %4592 = vmatpush3.bf16.msra.mxu1 %v7380_v40  ;;  %v2305_v16 = vld [vmem:[#allocation2 + $0xb0] sm:$0xff]  ;;  %v2357_v40 = vld [vmem:[#allocation2 + $0x1a1] sm:$0xff] }
 0x464   : > { %4585 = vmatprep.subr.bf16.mxu1 %v7381_v50 }
 0x466   : > { %3309 = vmatmul.mubr.f32.gmra.mrb[46].mxu1 %v2301_v51 }
 0x467   : > { %3313 = vmatprep.mubr.f32.mxu1 %v7017_v23  ;;  %4593 = vmatpush3.bf16.msra.mxu1 %v7381_v50  ;;  %v2307_v23 = vld [vmem:[#allocation2 + $0xc8] sm:$0xff] }
 0x46a   : > { %3314 = vmatmul.mubr.f32.gmra.mrb[48].mxu1 %v2302_v10 }
 0x46b   : > { %3318 = vmatprep.mubr.f32.mxu1 %v7031_v45  ;;  %v2308_v45 = vld [vmem:[#allocation2 + $0xd8] sm:$0xff] }
 0x46e   : > { %3319 = vmatmul.mubr.f32.gmra.mrb[50].mxu1 %v2303_v31 }
 0x46f   : > { %3323 = vmatprep.mubr.f32.mxu1 %v7041_v38  ;;  %v2309_v38 = vld [vmem:[#allocation2 + $0xe0] sm:$0xff] }
 0x472   : > { %3324 = vmatmul.mubr.f32.gmra.mrb[52].mxu1 %v2304_v26 }
 0x473   : > { %3328 = vmatprep.mubr.f32.mxu1 %v7055_v48  ;;  %v2310_v48 = vld [vmem:[#allocation2 + $0xf0] sm:$0xff] }
 0x476   : > { %3329 = vmatmul.mubr.f32.gmra.mrb[54].mxu1 %v2305_v16 }
 0x477   : > { %3333 = vmatprep.mubr.f32.mxu1 %v7065_v56  ;;  %v2311_v56 = vld [vmem:[#allocation2 + $0xf8] sm:$0xff] }
 0x47a   : > { %3334 = vmatmul.mubr.f32.gmra.mrb[56].mxu1 %v2306_v52 }
 0x47b   : > { %3338 = vmatprep.mubr.f32.mxu1 %v7073_v19  ;;  %v2312_v19 = vld [vmem:[#allocation2 + $0x108] sm:$0xff] }
 0x47e   : > { %3339 = vmatmul.mubr.f32.gmra.mrb[58].mxu1 %v2307_v23 }
 0x47f   : > { %3343 = vmatprep.mubr.f32.mxu1 %v7077_v0  ;;  %v2313_v0 = vld [vmem:[#allocation2 + $0x110] sm:$0xff] }
 0x482   : > { %3344 = vmatmul.mubr.f32.gmra.mrb[60].mxu1 %v2308_v45 }
 0x483   : > { %3348 = vmatprep.mubr.f32.mxu1 %v7084_v14  ;;  %v2314_v14 = vld [vmem:[#allocation2 + $0x120] sm:$0xff] }
 0x486   : > { %3349 = vmatmul.mubr.f32.gmra.mrb[62].mxu1 %v2309_v38 }
 0x487   : > { %3353 = vmatprep.mubr.f32.mxu1 %v7088_v15  ;;  %v2315_v15 = vld [vmem:[#allocation2 + $0x128] sm:$0xff] }
 0x48a   : > { %3354 = vmatmul.mubr.f32.gmra.mrb[64].mxu1 %v2310_v48 }
 0x48b   : > { %3358 = vmatprep.mubr.f32.mxu1 %v7092_v32  ;;  %v2316_v32 = vld [vmem:[#allocation2 + $0x138] sm:$0xff] }
 0x48e   : > { %3359 = vmatmul.mubr.f32.gmra.mrb[66].mxu1 %v2311_v56 }
 0x48f   : > { %3363 = vmatprep.mubr.f32.mxu1 %v7096_v55  ;;  %v2317_v55 = vld [vmem:[#allocation2 + $0x140] sm:$0xff] }
 0x492   : > { %3364 = vmatmul.mubr.f32.gmra.mrb[68].mxu1 %v2312_v19 }
 0x493   : > { %3368 = vmatprep.mubr.f32.mxu1 %v7100_v36  ;;  %v2318_v36 = vld [vmem:[#allocation2 + $0x150] sm:$0xff] }
 0x496   : > { %3369 = vmatmul.mubr.f32.gmra.mrb[70].mxu1 %v2313_v0 }
 0x497   : > { %3373 = vmatprep.mubr.f32.mxu1 %v7104_v39  ;;  %v2319_v39 = vld [vmem:[#allocation2 + $0x158] sm:$0xff] }
 0x49a   : > { %3374 = vmatmul.mubr.f32.gmra.mrb[72].mxu1 %v2314_v14 }
 0x49b   : > { %3378 = vmatprep.mubr.f32.mxu1 %v7108_v12  ;;  %v2320_v12 = vld [vmem:[#allocation2 + $0x168] sm:$0xff] }
 0x49e   : > { %3379 = vmatmul.mubr.f32.gmra.mrb[74].mxu1 %v2315_v15 }
 0x49f   : > { %3383 = vmatprep.mubr.f32.mxu1 %v7112_v37  ;;  %v2321_v37 = vld [vmem:[#allocation2 + $0x170] sm:$0xff] }
 0x4a2   : > { %3384 = vmatmul.mubr.f32.gmra.mrb[76].mxu1 %v2316_v32 }
 0x4a3   : > { %3388 = vmatprep.mubr.f32.mxu1 %v7116_v25  ;;  %v2355_v25 = vld [vmem:[#allocation2 + $0x189] sm:$0xff] }
 0x4a6   : > { %3389 = vmatmul.mubr.f32.gmra.mrb[78].mxu1 %v2317_v55 }
 0x4a7   : > { %3393 = vmatprep.mubr.f32.mxu1 %v2350_v43 }
 0x4aa   : > { %3394 = vmatmul.mubr.f32.gmra.mrb[80].mxu1 %v2318_v36 }
 0x4ab   : > { %3398 = vmatprep.mubr.f32.mxu1 %v2351_v21 }
 0x4ae   : > { %3399 = vmatmul.mubr.f32.gmra.mrb[82].mxu1 %v2319_v39 }
 0x4af   : > { %3403 = vmatprep.mubr.f32.mxu1 %v2352_v35 }
 0x4b2   : > { %3404 = vmatmul.mubr.f32.gmra.mrb[84].mxu1 %v2320_v12 }
 0x4b3   : > { %3408 = vmatprep.mubr.f32.mxu1 %v2353_v57 }
 0x4b6   : > { %3409 = vmatmul.mubr.f32.gmra.mrb[86].mxu1 %v2321_v37 }
 0x4b7   : > { %3413 = vmatprep.mubr.f32.mxu1 %v2354_v13 }
 0x4ba   : > { %3414 = vmatmul.mubr.f32.gmra.mrb[88].mxu1 %v6873_v44  ;;  %v2388_v44 = vld [vmem:[#allocation2 + $0x19a] sm:$0xff] }
 0x4bb   : > { %3418 = vmatprep.mubr.f32.mxu1 %v2355_v25 }
 0x4be   : > { %3419 = vmatmul.mubr.f32.gmra.mrb[90].mxu1 %v6881_v11  ;;  %v2389_v11 = vld [vmem:[#allocation2 + $0x1a2] sm:$0xff] }
 0x4bf   : > { %3423 = vmatprep.mubr.f32.mxu1 %v2356_v20 }
 0x4c2   : > { %3424 = vmatmul.mubr.f32.gmra.mrb[92].mxu1 %v2324_v8 }
 0x4c3   : > { %3428 = vmatprep.mubr.f32.mxu1 %v2357_v40 }
 0x4c6   : > { %3429 = vmatmul.mubr.f32.gmra.mrb[94].mxu1 %v2325_v28 }
 0x4c7   : > { %4118 = vmatprep.mubr.f32.mxu1 %v6862_v54  ;;  %v7187_v54 = vld [vmem:[%s7322_s5] ss:$0 sm:$0xff] }
 0x4ca   : > { %4119 = vmatmul.mubr.f32.vlgmr.msra.gmra.mrb[96].mxu1 %v6870_v3 }
 0x4cb   : > { %4121 = vmatprep.mubr.f32.mxu1 %v6876_v59 }
 0x4ce   : > { %4122 = vmatmul.mubr.f32.gmra.mrb[98].mxu1 %v6892_v27  ;;  %v7193_v27 = vld [vmem:[%s7323_s6] ss:$0 sm:$0xff] }
 0x4cf   : > { %4124 = vmatprep.mubr.f32.mxu1 %v7127_v60 }
 0x4d2   : > { %4125 = vmatmul.mubr.f32.gmra.mrb[100].mxu1 %v7132_v6 }
 0x4d3   : > { %4127 = vmatprep.mubr.f32.mxu1 %v2388_v44 }
 0x4d6   : > { %4128 = vmatmul.mubr.f32.gmra.mrb[102].mxu1 %v2389_v11 }
 0x51d   : > { %v3275_v50 = vpop.f32.mrb[32].mxu1 }
 0x51e   : > { %v3501_v3 = vadd.f32 %v6857_v41, %v3275_v50  ;;  %v3277_v59 = vpop.f32.mrb[33].mxu1 }
 0x520   : > { %v3666_v60 = vmul.f32 %v7187_v54, %v3501_v3 }
 0x521   : > { %v3280_v6 = vpop.f32.mrb[34].mxu1 }
 0x522   : > { %v3705_v51 = vadd.f32 %v7193_v27, %v3666_v60  ;;  %v3506_v10 = vadd.f32 %v6854_v49, %v3280_v6  ;;  %v3282_v31 = vpop.f32.mrb[35].mxu1 }
 0x524   : > { %v3737_v26 = vmax.f32 %v3705_v51, 0.0  ;;  %v3667_v16 = vmul.f32 %v7187_v54, %v3506_v10 }
 0x525   : > { %v3285_v41 = vpop.f32.mrb[36].mxu1 }
 0x526   : > { %3769 = vst [vmem:[%s5086_s10] sm:$0xff] %v3737_v26  ;;  %v3706_v52 = vadd.f32 %v7193_v27, %v3667_v16  ;;  %v3511_v23 = vadd.f32 %v6867_v5, %v3285_v41  ;;  %v3287_v45 = vpop.f32.mrb[37].mxu1 }
 0x528   : > { %v3738_v38 = vmax.f32 %v3706_v52, 0.0  ;;  %v3668_v48 = vmul.f32 %v7187_v54, %v3511_v23 }
 0x529   : > { %v3290_v56 = vpop.f32.mrb[38].mxu1 }
 0x52a   : > { %3770 = vst [vmem:[%s5086_s10 + $0x8] sm:$0xff] %v3738_v38  ;;  %v3707_v49 = vadd.f32 %v7193_v27, %v3668_v48  ;;  %v3516_v19 = vadd.f32 %v6864_v29, %v3290_v56  ;;  %v3292_v0 = vpop.f32.mrb[39].mxu1 }
 0x52c   : > { %v3739_v14 = vmax.f32 %v3707_v49, 0.0  ;;  %v3669_v15 = vmul.f32 %v7187_v54, %v3516_v19 }
 0x52d   : > { %v3295_v32 = vpop.f32.mrb[40].mxu1 }
 0x52e   : > { %3771 = vst [vmem:[%s5086_s10 + $0x10] sm:$0xff] %v3739_v14  ;;  %v3708_v5 = vadd.f32 %v7193_v27, %v3669_v15  ;;  %v3521_v55 = vadd.f32 %v6883_v47, %v3295_v32  ;;  %v3297_v43 = vpop.f32.mrb[41].mxu1 }
 0x530   : > { %v3740_v36 = vmax.f32 %v3708_v5, 0.0  ;;  %v3670_v21 = vmul.f32 %v7187_v54, %v3521_v55 }
 0x531   : > { %v3300_v39 = vpop.f32.mrb[42].mxu1 }
 0x532   : > { %3772 = vst [vmem:[%s5086_s10 + $0x18] sm:$0xff] %v3740_v36  ;;  %v3709_v29 = vadd.f32 %v7193_v27, %v3670_v21  ;;  %v3526_v35 = vadd.f32 %v6878_v22, %v3300_v39  ;;  %v3302_v12 = vpop.f32.mrb[43].mxu1 }
 0x534   : > { %v3741_v57 = vmax.f32 %v3709_v29, 0.0  ;;  %v3671_v37 = vmul.f32 %v7187_v54, %v3526_v35 }
 0x535   : > { %v3305_v13 = vpop.f32.mrb[44].mxu1 }
 0x536   : > { %3773 = vst [vmem:[%s5086_s10 + $0x20] sm:$0xff] %v3741_v57  ;;  %v3710_v47 = vadd.f32 %v7193_v27, %v3671_v37  ;;  %v3531_v25 = vadd.f32 %v6904_v46, %v3305_v13  ;;  %v3307_v20 = vpop.f32.mrb[45].mxu1 }
 0x538   : > { %v3742_v8 = vmax.f32 %v3710_v47, 0.0  ;;  %v3672_v40 = vmul.f32 %v7187_v54, %v3531_v25 }
 0x539   : > { %v3310_v28 = vpop.f32.mrb[46].mxu1 }
 0x53a   : > { %3774 = vst [vmem:[%s5086_s10 + $0x28] sm:$0xff] %v3742_v8  ;;  %v3711_v22 = vadd.f32 %v7193_v27, %v3672_v40  ;;  %v3536_v44 = vadd.f32 %v6902_v61, %v3310_v28  ;;  %v3312_v11 = vpop.f32.mrb[47].mxu1 }
 0x53c   : > { %v3743_v50 = vmax.f32 %v3711_v22, 0.0  ;;  %v3673_v3 = vmul.f32 %v7187_v54, %v3536_v44 }
 0x53d   : > { %v3315_v59 = vpop.f32.mrb[48].mxu1 }
 0x53e   : > { %3775 = vst [vmem:[%s5086_s10 + $0x30] sm:$0xff] %v3743_v50  ;;  %v3712_v46 = vadd.f32 %v7193_v27, %v3673_v3  ;;  %v3541_v60 = vadd.f32 %v6926_v30, %v3315_v59  ;;  %v3317_v6 = vpop.f32.mrb[49].mxu1 }
 0x540   : > { %v3744_v51 = vmax.f32 %v3712_v46, 0.0  ;;  %v3674_v10 = vmul.f32 %v7187_v54, %v3541_v60 }
 0x541   : > { %v3320_v31 = vpop.f32.mrb[50].mxu1 }
 0x542   : > { %3776 = vst [vmem:[%s5086_s10 + $0x38] sm:$0xff] %v3744_v51  ;;  %v3713_v61 = vadd.f32 %v7193_v27, %v3674_v10  ;;  %v3546_v26 = vadd.f32 %v6923_v63, %v3320_v31  ;;  %v3322_v16 = vpop.f32.mrb[51].mxu1 }
 0x544   : > { %v3745_v41 = vmax.f32 %v3713_v61, 0.0  ;;  %v3675_v52 = vmul.f32 %v7187_v54, %v3546_v26 }
 0x545   : > { %v3325_v23 = vpop.f32.mrb[52].mxu1 }
 0x546   : > { %3777 = vst [vmem:[%s5086_s10 + $0x40] sm:$0xff] %v3745_v41  ;;  %v3714_v30 = vadd.f32 %v7193_v27, %v3675_v52  ;;  %v3551_v45 = vadd.f32 %v6950_v53, %v3325_v23  ;;  %v3327_v38 = vpop.f32.mrb[53].mxu1 }
 0x548   : > { %v3746_v48 = vmax.f32 %v3714_v30, 0.0  ;;  %v3676_v56 = vmul.f32 %v7187_v54, %v3551_v45 }
 0x549   : > { %v3330_v49 = vpop.f32.mrb[54].mxu1 }
 0x54a   : > { %3778 = vst [vmem:[%s5086_s10 + $0x48] sm:$0xff] %v3746_v48  ;;  %v3715_v63 = vadd.f32 %v7193_v27, %v3676_v56  ;;  %v3556_v19 = vadd.f32 %v6947_v7, %v3330_v49  ;;  %v3332_v0 = vpop.f32.mrb[55].mxu1 }
 0x54c   : > { %v3747_v14 = vmax.f32 %v3715_v63, 0.0  ;;  %v3677_v15 = vmul.f32 %v7187_v54, %v3556_v19 }
 0x54d   : > { %v3335_v32 = vpop.f32.mrb[56].mxu1 }
 0x54e   : > { %3779 = vst [vmem:[%s5086_s10 + $0x50] sm:$0xff] %v3747_v14  ;;  %v3716_v53 = vadd.f32 %v7193_v27, %v3677_v15  ;;  %v3561_v5 = vadd.f32 %v6974_v24, %v3335_v32  ;;  %v3337_v55 = vpop.f32.mrb[57].mxu1 }
 0x550   : > { %v3748_v43 = vmax.f32 %v3716_v53, 0.0  ;;  %v3678_v36 = vmul.f32 %v7187_v54, %v3561_v5 }
 0x551   : > { %v3340_v21 = vpop.f32.mrb[58].mxu1 }
 0x552   : > { %3780 = vst [vmem:[%s5086_s10 + $0x58] sm:$0xff] %v3748_v43  ;;  %v3717_v7 = vadd.f32 %v7193_v27, %v3678_v36  ;;  %v3566_v39 = vadd.f32 %v6971_v4, %v3340_v21  ;;  %v3342_v29 = vpop.f32.mrb[59].mxu1 }
 0x554   : > { %v3749_v35 = vmax.f32 %v3717_v7, 0.0  ;;  %v3679_v12 = vmul.f32 %v7187_v54, %v3566_v39 }
 0x555   : > { %v3345_v57 = vpop.f32.mrb[60].mxu1 }
 0x556   : > { %3781 = vst [vmem:[%s5086_s10 + $0x60] sm:$0xff] %v3749_v35  ;;  %v3718_v24 = vadd.f32 %v7193_v27, %v3679_v12  ;;  %v3571_v37 = vadd.f32 %v6998_v18, %v3345_v57  ;;  %v3347_v13 = vpop.f32.mrb[61].mxu1 }
 0x558   : > { %v3750_v47 = vmax.f32 %v3718_v24, 0.0  ;;  %v3680_v25 = vmul.f32 %v7187_v54, %v3571_v37 }
 0x559   : > { %v3350_v20 = vpop.f32.mrb[62].mxu1 }
 0x55a   : > { %3782 = vst [vmem:[%s5086_s10 + $0x68] sm:$0xff] %v3750_v47  ;;  %v3719_v4 = vadd.f32 %v7193_v27, %v3680_v25  ;;  %v3576_v8 = vadd.f32 %v6995_v42, %v3350_v20  ;;  %v3352_v40 = vpop.f32.mrb[63].mxu1 }
 0x55c   : > { %v3751_v28 = vmax.f32 %v3719_v4, 0.0  ;;  %v3681_v22 = vmul.f32 %v7187_v54, %v3576_v8 }
 0x55d   : > { %v3355_v44 = vpop.f32.mrb[64].mxu1 }
 0x55e   : > { %3783 = vst [vmem:[%s5086_s10 + $0x70] sm:$0xff] %v3751_v28  ;;  %v3720_v18 = vadd.f32 %v7193_v27, %v3681_v22  ;;  %v3581_v11 = vadd.f32 %v7022_v1, %v3355_v44  ;;  %v3357_v50 = vpop.f32.mrb[65].mxu1 }
 0x560   : > { %v3752_v3 = vmax.f32 %v3720_v18, 0.0  ;;  %v3682_v59 = vmul.f32 %v7187_v54, %v3581_v11 }
 0x561   : > { %v3360_v46 = vpop.f32.mrb[66].mxu1 }
 0x562   : > { %3784 = vst [vmem:[%s5086_s10 + $0x78] sm:$0xff] %v3752_v3  ;;  %v3721_v42 = vadd.f32 %v7193_v27, %v3682_v59  ;;  %v3586_v60 = vadd.f32 %v7019_v2, %v3360_v46  ;;  %v3362_v6 = vpop.f32.mrb[67].mxu1 }
 0x564   : > { %v3753_v51 = vmax.f32 %v3721_v42, 0.0  ;;  %v3683_v10 = vmul.f32 %v7187_v54, %v3586_v60 }
 0x565   : > { %v3365_v31 = vpop.f32.mrb[68].mxu1 }
 0x566   : > { %3785 = vst [vmem:[%s5086_s10 + $0x80] sm:$0xff] %v3753_v51  ;;  %v3722_v1 = vadd.f32 %v7193_v27, %v3683_v10  ;;  %v3591_v61 = vadd.f32 %v7046_v34, %v3365_v31  ;;  %v3367_v26 = vpop.f32.mrb[69].mxu1 }
 0x568   : > { %v3754_v16 = vmax.f32 %v3722_v1, 0.0  ;;  %v3684_v41 = vmul.f32 %v7187_v54, %v3591_v61 }
 0x569   : > { %v3370_v52 = vpop.f32.mrb[70].mxu1 }
 0x56a   : > { %3786 = vst [vmem:[%s5086_s10 + $0x88] sm:$0xff] %v3754_v16  ;;  %v3723_v2 = vadd.f32 %v7193_v27, %v3684_v41  ;;  %v3596_v23 = vadd.f32 %v7043_v17, %v3370_v52  ;;  %v3372_v30 = vpop.f32.mrb[71].mxu1 }
 0x56c   : > { %v3755_v45 = vmax.f32 %v3723_v2, 0.0  ;;  %v3685_v38 = vmul.f32 %v7187_v54, %v3596_v23 }
 0x56d   : > { %v3375_v48 = vpop.f32.mrb[72].mxu1 }
 0x56e   : > { %3787 = vst [vmem:[%s5086_s10 + $0x90] sm:$0xff] %v3755_v45  ;;  %v3724_v34 = vadd.f32 %v7193_v27, %v3685_v38  ;;  %v3601_v56 = vadd.f32 %v7070_v58, %v3375_v48  ;;  %v3377_v49 = vpop.f32.mrb[73].mxu1 }
 0x570   : > { %v3756_v63 = vmax.f32 %v3724_v34, 0.0  ;;  %v3686_v19 = vmul.f32 %v7187_v54, %v3601_v56 }
 0x571   : > { %v3380_v0 = vpop.f32.mrb[74].mxu1 }
 0x572   : > { %3788 = vst [vmem:[%s5086_s10 + $0x98] sm:$0xff] %v3756_v63  ;;  %v3725_v17 = vadd.f32 %v7193_v27, %v3686_v19  ;;  %v3606_v14 = vadd.f32 %v7067_v33, %v3380_v0  ;;  %v3382_v15 = vpop.f32.mrb[75].mxu1 }
 0x574   : > { %v3757_v32 = vmax.f32 %v3725_v17, 0.0  ;;  %v3687_v53 = vmul.f32 %v7187_v54, %v3606_v14 }
 0x575   : > { %v3385_v5 = vpop.f32.mrb[76].mxu1 }
 0x576   : > { %3789 = vst [vmem:[%s5086_s10 + $0xa0] sm:$0xff] %v3757_v32  ;;  %v3726_v58 = vadd.f32 %v7193_v27, %v3687_v53  ;;  %v3611_v55 = vadd.f32 %v7082_v62, %v3385_v5  ;;  %v3387_v43 = vpop.f32.mrb[77].mxu1 }
 0x578   : > { %v3758_v36 = vmax.f32 %v3726_v58, 0.0  ;;  %v3688_v21 = vmul.f32 %v7187_v54, %v3611_v55 }
 0x579   : > { %v3390_v7 = vpop.f32.mrb[78].mxu1 }
 0x57a   : > { %3790 = vst [vmem:[%s5086_s10 + $0xa8] sm:$0xff] %v3758_v36  ;;  %v3727_v33 = vadd.f32 %v7193_v27, %v3688_v21  ;;  %v3616_v39 = vadd.f32 %v7079_v9, %v3390_v7  ;;  %v3392_v29 = vpop.f32.mrb[79].mxu1 }
 0x57c   : > { %v3759_v35 = vmax.f32 %v3727_v33, 0.0  ;;  %v3689_v12 = vmul.f32 %v7187_v54, %v3616_v39 }
 0x57d   : > { %v3395_v57 = vpop.f32.mrb[80].mxu1 }
 0x57e   : > { %3791 = vst [vmem:[%s5086_s10 + $0xb0] sm:$0xff] %v3759_v35  ;;  %v3728_v24 = vadd.f32 %v7193_v27, %v3689_v12  ;;  %v3397_v62 = vpop.f32.mrb[81].mxu1 }
 0x580   : > { %v3760_v37 = vmax.f32 %v3728_v24, 0.0 }
 0x581   : > { %v3400_v13 = vpop.f32.mrb[82].mxu1 }
 0x582   : > { %3792 = vst [vmem:[%s5086_s10 + $0xb8] sm:$0xff] %v3760_v37  ;;  %v3402_v47 = vpop.f32.mrb[83].mxu1 }
 0x585   : > { %v3405_v25 = vpop.f32.mrb[84].mxu1 }
 0x586   : > { %v3407_v20 = vpop.f32.mrb[85].mxu1 }
 0x589   : > { %v3410_v4 = vpop.f32.mrb[86].mxu1 }
 0x58a   : > { %v3412_v8 = vpop.f32.mrb[87].mxu1 }
 0x58d   : > { %v3415_v40 = vpop.f32.mrb[88].mxu1 }
 0x58e   : > { %v3417_v28 = vpop.f32.mrb[89].mxu1 }
 0x591   : > { %v3420_v9 = vpop.f32.mrb[90].mxu1 }
 0x592   : > { %v3422_v22 = vpop.f32.mrb[91].mxu1 }
 0x595   : > { %v3425_v44 = vpop.f32.mrb[92].mxu1 }
 0x596   : > { %v3427_v18 = vpop.f32.mrb[93].mxu1 }
 0x599   : > { %v3430_v11 = vpop.f32.mrb[94].mxu1 }
 0x59a   : > { %v3432_v50 = vpop.f32.mrb[95].mxu1 }
 0x59d   : > { %v4120_v3 = vpop.f32.mrb[96].mxu1 }
 0x59e   : > { %v3626_v59 = vadd.f32 %v4120_v3, %v3400_v13  ;;  %v3620_v46 = vpop.f32.mrb[97].mxu1 }
 0x59f   : > { %v3621_v42 = vadd.f32 %v3620_v46, %v3395_v57 }
 0x5a0   : > { %v3691_v60 = vmul.f32 %v7187_v54, %v3626_v59 }
 0x5a1   : > { %v3690_v6 = vmul.f32 %v7187_v54, %v3621_v42  ;;  %v4123_v51 = vpop.f32.mrb[98].mxu1 }
 0x5a2   : > { %v3730_v10 = vadd.f32 %v7193_v27, %v3691_v60  ;;  %v3636_v31 = vadd.f32 %v4123_v51, %v3410_v4  ;;  %v3630_v1 = vpop.f32.mrb[99].mxu1 }
 0x5a3   : > { %v3729_v61 = vadd.f32 %v7193_v27, %v3690_v6  ;;  %v3631_v26 = vadd.f32 %v3630_v1, %v3405_v25 }
 0x5a4   : > { %v3762_v16 = vmax.f32 %v3730_v10, 0.0  ;;  %v3693_v41 = vmul.f32 %v7187_v54, %v3636_v31 }
 0x5a5   : > { %v3761_v52 = vmax.f32 %v3729_v61, 0.0  ;;  %v3692_v2 = vmul.f32 %v7187_v54, %v3631_v26  ;;  %v4126_v23 = vpop.f32.mrb[100].mxu1 }
 0x5a6   : > { %3794 = vst [vmem:[%s5086_s10 + $0xc8] sm:$0xff] %v3762_v16  ;;  %v3732_v30 = vadd.f32 %v7193_v27, %v3693_v41  ;;  %v3646_v45 = vadd.f32 %v4126_v23, %v3420_v9  ;;  %v3640_v38 = vpop.f32.mrb[101].mxu1 }
 0x5a7   : > { %3793 = vst [vmem:[%s5086_s10 + $0xc0] sm:$0xff] %v3761_v52  ;;  %v3731_v48 = vadd.f32 %v7193_v27, %v3692_v2  ;;  %v3641_v34 = vadd.f32 %v3640_v38, %v3415_v40 }
 0x5a8   : > { %v3764_v56 = vmax.f32 %v3732_v30, 0.0  ;;  %v3695_v49 = vmul.f32 %v7187_v54, %v3646_v45 }
 0x5a9   : > { %v3763_v63 = vmax.f32 %v3731_v48, 0.0  ;;  %v3694_v19 = vmul.f32 %v7187_v54, %v3641_v34  ;;  %v4129_v0 = vpop.f32.mrb[102].mxu1 }
 0x5aa   : > { %3796 = vst [vmem:[%s5086_s10 + $0xd8] sm:$0xff] %v3764_v56  ;;  %v3734_v17 = vadd.f32 %v7193_v27, %v3695_v49  ;;  %v3656_v14 = vadd.f32 %v4129_v0, %v3430_v11  ;;  %v3650_v15 = vpop.f32.mrb[103].mxu1 }
 0x5ab   : > { %3795 = vst [vmem:[%s5086_s10 + $0xd0] sm:$0xff] %v3763_v63  ;;  %v3733_v32 = vadd.f32 %v7193_v27, %v3694_v19  ;;  %v3651_v53 = vadd.f32 %v3650_v15, %v3425_v44 }
 0x5ac   : > { %v3766_v5 = vmax.f32 %v3734_v17, 0.0  ;;  %v3697_v58 = vmul.f32 %v7187_v54, %v3656_v14 }
 0x5ad   : > { %v3765_v55 = vmax.f32 %v3733_v32, 0.0  ;;  %v3696_v43 = vmul.f32 %v7187_v54, %v3651_v53 }
 0x5ae   : > { %3798 = vst [vmem:[%s5086_s10 + $0xe8] sm:$0xff] %v3766_v5  ;;  %v3736_v36 = vadd.f32 %v7193_v27, %v3697_v58 }
 0x5af   : > { %3797 = vst [vmem:[%s5086_s10 + $0xe0] sm:$0xff] %v3765_v55  ;;  %v3735_v21 = vadd.f32 %v7193_v27, %v3696_v43 }
 0x5b0   : > { %v3768_v7 = vmax.f32 %v3736_v36, 0.0 }
 0x5b1   : > { %v3767_v33 = vmax.f32 %v3735_v21, 0.0 }
 0x5b2   : > { %3800 = vst [vmem:[%s5086_s10 + $0xf8] sm:$0xff] %v3768_v7 }
 0x5b3   : > { %3799 = vst [vmem:[%s5086_s10 + $0xf0] sm:$0xff] %v3767_v33 }
 0x5b4 PF: > { %s17_s24 = sadd.s32 1, %s5026_s24  }
 0x5b5   : > { %p14_p5 = scmp.ge.s32.totalorder %s17_s24, 4  }
 0x5b7   :  { %16 = sbr.rel (!%p14_p5) target bundleno = 1 (0x1), region = 84 }

</bundles_post_ra>
